<compile_context>
chip_gen: v6e
topology: v6e:2x2x1
jax: 0.10.0
libtpu: 0.0.40
codegen_flags: <defaults>
</compile_context>

<pallas_src>
import functools

import jax
import jax.numpy as jnp
from jax.experimental import pallas as pl
from jax.experimental.pallas import tpu as pltpu

BN_EPS = 1e-5
LRELU_SLOPE = 0.01

# Tile sizes.  Double-buffered bf16 input tiles + the resident f32 output tile
# stay at a few MiB -- comfortably inside v7x's 64 MiB physical VMEM (and well
# inside v5e/v6e).  TN is kept lane-dense (128); for real channel counts >128
# on v6e/v7x a 256-wide TN would feed the 2x256x256 MXU better.
TM_MAX = 512     # GEMM rows  (N*D*H*W), multiple of 8
TK_MAX = 512     # contraction (KD*KH*KW*Cin), multiple of 128
TN = 128         # output channels (lane-dense)


def _round_up(x, m):
    return (x + m - 1) // m * m


# ---------------------------------------------------------------------------
# Phase 1: tiled GEMM + per-M-tile partial BatchNorm statistics
# ---------------------------------------------------------------------------
def _gemm_stats_kernel(p_ref, w_ref, y_ref, sum_ref, ssq_ref):
    # p_ref : (TM, TK) bf16 patches      w_ref : (TK, TN) bf16 weights
    # y_ref : (TM, TN) f32   resident across the K axis -> used as accumulator
    # sum_ref/ssq_ref : (8, TN) f32  per-(M-tile, Cout-tile) partial stats
    k = pl.program_id(2)

    @pl.when(k == 0)
    def _():
        y_ref[...] = jnp.zeros_like(y_ref)

    y_ref[...] += jnp.dot(p_ref[...], w_ref[...],
                          preferred_element_type=jnp.float32)

    @pl.when(k == pl.num_programs(2) - 1)
    def _():
        y = y_ref[...]
        s = jnp.sum(y, axis=0, keepdims=True)        # (1, TN)
        q = jnp.sum(y * y, axis=0, keepdims=True)    # (1, TN)
        # Replicate across the 8 sublanes of the stats tile (sliced outside).
        sum_ref[...] = s + jnp.zeros(sum_ref.shape, jnp.float32)
        ssq_ref[...] = q + jnp.zeros(ssq_ref.shape, jnp.float32)


def _gemm_stats_call(patches, wmat):
    # patches: (M_pad, K_pad) bf16 ;  wmat: (K_pad, Cp) bf16
    M_pad, K_pad = patches.shape
    Cp = wmat.shape[1]
    tm = min(TM_MAX, M_pad)
    tk = min(TK_MAX, K_pad)
    gm, gn, gk = M_pad // tm, Cp // TN, K_pad // tk

    flops = 2 * M_pad * K_pad * Cp
    bytes_accessed = (M_pad * K_pad * 2            # patches (bf16)
                      + gm * K_pad * Cp * 2        # weights re-read per M tile
                      + M_pad * Cp * 4             # y (f32)
                      + 2 * gm * 8 * Cp * 4)       # partial stats
    vmem_need = 2 * (tm * tk * 2 + tk * TN * 2 + tm * TN * 4 + 2 * 8 * TN * 4)
    vmem_limit = int(min(max(4 * vmem_need, 32 * 1024 * 1024),
                         48 * 1024 * 1024))

    y, psum, pssq = pl.pallas_call(
        _gemm_stats_kernel,
        out_shape=(
            jax.ShapeDtypeStruct((M_pad, Cp), jnp.float32),
            jax.ShapeDtypeStruct((gm * 8, Cp), jnp.float32),
            jax.ShapeDtypeStruct((gm * 8, Cp), jnp.float32),
        ),
        grid=(gm, gn, gk),
        in_specs=[
            pl.BlockSpec((tm, tk), lambda i, j, k: (i, k)),
            pl.BlockSpec((tk, TN), lambda i, j, k: (k, j)),
        ],
        out_specs=(
            pl.BlockSpec((tm, TN), lambda i, j, k: (i, j)),
            pl.BlockSpec((8, TN), lambda i, j, k: (i, j)),
            pl.BlockSpec((8, TN), lambda i, j, k: (i, j)),
        ),
        compiler_params=pltpu.CompilerParams(
            dimension_semantics=("parallel", "parallel", "arbitrary"),
            vmem_limit_bytes=vmem_limit,
        ),
        cost_estimate=pl.CostEstimate(
            flops=flops, transcendentals=0, bytes_accessed=bytes_accessed),
    )(patches, wmat)
    return y, psum, pssq


# ---------------------------------------------------------------------------
# Phase 2: elementwise normalize (folded scale/shift) + LeakyReLU
# ---------------------------------------------------------------------------
def _bn_lrelu_kernel(y_ref, scale_ref, shift_ref, o_ref):
    out = y_ref[...] * scale_ref[...] + shift_ref[...]
    o_ref[...] = jnp.where(out >= 0.0, out, LRELU_SLOPE * out)


def _bn_lrelu_call(y, scale, shift):
    M_pad, Cp = y.shape
    tm = min(TM_MAX, M_pad)
    gm, gn = M_pad // tm, Cp // TN
    return pl.pallas_call(
        _bn_lrelu_kernel,
        out_shape=jax.ShapeDtypeStruct((M_pad, Cp), jnp.float32),
        grid=(gm, gn),
        in_specs=[
            pl.BlockSpec((tm, TN), lambda i, j: (i, j)),
            pl.BlockSpec((1, TN), lambda i, j: (0, j)),
            pl.BlockSpec((1, TN), lambda i, j: (0, j)),
        ],
        out_specs=pl.BlockSpec((tm, TN), lambda i, j: (i, j)),
        compiler_params=pltpu.CompilerParams(
            dimension_semantics=("parallel", "parallel")),
        cost_estimate=pl.CostEstimate(
            flops=3 * M_pad * Cp, transcendentals=0,
            bytes_accessed=2 * M_pad * Cp * 4),
    )(y, scale, shift)


# ---------------------------------------------------------------------------
# JAX glue: im2col (stride 1) in bf16, padding to tile multiples
# ---------------------------------------------------------------------------
def _im2col(x, ksize, padding, dilation):
    # x: (N, D, H, W, C)
    N, D, H, W, C = x.shape
    KD, KH, KW = ksize
    pd = ph = pw = int(padding)
    dd = dh = dw = int(dilation)
    xp = jnp.pad(x, ((0, 0), (pd, pd), (ph, ph), (pw, pw), (0, 0)))
    Dout = D + 2 * pd - dd * (KD - 1)
    Hout = H + 2 * ph - dh * (KH - 1)
    Wout = W + 2 * pw - dw * (KW - 1)
    cols = []
    for kd in range(KD):
        for kh in range(KH):
            for kw in range(KW):
                cols.append(
                    xp[:, kd * dd:kd * dd + Dout,
                          kh * dh:kh * dh + Hout,
                          kw * dw:kw * dw + Wout, :]
                )
    patches = jnp.concatenate(cols, axis=-1)  # (N, Do, Ho, Wo, KD*KH*KW*C)
    return (patches.reshape(N * Dout * Hout * Wout, KD * KH * KW * C),
            (N, Dout, Hout, Wout))


def conv_bn_lrelu(x, w, gamma, beta, padding, dilation):
    # x: (N, D, H, W, Cin);  w: (KD, KH, KW, Cin, Cout)
    KD, KH, KW, Cin, Cout = w.shape
    x16 = x.astype(jnp.bfloat16)          # bf16 halves im2col + GEMM DMA bytes
    patches, (N, Do, Ho, Wo) = _im2col(x16, (KD, KH, KW), padding, dilation)
    M, K = patches.shape

    # Pad to tile multiples: 8-aligned M, 128-aligned K, lane-dense Cout.
    M_pad = _round_up(M, 8)
    if M_pad > TM_MAX:
        M_pad = _round_up(M, TM_MAX)
    K_pad = _round_up(K, 128)
    if K_pad > TK_MAX:
        K_pad = _round_up(K, TK_MAX)
    Cp = _round_up(Cout, TN)

    patches = jnp.pad(patches, ((0, M_pad - M), (0, K_pad - K)))
    wmat = w.reshape(KD * KH * KW * Cin, Cout).astype(jnp.bfloat16)
    wmat = jnp.pad(wmat, ((0, K_pad - K), (0, Cp - Cout)))

    # Phase 1: GEMM + per-tile partial statistics.
    y, psum, pssq = _gemm_stats_call(patches, wmat)

    # Reduce partials to the global batch statistics over the true M rows
    # (padded rows/channels are exact zeros, so they contribute nothing).
    gm = psum.shape[0] // 8
    total_sum = psum.reshape(gm, 8, Cp)[:, 0, :].sum(axis=0)
    total_ssq = pssq.reshape(gm, 8, Cp)[:, 0, :].sum(axis=0)
    mean = total_sum / float(M)
    var = jnp.maximum(total_ssq / float(M) - mean * mean, 0.0)  # biased var
    inv_std = jax.lax.rsqrt(var + BN_EPS)

    g = jnp.pad(gamma.astype(jnp.float32), (0, Cp - Cout))
    b = jnp.pad(beta.astype(jnp.float32), (0, Cp - Cout))
    scale = (g * inv_std).reshape(1, Cp)
    shift = (b - mean * g * inv_std).reshape(1, Cp)

    # Phase 2: normalize + LeakyReLU.
    out = _bn_lrelu_call(y, scale, shift)
    return out[:M, :Cout].reshape(N, Do, Ho, Wo, Cout)


# ---------------------------------------------------------------------------
# Module forward passes (channel concat is along the last axis in NDHWC)
# ---------------------------------------------------------------------------
def ddense_block_forward(x, p, padding, dilation):
    (w1, _b1) = p["conv_1"]          # conv biases cancel under batch-stat BN
    (w2, _b2) = p["conv_2"]
    (w3, _b3) = p["conv_3"]
    (g, bt) = p["norm"]              # single BN module shared by conv_1/2/3
    # conv_1 -> dropout(identity) -> norm -> nonlin
    out = conv_bn_lrelu(x, w1, g, bt, padding[0], dilation[0])
    residual_1 = jnp.concatenate([x, out], axis=-1)
    # conv_2 -> dropout(identity) -> norm -> nonlin
    out = conv_bn_lrelu(residual_1, w2, g, bt, padding[1], dilation[1])
    residual_1 = jnp.concatenate([out, residual_1], axis=-1)
    # conv_3 -> dropout(identity) -> norm -> nonlin
    out = conv_bn_lrelu(residual_1, w3, g, bt, padding[2], dilation[2])
    out = jnp.concatenate([residual_1, out], axis=-1)
    # 1x1x1 conv -> norm_1_1 -> nonlin_1_1
    (w11, _b11) = p["conv_1_1"]
    (g11, bt11) = p["norm_1_1"]
    out = conv_bn_lrelu(out, w11, g11, bt11, 0, 1)
    return out


def dense_up_block_forward(x, params, padding, dilation):
    (w0, _b0) = params["conv0"]
    (g0, bt0) = params["norm0"]
    x = conv_bn_lrelu(x, w0, g0, bt0, 0, 1)            # conv0 -> norm0 -> nonlin0
    residual_1 = x
    out = ddense_block_forward(x, params["block1"], padding, dilation)
    residual_2 = out
    concat_1 = jnp.concatenate([out, residual_1], axis=-1)
    out = ddense_block_forward(concat_1, params["block2"], padding, dilation)
    concat_2 = jnp.concatenate([out, residual_1], axis=-1)
    concat_2 = jnp.concatenate([concat_2, residual_2], axis=-1)
    (w3, _b3) = params["conv3"]
    (g3, bt3) = params["norm3"]
    out = conv_bn_lrelu(concat_2, w3, g3, bt3, 0, 1)   # conv3 -> norm3 -> nonlin3
    return out


# ---------------------------------------------------------------------------
# Deterministic parameter initialization (shapes from the module __init__)
# ---------------------------------------------------------------------------
def _conv_params(key, kd, kh, kw, cin, cout):
    k1, k2 = jax.random.split(key)
    w = 0.1 * jax.random.normal(k1, (kd, kh, kw, cin, cout), jnp.float32)
    b = 0.05 * jax.random.normal(k2, (cout,), jnp.float32)   # dead under BN
    return (w, b)


def _bn_params(key, c):
    k1, k2 = jax.random.split(key)
    gamma = 1.0 + 0.1 * jax.random.normal(k1, (c,), jnp.float32)
    beta = 0.05 * jax.random.normal(k2, (c,), jnp.float32)
    return (gamma, beta)


def init_params(key, in_planes, kernel_size):
    aim = in_planes // 2
    kd, kh, kw = kernel_size
    keys = iter(jax.random.split(key, 16))

    def ddense_params(inplanes, planes):
        return {
            "conv_1": _conv_params(next(keys), kd, kh, kw, inplanes, planes),
            "conv_2": _conv_params(next(keys), kd, kh, kw, inplanes + planes, planes),
            "conv_3": _conv_params(next(keys), kd, kh, kw, inplanes + 2 * planes, planes),
            "norm": _bn_params(next(keys), planes),
            "conv_1_1": _conv_params(next(keys), 1, 1, 1, inplanes + 3 * planes, planes),
            "norm_1_1": _bn_params(next(keys), planes),
        }

    params = {
        "conv0": _conv_params(next(keys), 1, 1, 1, in_planes, aim),
        "norm0": _bn_params(next(keys), aim),
        "block1": ddense_params(aim, aim),
        "block2": ddense_params(aim * 2, aim),
        "conv3": _conv_params(next(keys), 1, 1, 1, aim * 3, aim),
        "norm3": _bn_params(next(keys), aim),
    }
    return params


# ---------------------------------------------------------------------------
if __name__ == "__main__":
    key = jax.random.PRNGKey(0)
    kx, kp = jax.random.split(key)

    # PyTorch-style NCDHW input: batch=2, in_planes=8, spatial 8x8x8
    N, C_IN, D, H, W = 2, 8, 8, 8, 8
    kernel_size = (3, 3, 3)
    padding = (1, 1, 1)     # per-layer padding for the DDense blocks
    dilation = (1, 1, 1)    # per-layer dilation for the DDense blocks

    x_ncdhw = jax.random.normal(kx, (N, C_IN, D, H, W), jnp.float32)
    # layout: transpose to NDHWC for the kernel path
    x = jnp.transpose(x_ncdhw, (0, 2, 3, 4, 1))

    params = init_params(kp, C_IN, kernel_size)

    fwd = jax.jit(functools.partial(dense_up_block_forward,
                                    padding=padding, dilation=dilation))
    out = fwd(x, params)                       # (N, D, H, W, aim_planes)
    out_ncdhw = jnp.transpose(out, (0, 4, 1, 2, 3))
    jax.block_until_ready(out_ncdhw)

    assert out_ncdhw.shape == (N, C_IN // 2, D, H, W), out_ncdhw.shape
    assert bool(jnp.all(jnp.isfinite(out_ncdhw)))
    print("KERNEL_OK")
</pallas_src>

<mosaic_0001>
module attributes {stable_mosaic.version = 11 : i64} {
  func.func @_bn_lrelu_kernel(%arg0: i32, %arg1: i32, %arg2: memref<512x128xf32, #tpu.memory_space<vmem>>, %arg3: memref<1x128xf32, #tpu.memory_space<vmem>>, %arg4: memref<1x128xf32, #tpu.memory_space<vmem>>, %arg5: memref<512x128xf32, #tpu.memory_space<vmem>>) attributes {dimension_semantics = [#tpu.dimension_semantics<parallel>, #tpu.dimension_semantics<parallel>], iteration_bounds = array<i64: 2, 1>, scalar_prefetch = 0 : i64, scratch_operands = 0 : i64, tpu.core_type = #tpu.core_type<tc>, window_params = [{transform_indices = @transform_0, window_bounds = array<i64: 512, 128>}, {transform_indices = @transform_1, window_bounds = array<i64: 1, 128>}, {transform_indices = @transform_2, window_bounds = array<i64: 1, 128>}, {transform_indices = @transform_3, window_bounds = array<i64: 512, 128>}]} {
    %c0 = arith.constant 0 : index
    %c0_0 = arith.constant 0 : index
    %0 = vector.load %arg2[%c0, %c0_0] : memref<512x128xf32, #tpu.memory_space<vmem>>, vector<512x128xf32>
    %c0_1 = arith.constant 0 : index
    %c0_2 = arith.constant 0 : index
    %1 = vector.load %arg3[%c0_1, %c0_2] : memref<1x128xf32, #tpu.memory_space<vmem>>, vector<1x128xf32>
    %2 = vector.broadcast %1 : vector<1x128xf32> to vector<512x128xf32>
    %3 = arith.mulf %0, %2 : vector<512x128xf32>
    %c0_3 = arith.constant 0 : index
    %c0_4 = arith.constant 0 : index
    %4 = vector.load %arg4[%c0_3, %c0_4] : memref<1x128xf32, #tpu.memory_space<vmem>>, vector<1x128xf32>
    %5 = vector.broadcast %4 : vector<1x128xf32> to vector<512x128xf32>
    %6 = arith.addf %3, %5 : vector<512x128xf32>
    %cst = arith.constant 0.000000e+00 : f32
    %7 = vector.broadcast %cst : f32 to vector<512x128xf32>
    %8 = arith.cmpf oge, %6, %7 : vector<512x128xf32>
    %cst_5 = arith.constant 0.00999999977 : f32
    %9 = vector.broadcast %cst_5 : f32 to vector<512x128xf32>
    %10 = arith.mulf %9, %6 : vector<512x128xf32>
    %11 = arith.select %8, %6, %10 : vector<512x128xi1>, vector<512x128xf32>
    %c0_6 = arith.constant 0 : index
    %c0_7 = arith.constant 0 : index
    %12 = vector.load %arg5[%c0_6, %c0_7] : memref<512x128xf32, #tpu.memory_space<vmem>>, vector<512x128xf32>
    tpu.vector_store %arg5[%c0_6, %c0_7], %11 {strides = array<i32>} : memref<512x128xf32, #tpu.memory_space<vmem>>, vector<512x128xf32>,
    return
  }
  func.func @transform_0(%arg0: i32, %arg1: i32) -> (i32, i32) {
    %c0_i32 = arith.constant 0 : i32
    return %arg0, %arg1 : i32, i32
  }
  func.func @transform_1(%arg0: i32, %arg1: i32) -> (i32, i32) {
    %c0_i32 = arith.constant 0 : i32
    %c0_i32_0 = arith.constant 0 : i32
    return %c0_i32, %arg1 : i32, i32
  }
  func.func @transform_2(%arg0: i32, %arg1: i32) -> (i32, i32) {
    %c0_i32 = arith.constant 0 : i32
    %c0_i32_0 = arith.constant 0 : i32
    return %c0_i32, %arg1 : i32, i32
  }
  func.func @transform_3(%arg0: i32, %arg1: i32) -> (i32, i32) {
    %c0_i32 = arith.constant 0 : i32
    return %arg0, %arg1 : i32, i32
  }
}

module attributes {stable_mosaic.version = 11 : i64} {
  func.func @_gemm_stats_kernel(%arg0: i32, %arg1: i32, %arg2: i32, %arg3: memref<512x128xbf16, #tpu.memory_space<vmem>>, %arg4: memref<128x128xbf16, #tpu.memory_space<vmem>>, %arg5: memref<512x128xf32, #tpu.memory_space<vmem>>, %arg6: memref<8x128xf32, #tpu.memory_space<vmem>>, %arg7: memref<8x128xf32, #tpu.memory_space<vmem>>) attributes {dimension_semantics = [#tpu.dimension_semantics<parallel>, #tpu.dimension_semantics<parallel>, #tpu.dimension_semantics<arbitrary>], iteration_bounds = array<i64: 2, 1, 1>, scalar_prefetch = 0 : i64, scratch_operands = 0 : i64, tpu.core_type = #tpu.core_type<tc>, window_params = [{transform_indices = @transform_0, window_bounds = array<i64: 512, 128>}, {transform_indices = @transform_1, window_bounds = array<i64: 128, 128>}, {transform_indices = @transform_2, window_bounds = array<i64: 512, 128>}, {transform_indices = @transform_3, window_bounds = array<i64: 8, 128>}, {transform_indices = @transform_4, window_bounds = array<i64: 8, 128>}]} {
    %c0_i32 = arith.constant 0 : i32
    %0 = arith.cmpi eq, %arg2, %c0_i32 : i32
    %1 = arith.extui %0 : i1 to i32
    %c0_i32_0 = arith.constant 0 : i32
    %2 = arith.cmpi ne, %1, %c0_i32_0 : i32
    scf.if %2 {
      %cst_10 = arith.constant 0.000000e+00 : f32
      %12 = vector.broadcast %cst_10 : f32 to vector<512x128xf32>
      %c0_11 = arith.constant 0 : index
      %c0_12 = arith.constant 0 : index
      %13 = vector.load %arg5[%c0_11, %c0_12] : memref<512x128xf32, #tpu.memory_space<vmem>>, vector<512x128xf32>
      tpu.vector_store %arg5[%c0_11, %c0_12], %12 {strides = array<i32>} : memref<512x128xf32, #tpu.memory_space<vmem>>, vector<512x128xf32>,
    } else {
    }
    %c0 = arith.constant 0 : index
    %c0_1 = arith.constant 0 : index
    %3 = vector.load %arg5[%c0, %c0_1] : memref<512x128xf32, #tpu.memory_space<vmem>>, vector<512x128xf32>
    %c0_2 = arith.constant 0 : index
    %c0_3 = arith.constant 0 : index
    %4 = vector.load %arg3[%c0_2, %c0_3] : memref<512x128xbf16, #tpu.memory_space<vmem>>, vector<512x128xbf16>
    %c0_4 = arith.constant 0 : index
    %c0_5 = arith.constant 0 : index
    %5 = vector.load %arg4[%c0_4, %c0_5] : memref<128x128xbf16, #tpu.memory_space<vmem>>, vector<128x128xbf16>
    %cst = arith.constant dense<0.000000e+00> : vector<512x128xf32>
    %6 = tpu.matmul %4, %5, %cst {dimension_numbers = #tpu.dot_dimension_numbers<[1], [0], [0], [1], [0, 0, 1, 1], [], []>} : vector<512x128xbf16>, vector<128x128xbf16>, vector<512x128xf32> -> vector<512x128xf32>
    %7 = arith.addf %3, %6 : vector<512x128xf32>
    %c0_6 = arith.constant 0 : index
    %c0_7 = arith.constant 0 : index
    %8 = vector.load %arg5[%c0_6, %c0_7] : memref<512x128xf32, #tpu.memory_space<vmem>>, vector<512x128xf32>
    tpu.vector_store %arg5[%c0_6, %c0_7], %7 {strides = array<i32>} : memref<512x128xf32, #tpu.memory_space<vmem>>, vector<512x128xf32>,
    %c0_i32_8 = arith.constant 0 : i32
    %9 = arith.cmpi eq, %arg2, %c0_i32_8 : i32
    %10 = arith.extui %9 : i1 to i32
    %c0_i32_9 = arith.constant 0 : i32
    %11 = arith.cmpi ne, %10, %c0_i32_9 : i32
    scf.if %11 {
      %c0_10 = arith.constant 0 : index
      %c0_11 = arith.constant 0 : index
      %12 = vector.load %arg5[%c0_10, %c0_11] : memref<512x128xf32, #tpu.memory_space<vmem>>, vector<512x128xf32>
      %cst_12 = arith.constant dense<0.000000e+00> : vector<128xf32>
      %13 = vector.multi_reduction <add>, %12, %cst_12 [0] : vector<512x128xf32> to vector<128xf32>
      %14 = vector.shape_cast %13 : vector<128xf32> to vector<1x128xf32>
      %15 = arith.mulf %12, %12 : vector<512x128xf32>
      %cst_13 = arith.constant dense<0.000000e+00> : vector<128xf32>
      %16 = vector.multi_reduction <add>, %15, %cst_13 [0] : vector<512x128xf32> to vector<128xf32>
      %17 = vector.shape_cast %16 : vector<128xf32> to vector<1x128xf32>
      %cst_14 = arith.constant 0.000000e+00 : f32
      %18 = vector.broadcast %cst_14 : f32 to vector<8x128xf32>
      %19 = vector.broadcast %14 : vector<1x128xf32> to vector<8x128xf32>
      %20 = arith.addf %19, %18 : vector<8x128xf32>
      %c0_15 = arith.constant 0 : index
      %c0_16 = arith.constant 0 : index
      %21 = vector.load %arg6[%c0_15, %c0_16] : memref<8x128xf32, #tpu.memory_space<vmem>>, vector<8x128xf32>
      tpu.vector_store %arg6[%c0_15, %c0_16], %20 {strides = array<i32>} : memref<8x128xf32, #tpu.memory_space<vmem>>, vector<8x128xf32>,
      %cst_17 = arith.constant 0.000000e+00 : f32
      %22 = vector.broadcast %cst_17 : f32 to vector<8x128xf32>
      %23 = vector.broadcast %17 : vector<1x128xf32> to vector<8x128xf32>
      %24 = arith.addf %23, %22 : vector<8x128xf32>
      %c0_18 = arith.constant 0 : index
      %c0_19 = arith.constant 0 : index
      %25 = vector.load %arg7[%c0_18, %c0_19] : memref<8x128xf32, #tpu.memory_space<vmem>>, vector<8x128xf32>
      tpu.vector_store %arg7[%c0_18, %c0_19], %24 {strides = array<i32>} : memref<8x128xf32, #tpu.memory_space<vmem>>, vector<8x128xf32>,
    } else {
    }
    return
  }
  func.func @transform_0(%arg0: i32, %arg1: i32, %arg2: i32) -> (i32, i32) {
    %c0_i32 = arith.constant 0 : i32
    return %arg0, %arg2 : i32, i32
  }
  func.func @transform_1(%arg0: i32, %arg1: i32, %arg2: i32) -> (i32, i32) {
    %c0_i32 = arith.constant 0 : i32
    return %arg2, %arg1 : i32, i32
  }
  func.func @transform_2(%arg0: i32, %arg1: i32, %arg2: i32) -> (i32, i32) {
    %c0_i32 = arith.constant 0 : i32
    return %arg0, %arg1 : i32, i32
  }
  func.func @transform_3(%arg0: i32, %arg1: i32, %arg2: i32) -> (i32, i32) {
    %c0_i32 = arith.constant 0 : i32
    return %arg0, %arg1 : i32, i32
  }
  func.func @transform_4(%arg0: i32, %arg1: i32, %arg2: i32) -> (i32, i32) {
    %c0_i32 = arith.constant 0 : i32
    return %arg0, %arg1 : i32, i32
  }
}

module attributes {stable_mosaic.version = 11 : i64} {
  func.func @_gemm_stats_kernel(%arg0: i32, %arg1: i32, %arg2: i32, %arg3: memref<512x256xbf16, #tpu.memory_space<vmem>>, %arg4: memref<256x128xbf16, #tpu.memory_space<vmem>>, %arg5: memref<512x128xf32, #tpu.memory_space<vmem>>, %arg6: memref<8x128xf32, #tpu.memory_space<vmem>>, %arg7: memref<8x128xf32, #tpu.memory_space<vmem>>) attributes {dimension_semantics = [#tpu.dimension_semantics<parallel>, #tpu.dimension_semantics<parallel>, #tpu.dimension_semantics<arbitrary>], iteration_bounds = array<i64: 2, 1, 1>, scalar_prefetch = 0 : i64, scratch_operands = 0 : i64, tpu.core_type = #tpu.core_type<tc>, window_params = [{transform_indices = @transform_0, window_bounds = array<i64: 512, 256>}, {transform_indices = @transform_1, window_bounds = array<i64: 256, 128>}, {transform_indices = @transform_2, window_bounds = array<i64: 512, 128>}, {transform_indices = @transform_3, window_bounds = array<i64: 8, 128>}, {transform_indices = @transform_4, window_bounds = array<i64: 8, 128>}]} {
    %c0_i32 = arith.constant 0 : i32
    %0 = arith.cmpi eq, %arg2, %c0_i32 : i32
    %1 = arith.extui %0 : i1 to i32
    %c0_i32_0 = arith.constant 0 : i32
    %2 = arith.cmpi ne, %1, %c0_i32_0 : i32
    scf.if %2 {
      %cst_10 = arith.constant 0.000000e+00 : f32
      %12 = vector.broadcast %cst_10 : f32 to vector<512x128xf32>
      %c0_11 = arith.constant 0 : index
      %c0_12 = arith.constant 0 : index
      %13 = vector.load %arg5[%c0_11, %c0_12] : memref<512x128xf32, #tpu.memory_space<vmem>>, vector<512x128xf32>
      tpu.vector_store %arg5[%c0_11, %c0_12], %12 {strides = array<i32>} : memref<512x128xf32, #tpu.memory_space<vmem>>, vector<512x128xf32>,
    } else {
    }
    %c0 = arith.constant 0 : index
    %c0_1 = arith.constant 0 : index
    %3 = vector.load %arg5[%c0, %c0_1] : memref<512x128xf32, #tpu.memory_space<vmem>>, vector<512x128xf32>
    %c0_2 = arith.constant 0 : index
    %c0_3 = arith.constant 0 : index
    %4 = vector.load %arg3[%c0_2, %c0_3] : memref<512x256xbf16, #tpu.memory_space<vmem>>, vector<512x256xbf16>
    %c0_4 = arith.constant 0 : index
    %c0_5 = arith.constant 0 : index
    %5 = vector.load %arg4[%c0_4, %c0_5] : memref<256x128xbf16, #tpu.memory_space<vmem>>, vector<256x128xbf16>
    %cst = arith.constant dense<0.000000e+00> : vector<512x128xf32>
    %6 = tpu.matmul %4, %5, %cst {dimension_numbers = #tpu.dot_dimension_numbers<[1], [0], [0], [1], [0, 0, 1, 1], [], []>} : vector<512x256xbf16>, vector<256x128xbf16>, vector<512x128xf32> -> vector<512x128xf32>
    %7 = arith.addf %3, %6 : vector<512x128xf32>
    %c0_6 = arith.constant 0 : index
    %c0_7 = arith.constant 0 : index
    %8 = vector.load %arg5[%c0_6, %c0_7] : memref<512x128xf32, #tpu.memory_space<vmem>>, vector<512x128xf32>
    tpu.vector_store %arg5[%c0_6, %c0_7], %7 {strides = array<i32>} : memref<512x128xf32, #tpu.memory_space<vmem>>, vector<512x128xf32>,
    %c0_i32_8 = arith.constant 0 : i32
    %9 = arith.cmpi eq, %arg2, %c0_i32_8 : i32
    %10 = arith.extui %9 : i1 to i32
    %c0_i32_9 = arith.constant 0 : i32
    %11 = arith.cmpi ne, %10, %c0_i32_9 : i32
    scf.if %11 {
      %c0_10 = arith.constant 0 : index
      %c0_11 = arith.constant 0 : index
      %12 = vector.load %arg5[%c0_10, %c0_11] : memref<512x128xf32, #tpu.memory_space<vmem>>, vector<512x128xf32>
      %cst_12 = arith.constant dense<0.000000e+00> : vector<128xf32>
      %13 = vector.multi_reduction <add>, %12, %cst_12 [0] : vector<512x128xf32> to vector<128xf32>
      %14 = vector.shape_cast %13 : vector<128xf32> to vector<1x128xf32>
      %15 = arith.mulf %12, %12 : vector<512x128xf32>
      %cst_13 = arith.constant dense<0.000000e+00> : vector<128xf32>
      %16 = vector.multi_reduction <add>, %15, %cst_13 [0] : vector<512x128xf32> to vector<128xf32>
      %17 = vector.shape_cast %16 : vector<128xf32> to vector<1x128xf32>
      %cst_14 = arith.constant 0.000000e+00 : f32
      %18 = vector.broadcast %cst_14 : f32 to vector<8x128xf32>
      %19 = vector.broadcast %14 : vector<1x128xf32> to vector<8x128xf32>
      %20 = arith.addf %19, %18 : vector<8x128xf32>
      %c0_15 = arith.constant 0 : index
      %c0_16 = arith.constant 0 : index
      %21 = vector.load %arg6[%c0_15, %c0_16] : memref<8x128xf32, #tpu.memory_space<vmem>>, vector<8x128xf32>
      tpu.vector_store %arg6[%c0_15, %c0_16], %20 {strides = array<i32>} : memref<8x128xf32, #tpu.memory_space<vmem>>, vector<8x128xf32>,
      %cst_17 = arith.constant 0.000000e+00 : f32
      %22 = vector.broadcast %cst_17 : f32 to vector<8x128xf32>
      %23 = vector.broadcast %17 : vector<1x128xf32> to vector<8x128xf32>
      %24 = arith.addf %23, %22 : vector<8x128xf32>
      %c0_18 = arith.constant 0 : index
      %c0_19 = arith.constant 0 : index
      %25 = vector.load %arg7[%c0_18, %c0_19] : memref<8x128xf32, #tpu.memory_space<vmem>>, vector<8x128xf32>
      tpu.vector_store %arg7[%c0_18, %c0_19], %24 {strides = array<i32>} : memref<8x128xf32, #tpu.memory_space<vmem>>, vector<8x128xf32>,
    } else {
    }
    return
  }
  func.func @transform_0(%arg0: i32, %arg1: i32, %arg2: i32) -> (i32, i32) {
    %c0_i32 = arith.constant 0 : i32
    return %arg0, %arg2 : i32, i32
  }
  func.func @transform_1(%arg0: i32, %arg1: i32, %arg2: i32) -> (i32, i32) {
    %c0_i32 = arith.constant 0 : i32
    return %arg2, %arg1 : i32, i32
  }
  func.func @transform_2(%arg0: i32, %arg1: i32, %arg2: i32) -> (i32, i32) {
    %c0_i32 = arith.constant 0 : i32
    return %arg0, %arg1 : i32, i32
  }
  func.func @transform_3(%arg0: i32, %arg1: i32, %arg2: i32) -> (i32, i32) {
    %c0_i32 = arith.constant 0 : i32
    return %arg0, %arg1 : i32, i32
  }
  func.func @transform_4(%arg0: i32, %arg1: i32, %arg2: i32) -> (i32, i32) {
    %c0_i32 = arith.constant 0 : i32
    return %arg0, %arg1 : i32, i32
  }
}

module attributes {stable_mosaic.version = 11 : i64} {
  func.func @_gemm_stats_kernel(%arg0: i32, %arg1: i32, %arg2: i32, %arg3: memref<512x384xbf16, #tpu.memory_space<vmem>>, %arg4: memref<384x128xbf16, #tpu.memory_space<vmem>>, %arg5: memref<512x128xf32, #tpu.memory_space<vmem>>, %arg6: memref<8x128xf32, #tpu.memory_space<vmem>>, %arg7: memref<8x128xf32, #tpu.memory_space<vmem>>) attributes {dimension_semantics = [#tpu.dimension_semantics<parallel>, #tpu.dimension_semantics<parallel>, #tpu.dimension_semantics<arbitrary>], iteration_bounds = array<i64: 2, 1, 1>, scalar_prefetch = 0 : i64, scratch_operands = 0 : i64, tpu.core_type = #tpu.core_type<tc>, window_params = [{transform_indices = @transform_0, window_bounds = array<i64: 512, 384>}, {transform_indices = @transform_1, window_bounds = array<i64: 384, 128>}, {transform_indices = @transform_2, window_bounds = array<i64: 512, 128>}, {transform_indices = @transform_3, window_bounds = array<i64: 8, 128>}, {transform_indices = @transform_4, window_bounds = array<i64: 8, 128>}]} {
    %c0_i32 = arith.constant 0 : i32
    %0 = arith.cmpi eq, %arg2, %c0_i32 : i32
    %1 = arith.extui %0 : i1 to i32
    %c0_i32_0 = arith.constant 0 : i32
    %2 = arith.cmpi ne, %1, %c0_i32_0 : i32
    scf.if %2 {
      %cst_10 = arith.constant 0.000000e+00 : f32
      %12 = vector.broadcast %cst_10 : f32 to vector<512x128xf32>
      %c0_11 = arith.constant 0 : index
      %c0_12 = arith.constant 0 : index
      %13 = vector.load %arg5[%c0_11, %c0_12] : memref<512x128xf32, #tpu.memory_space<vmem>>, vector<512x128xf32>
      tpu.vector_store %arg5[%c0_11, %c0_12], %12 {strides = array<i32>} : memref<512x128xf32, #tpu.memory_space<vmem>>, vector<512x128xf32>,
    } else {
    }
    %c0 = arith.constant 0 : index
    %c0_1 = arith.constant 0 : index
    %3 = vector.load %arg5[%c0, %c0_1] : memref<512x128xf32, #tpu.memory_space<vmem>>, vector<512x128xf32>
    %c0_2 = arith.constant 0 : index
    %c0_3 = arith.constant 0 : index
    %4 = vector.load %arg3[%c0_2, %c0_3] : memref<512x384xbf16, #tpu.memory_space<vmem>>, vector<512x384xbf16>
    %c0_4 = arith.constant 0 : index
    %c0_5 = arith.constant 0 : index
    %5 = vector.load %arg4[%c0_4, %c0_5] : memref<384x128xbf16, #tpu.memory_space<vmem>>, vector<384x128xbf16>
    %cst = arith.constant dense<0.000000e+00> : vector<512x128xf32>
    %6 = tpu.matmul %4, %5, %cst {dimension_numbers = #tpu.dot_dimension_numbers<[1], [0], [0], [1], [0, 0, 1, 1], [], []>} : vector<512x384xbf16>, vector<384x128xbf16>, vector<512x128xf32> -> vector<512x128xf32>
    %7 = arith.addf %3, %6 : vector<512x128xf32>
    %c0_6 = arith.constant 0 : index
    %c0_7 = arith.constant 0 : index
    %8 = vector.load %arg5[%c0_6, %c0_7] : memref<512x128xf32, #tpu.memory_space<vmem>>, vector<512x128xf32>
    tpu.vector_store %arg5[%c0_6, %c0_7], %7 {strides = array<i32>} : memref<512x128xf32, #tpu.memory_space<vmem>>, vector<512x128xf32>,
    %c0_i32_8 = arith.constant 0 : i32
    %9 = arith.cmpi eq, %arg2, %c0_i32_8 : i32
    %10 = arith.extui %9 : i1 to i32
    %c0_i32_9 = arith.constant 0 : i32
    %11 = arith.cmpi ne, %10, %c0_i32_9 : i32
    scf.if %11 {
      %c0_10 = arith.constant 0 : index
      %c0_11 = arith.constant 0 : index
      %12 = vector.load %arg5[%c0_10, %c0_11] : memref<512x128xf32, #tpu.memory_space<vmem>>, vector<512x128xf32>
      %cst_12 = arith.constant dense<0.000000e+00> : vector<128xf32>
      %13 = vector.multi_reduction <add>, %12, %cst_12 [0] : vector<512x128xf32> to vector<128xf32>
      %14 = vector.shape_cast %13 : vector<128xf32> to vector<1x128xf32>
      %15 = arith.mulf %12, %12 : vector<512x128xf32>
      %cst_13 = arith.constant dense<0.000000e+00> : vector<128xf32>
      %16 = vector.multi_reduction <add>, %15, %cst_13 [0] : vector<512x128xf32> to vector<128xf32>
      %17 = vector.shape_cast %16 : vector<128xf32> to vector<1x128xf32>
      %cst_14 = arith.constant 0.000000e+00 : f32
      %18 = vector.broadcast %cst_14 : f32 to vector<8x128xf32>
      %19 = vector.broadcast %14 : vector<1x128xf32> to vector<8x128xf32>
      %20 = arith.addf %19, %18 : vector<8x128xf32>
      %c0_15 = arith.constant 0 : index
      %c0_16 = arith.constant 0 : index
      %21 = vector.load %arg6[%c0_15, %c0_16] : memref<8x128xf32, #tpu.memory_space<vmem>>, vector<8x128xf32>
      tpu.vector_store %arg6[%c0_15, %c0_16], %20 {strides = array<i32>} : memref<8x128xf32, #tpu.memory_space<vmem>>, vector<8x128xf32>,
      %cst_17 = arith.constant 0.000000e+00 : f32
      %22 = vector.broadcast %cst_17 : f32 to vector<8x128xf32>
      %23 = vector.broadcast %17 : vector<1x128xf32> to vector<8x128xf32>
      %24 = arith.addf %23, %22 : vector<8x128xf32>
      %c0_18 = arith.constant 0 : index
      %c0_19 = arith.constant 0 : index
      %25 = vector.load %arg7[%c0_18, %c0_19] : memref<8x128xf32, #tpu.memory_space<vmem>>, vector<8x128xf32>
      tpu.vector_store %arg7[%c0_18, %c0_19], %24 {strides = array<i32>} : memref<8x128xf32, #tpu.memory_space<vmem>>, vector<8x128xf32>,
    } else {
    }
    return
  }
  func.func @transform_0(%arg0: i32, %arg1: i32, %arg2: i32) -> (i32, i32) {
    %c0_i32 = arith.constant 0 : i32
    return %arg0, %arg2 : i32, i32
  }
  func.func @transform_1(%arg0: i32, %arg1: i32, %arg2: i32) -> (i32, i32) {
    %c0_i32 = arith.constant 0 : i32
    return %arg2, %arg1 : i32, i32
  }
  func.func @transform_2(%arg0: i32, %arg1: i32, %arg2: i32) -> (i32, i32) {
    %c0_i32 = arith.constant 0 : i32
    return %arg0, %arg1 : i32, i32
  }
  func.func @transform_3(%arg0: i32, %arg1: i32, %arg2: i32) -> (i32, i32) {
    %c0_i32 = arith.constant 0 : i32
    return %arg0, %arg1 : i32, i32
  }
  func.func @transform_4(%arg0: i32, %arg1: i32, %arg2: i32) -> (i32, i32) {
    %c0_i32 = arith.constant 0 : i32
    return %arg0, %arg1 : i32, i32
  }
}

module attributes {stable_mosaic.version = 11 : i64} {
  func.func @_gemm_stats_kernel(%arg0: i32, %arg1: i32, %arg2: i32, %arg3: memref<512x512xbf16, #tpu.memory_space<vmem>>, %arg4: memref<512x128xbf16, #tpu.memory_space<vmem>>, %arg5: memref<512x128xf32, #tpu.memory_space<vmem>>, %arg6: memref<8x128xf32, #tpu.memory_space<vmem>>, %arg7: memref<8x128xf32, #tpu.memory_space<vmem>>) attributes {dimension_semantics = [#tpu.dimension_semantics<parallel>, #tpu.dimension_semantics<parallel>, #tpu.dimension_semantics<arbitrary>], iteration_bounds = array<i64: 2, 1, 1>, scalar_prefetch = 0 : i64, scratch_operands = 0 : i64, tpu.core_type = #tpu.core_type<tc>, window_params = [{transform_indices = @transform_0, window_bounds = array<i64: 512, 512>}, {transform_indices = @transform_1, window_bounds = array<i64: 512, 128>}, {transform_indices = @transform_2, window_bounds = array<i64: 512, 128>}, {transform_indices = @transform_3, window_bounds = array<i64: 8, 128>}, {transform_indices = @transform_4, window_bounds = array<i64: 8, 128>}]} {
    %c0_i32 = arith.constant 0 : i32
    %0 = arith.cmpi eq, %arg2, %c0_i32 : i32
    %1 = arith.extui %0 : i1 to i32
    %c0_i32_0 = arith.constant 0 : i32
    %2 = arith.cmpi ne, %1, %c0_i32_0 : i32
    scf.if %2 {
      %cst_10 = arith.constant 0.000000e+00 : f32
      %12 = vector.broadcast %cst_10 : f32 to vector<512x128xf32>
      %c0_11 = arith.constant 0 : index
      %c0_12 = arith.constant 0 : index
      %13 = vector.load %arg5[%c0_11, %c0_12] : memref<512x128xf32, #tpu.memory_space<vmem>>, vector<512x128xf32>
      tpu.vector_store %arg5[%c0_11, %c0_12], %12 {strides = array<i32>} : memref<512x128xf32, #tpu.memory_space<vmem>>, vector<512x128xf32>,
    } else {
    }
    %c0 = arith.constant 0 : index
    %c0_1 = arith.constant 0 : index
    %3 = vector.load %arg5[%c0, %c0_1] : memref<512x128xf32, #tpu.memory_space<vmem>>, vector<512x128xf32>
    %c0_2 = arith.constant 0 : index
    %c0_3 = arith.constant 0 : index
    %4 = vector.load %arg3[%c0_2, %c0_3] : memref<512x512xbf16, #tpu.memory_space<vmem>>, vector<512x512xbf16>
    %c0_4 = arith.constant 0 : index
    %c0_5 = arith.constant 0 : index
    %5 = vector.load %arg4[%c0_4, %c0_5] : memref<512x128xbf16, #tpu.memory_space<vmem>>, vector<512x128xbf16>
    %cst = arith.constant dense<0.000000e+00> : vector<512x128xf32>
    %6 = tpu.matmul %4, %5, %cst {dimension_numbers = #tpu.dot_dimension_numbers<[1], [0], [0], [1], [0, 0, 1, 1], [], []>} : vector<512x512xbf16>, vector<512x128xbf16>, vector<512x128xf32> -> vector<512x128xf32>
    %7 = arith.addf %3, %6 : vector<512x128xf32>
    %c0_6 = arith.constant 0 : index
    %c0_7 = arith.constant 0 : index
    %8 = vector.load %arg5[%c0_6, %c0_7] : memref<512x128xf32, #tpu.memory_space<vmem>>, vector<512x128xf32>
    tpu.vector_store %arg5[%c0_6, %c0_7], %7 {strides = array<i32>} : memref<512x128xf32, #tpu.memory_space<vmem>>, vector<512x128xf32>,
    %c0_i32_8 = arith.constant 0 : i32
    %9 = arith.cmpi eq, %arg2, %c0_i32_8 : i32
    %10 = arith.extui %9 : i1 to i32
    %c0_i32_9 = arith.constant 0 : i32
    %11 = arith.cmpi ne, %10, %c0_i32_9 : i32
    scf.if %11 {
      %c0_10 = arith.constant 0 : index
      %c0_11 = arith.constant 0 : index
      %12 = vector.load %arg5[%c0_10, %c0_11] : memref<512x128xf32, #tpu.memory_space<vmem>>, vector<512x128xf32>
      %cst_12 = arith.constant dense<0.000000e+00> : vector<128xf32>
      %13 = vector.multi_reduction <add>, %12, %cst_12 [0] : vector<512x128xf32> to vector<128xf32>
      %14 = vector.shape_cast %13 : vector<128xf32> to vector<1x128xf32>
      %15 = arith.mulf %12, %12 : vector<512x128xf32>
      %cst_13 = arith.constant dense<0.000000e+00> : vector<128xf32>
      %16 = vector.multi_reduction <add>, %15, %cst_13 [0] : vector<512x128xf32> to vector<128xf32>
      %17 = vector.shape_cast %16 : vector<128xf32> to vector<1x128xf32>
      %cst_14 = arith.constant 0.000000e+00 : f32
      %18 = vector.broadcast %cst_14 : f32 to vector<8x128xf32>
      %19 = vector.broadcast %14 : vector<1x128xf32> to vector<8x128xf32>
      %20 = arith.addf %19, %18 : vector<8x128xf32>
      %c0_15 = arith.constant 0 : index
      %c0_16 = arith.constant 0 : index
      %21 = vector.load %arg6[%c0_15, %c0_16] : memref<8x128xf32, #tpu.memory_space<vmem>>, vector<8x128xf32>
      tpu.vector_store %arg6[%c0_15, %c0_16], %20 {strides = array<i32>} : memref<8x128xf32, #tpu.memory_space<vmem>>, vector<8x128xf32>,
      %cst_17 = arith.constant 0.000000e+00 : f32
      %22 = vector.broadcast %cst_17 : f32 to vector<8x128xf32>
      %23 = vector.broadcast %17 : vector<1x128xf32> to vector<8x128xf32>
      %24 = arith.addf %23, %22 : vector<8x128xf32>
      %c0_18 = arith.constant 0 : index
      %c0_19 = arith.constant 0 : index
      %25 = vector.load %arg7[%c0_18, %c0_19] : memref<8x128xf32, #tpu.memory_space<vmem>>, vector<8x128xf32>
      tpu.vector_store %arg7[%c0_18, %c0_19], %24 {strides = array<i32>} : memref<8x128xf32, #tpu.memory_space<vmem>>, vector<8x128xf32>,
    } else {
    }
    return
  }
  func.func @transform_0(%arg0: i32, %arg1: i32, %arg2: i32) -> (i32, i32) {
    %c0_i32 = arith.constant 0 : i32
    return %arg0, %arg2 : i32, i32
  }
  func.func @transform_1(%arg0: i32, %arg1: i32, %arg2: i32) -> (i32, i32) {
    %c0_i32 = arith.constant 0 : i32
    return %arg2, %arg1 : i32, i32
  }
  func.func @transform_2(%arg0: i32, %arg1: i32, %arg2: i32) -> (i32, i32) {
    %c0_i32 = arith.constant 0 : i32
    return %arg0, %arg1 : i32, i32
  }
  func.func @transform_3(%arg0: i32, %arg1: i32, %arg2: i32) -> (i32, i32) {
    %c0_i32 = arith.constant 0 : i32
    return %arg0, %arg1 : i32, i32
  }
  func.func @transform_4(%arg0: i32, %arg1: i32, %arg2: i32) -> (i32, i32) {
    %c0_i32 = arith.constant 0 : i32
    return %arg0, %arg1 : i32, i32
  }
}

</mosaic_0001>

<bundles_post_ra>
// kernel: dense_up_block_forward.21
= control target key start
LH: loop header
LB: loop body
LE: loop exit
PB: predicated region body
PF: predicated region fallthrough
CT: control target
= control target key end

     0   :  { %s880_s12 = smov 0   ;;  %s882_s13 = smov 0   ;;  %s1186_s0 = inlined_call_operand.vmem [shape: f32[1024,128], index: 0, kind: input, shape index: {}]   ;;  %s1187_s1 = inlined_call_operand.vmem [shape: f32[1,128], index: 1, kind: input, shape index: {}]   ;;  %s1188_s2 = inlined_call_operand.vmem [shape: f32[1,128], index: 2, kind: input, shape index: {}]   ;;  %s1189_s3 = inlined_call_operand.vmem [shape: f32[1024,128], index: 3, kind: output, shape index: {}]  }
   0x1   :  { %s884_s14 = smov 0  }
   0x2 LB: > { %s25_s15 = sadd.s32 1, %s854_s13  ;;  %p803_p0 = scmp.ge.s32.totalorder %s858_s14, 1  ;;  %s858_s14 = sphi %s884_s14, %s13_s14   ;;  %s854_s13 = sphi %s882_s13, %s1191_s13   ;;  %s850_s12 = sphi %s880_s12, %s1190_s12  }
   0x3   : > { %p27_p1 = scmp.ge.s32.totalorder %s25_s15, 2  ;;  %p173_p2 = scmp.lt.s32.totalorder %s858_s14, 3 }
   0x5   : > { %s1193_s15 = smov (%p27_p1, %s25_s15), 0  ;;  %p174_p3 = pnand %p803_p0, %p173_p2 }
   0x6   : > { %s804_s16 = sshll.u32 (!%p174_p3), %s850_s12, 6 }
   0x7   : > { %177 = sbr.rel (%p174_p3) target bundleno = 101 (0x65), region = 32  ;;  %p210_p4 = scmp.lt.s32.totalorder (!%p174_p3), %s804_s16, 127 }
   0xc   : > { %s1195_s16 = smov (!%p210_p4, %s804_s16), 127  ;;  %v904_v0 = vld [vmem:[%s1187_s1] ss:$0 sm:$0xff] }
   0xd   : > { %s805_s17 = sshll.u32 %s1195_s16, 3  ;;  %v914_v1 = vld [vmem:[%s1188_s2] ss:$0 sm:$0xff] }
   0xe   : > { %s909_s22 = scalar_lea.vmem %s1186_s0, %s805_s17  ;;  %s942_s27 = scalar_lea.vmem %s1189_s3, %s805_s17 }
   0xf   : > { %v233_v2 = vld [vmem:[%s909_s22] sm:$0xff]  ;;  %v234_v3 = vld [vmem:[%s909_s22 + $0x8] sm:$0xff]  ;;  %v235_v4 = vld [vmem:[%s909_s22 + $0x10] sm:$0xff] }
  0x10   : > { %v304_v5 = vmul.f32 %v904_v0, %v233_v2  ;;  %v305_v6 = vmul.f32 %v904_v0, %v234_v3  ;;  %v306_v7 = vmul.f32 %v904_v0, %v235_v4  ;;  %v236_v8 = vld [vmem:[%s909_s22 + $0x18] sm:$0xff]  ;;  %v237_v9 = vld [vmem:[%s909_s22 + $0x20] sm:$0xff]  ;;  %v238_v10 = vld [vmem:[%s909_s22 + $0x28] sm:$0xff] }
  0x11   : > { %v307_v11 = vmul.f32 %v904_v0, %v236_v8  ;;  %v308_v12 = vmul.f32 %v904_v0, %v237_v9  ;;  %v309_v13 = vmul.f32 %v904_v0, %v238_v10  ;;  %v239_v14 = vld [vmem:[%s909_s22 + $0x30] sm:$0xff]  ;;  %v240_v15 = vld [vmem:[%s909_s22 + $0x38] sm:$0xff]  ;;  %v241_v24 = vld [vmem:[%s909_s22 + $0x40] sm:$0xff] }
  0x12   : > { %v375_v16 = vadd.f32 %v914_v1, %v304_v5  ;;  %v376_v17 = vadd.f32 %v914_v1, %v305_v6  ;;  %v377_v18 = vadd.f32 %v914_v1, %v306_v7  ;;  %v310_v19 = vmul.f32 %v904_v0, %v239_v14  ;;  %v242_v32 = vld [vmem:[%s909_s22 + $0x48] sm:$0xff]  ;;  %v243_v33 = vld [vmem:[%s909_s22 + $0x50] sm:$0xff]  ;;  %v244_v34 = vld [vmem:[%s909_s22 + $0x58] sm:$0xff] }
  0x13   : > { %v378_v20 = vadd.f32 %v914_v1, %v307_v11  ;;  %v379_v21 = vadd.f32 %v914_v1, %v308_v12  ;;  %v380_v22 = vadd.f32 %v914_v1, %v309_v13  ;;  %v311_v23 = vmul.f32 %v904_v0, %v240_v15  ;;  %v245_v46 = vld [vmem:[%s909_s22 + $0x60] sm:$0xff]  ;;  %v246_v47 = vld [vmem:[%s909_s22 + $0x68] sm:$0xff]  ;;  %v247_v58 = vld [vmem:[%s909_s22 + $0x70] sm:$0xff] }
  0x14   : > { %vm439_vm0 = vcmp.ge.f32.partialorder %v375_v16, 0.0  ;;  %v503_v25 = vmul.f32 0.01, %v375_v16  ;;  %vm440_vm1 = vcmp.ge.f32.partialorder %v376_v17, 0.0  ;;  %v504_v26 = vmul.f32 0.01, %v376_v17 }
  0x15   : > { %vm441_vm2 = vcmp.ge.f32.partialorder %v377_v18, 0.0  ;;  %v505_v27 = vmul.f32 0.01, %v377_v18  ;;  %vm442_vm3 = vcmp.ge.f32.partialorder %v378_v20, 0.0  ;;  %v506_v28 = vmul.f32 0.01, %v378_v20 }
  0x16   : > { %v567_v29 = vsel %vm439_vm0, %v375_v16, %v503_v25  ;;  %v568_v30 = vsel %vm440_vm1, %v376_v17, %v504_v26  ;;  %vm443_vm4 = vcmp.ge.f32.partialorder %v379_v21, 0.0  ;;  %v507_v31 = vmul.f32 0.01, %v379_v21  ;;  %v248_v59 = vld [vmem:[%s909_s22 + $0x78] sm:$0xff]  ;;  %v249_v6 = vld [vmem:[%s909_s22 + $0x80] sm:$0xff]  ;;  %v250_v7 = vld [vmem:[%s909_s22 + $0x88] sm:$0xff] }
  0x17   : > { %631 = vst [vmem:[%s942_s27] sm:$0xff] %v567_v29  ;;  %632 = vst [vmem:[%s942_s27 + $0x8] sm:$0xff] %v568_v30  ;;  %v569_v35 = vsel %vm441_vm2, %v377_v18, %v505_v27  ;;  %v570_v36 = vsel %vm442_vm3, %v378_v20, %v506_v28  ;;  %vm444_vm5 = vcmp.ge.f32.partialorder %v380_v22, 0.0  ;;  %v508_v37 = vmul.f32 0.01, %v380_v22  ;;  %v251_v12 = vld [vmem:[%s909_s22 + $0x90] sm:$0xff]  ;;  %v252_v13 = vld [vmem:[%s909_s22 + $0x98] sm:$0xff] }
  0x18   : > { %633 = vst [vmem:[%s942_s27 + $0x10] sm:$0xff] %v569_v35  ;;  %634 = vst [vmem:[%s942_s27 + $0x18] sm:$0xff] %v570_v36  ;;  %v571_v38 = vsel %vm443_vm4, %v379_v21, %v507_v31  ;;  %v381_v39 = vadd.f32 %v914_v1, %v310_v19  ;;  %v382_v40 = vadd.f32 %v914_v1, %v311_v23  ;;  %v254_v25 = vld [vmem:[%s909_s22 + $0xa8] sm:$0xff]  ;;  %v255_v36 = vld [vmem:[%s909_s22 + $0xb0] sm:$0xff] }
  0x19   : > { %v312_v41 = vmul.f32 %v904_v0, %v241_v24  ;;  %635 = vst [vmem:[%s942_s27 + $0x20] sm:$0xff] %v571_v38  ;;  %v572_v42 = vsel %vm444_vm5, %v380_v22, %v508_v37  ;;  %v313_v43 = vmul.f32 %v904_v0, %v242_v32  ;;  %v314_v44 = vmul.f32 %v904_v0, %v243_v33  ;;  %v253_v24 = vld [vmem:[%s909_s22 + $0xa0] sm:$0xff]  ;;  %v256_v37 = vld [vmem:[%s909_s22 + $0xb8] sm:$0xff] }
  0x1a   : > { %v315_v45 = vmul.f32 %v904_v0, %v244_v34  ;;  %636 = vst [vmem:[%s942_s27 + $0x28] sm:$0xff] %v572_v42  ;;  %vm445_vm6 = vcmp.ge.f32.partialorder %v381_v39, 0.0  ;;  %v509_v48 = vmul.f32 0.01, %v381_v39  ;;  %vm446_vm7 = vcmp.ge.f32.partialorder %v382_v40, 0.0 }
  0x1b   : > { %v510_v49 = vmul.f32 0.01, %v382_v40  ;;  %v383_v50 = vadd.f32 %v914_v1, %v312_v41  ;;  %v384_v51 = vadd.f32 %v914_v1, %v313_v43  ;;  %v385_v52 = vadd.f32 %v914_v1, %v314_v44 }
  0x1c   : > { %v386_v53 = vadd.f32 %v914_v1, %v315_v45  ;;  %v573_v54 = vsel %vm445_vm6, %v381_v39, %v509_v48  ;;  %v316_v56 = vmul.f32 %v904_v0, %v245_v46  ;;  %v317_v57 = vmul.f32 %v904_v0, %v246_v47  ;;  %v257_v46 = vld [vmem:[%s909_s22 + $0xc0] sm:$0xff]  ;;  %v258_v47 = vld [vmem:[%s909_s22 + $0xc8] sm:$0xff] }
  0x1d   : > { %v574_v55 = vsel %vm446_vm7, %v382_v40, %v510_v49  ;;  %637 = vst [vmem:[%s942_s27 + $0x30] sm:$0xff] %v573_v54  ;;  %vm447_vm8 = vcmp.ge.f32.partialorder %v383_v50, 0.0  ;;  %v511_v60 = vmul.f32 0.01, %v383_v50  ;;  %vm448_vm9 = vcmp.ge.f32.partialorder %v384_v51, 0.0 }
  0x1e   : > { %638 = vst [vmem:[%s942_s27 + $0x38] sm:$0xff] %v574_v55  ;;  %v512_v61 = vmul.f32 0.01, %v384_v51  ;;  %vm449_vm10 = vcmp.ge.f32.partialorder %v385_v52, 0.0  ;;  %v513_v62 = vmul.f32 0.01, %v385_v52  ;;  %v387_v4 = vadd.f32 %v914_v1, %v316_v56 }
  0x1f   : > { %vm450_vm11 = vcmp.ge.f32.partialorder %v386_v53, 0.0  ;;  %v514_v63 = vmul.f32 0.01, %v386_v53  ;;  %v575_v2 = vsel %vm447_vm8, %v383_v50, %v511_v60  ;;  %v388_v5 = vadd.f32 %v914_v1, %v317_v57 }
  0x20   : > { %v576_v3 = vsel %vm448_vm9, %v384_v51, %v512_v61  ;;  %639 = vst [vmem:[%s942_s27 + $0x40] sm:$0xff] %v575_v2  ;;  %v577_v8 = vsel %vm449_vm10, %v385_v52, %v513_v62  ;;  %v318_v10 = vmul.f32 %v904_v0, %v247_v58  ;;  %v319_v11 = vmul.f32 %v904_v0, %v248_v59  ;;  %v259_v52 = vld [vmem:[%s909_s22 + $0xd0] sm:$0xff]  ;;  %v261_v2 = vld [vmem:[%s909_s22 + $0xe0] sm:$0xff] }
  0x21   : > { %640 = vst [vmem:[%s942_s27 + $0x48] sm:$0xff] %v576_v3  ;;  %v578_v9 = vsel %vm450_vm11, %v386_v53, %v514_v63  ;;  %641 = vst [vmem:[%s942_s27 + $0x50] sm:$0xff] %v577_v8  ;;  %vm451_vm12 = vcmp.ge.f32.partialorder %v387_v4, 0.0  ;;  %v515_v14 = vmul.f32 0.01, %v387_v4  ;;  %vm452_vm13 = vcmp.ge.f32.partialorder %v388_v5, 0.0 }
  0x22   : > { %642 = vst [vmem:[%s942_s27 + $0x58] sm:$0xff] %v578_v9  ;;  %v516_v15 = vmul.f32 0.01, %v388_v5  ;;  %v389_v16 = vadd.f32 %v914_v1, %v318_v10  ;;  %v390_v17 = vadd.f32 %v914_v1, %v319_v11  ;;  %v320_v18 = vmul.f32 %v904_v0, %v249_v6  ;;  %v260_v53 = vld [vmem:[%s909_s22 + $0xd8] sm:$0xff]  ;;  %v262_v3 = vld [vmem:[%s909_s22 + $0xe8] sm:$0xff] }
  0x23   : > { %v321_v19 = vmul.f32 %v904_v0, %v250_v7  ;;  %v579_v20 = vsel %vm451_vm12, %v387_v4, %v515_v14  ;;  %v322_v22 = vmul.f32 %v904_v0, %v251_v12  ;;  %v323_v23 = vmul.f32 %v904_v0, %v252_v13  ;;  %v263_v14 = vld [vmem:[%s909_s22 + $0xf0] sm:$0xff] }
  0x24   : > { %v580_v21 = vsel %vm452_vm13, %v388_v5, %v516_v15  ;;  %643 = vst [vmem:[%s942_s27 + $0x60] sm:$0xff] %v579_v20  ;;  %vm453_vm14 = vcmp.ge.f32.partialorder %v389_v16, 0.0  ;;  %v517_v26 = vmul.f32 0.01, %v389_v16  ;;  %vm454_vm15 = vcmp.ge.f32.partialorder %v390_v17, 0.0  ;;  %v264_v15 = vld [vmem:[%s909_s22 + $0xf8] sm:$0xff] }
  0x25   : > { %644 = vst [vmem:[%s942_s27 + $0x68] sm:$0xff] %v580_v21  ;;  %v518_v27 = vmul.f32 0.01, %v390_v17  ;;  %v391_v28 = vadd.f32 %v914_v1, %v320_v18  ;;  %v392_v29 = vadd.f32 %v914_v1, %v321_v19  ;;  %v393_v30 = vadd.f32 %v914_v1, %v322_v22 }
  0x26   : > { %v394_v31 = vadd.f32 %v914_v1, %v323_v23  ;;  %v581_v32 = vsel %vm453_vm14, %v389_v16, %v517_v26  ;;  %v324_v34 = vmul.f32 %v904_v0, %v253_v24  ;;  %v325_v35 = vmul.f32 %v904_v0, %v254_v25  ;;  %v265_v24 = vld [vmem:[%s909_s22 + $0x100] sm:$0xff]  ;;  %v266_v25 = vld [vmem:[%s909_s22 + $0x108] sm:$0xff] }
  0x27   : > { %v582_v33 = vsel %vm454_vm15, %v390_v17, %v518_v27  ;;  %645 = vst [vmem:[%s942_s27 + $0x70] sm:$0xff] %v581_v32  ;;  %vm455_vm0 = vcmp.ge.f32.partialorder %v391_v28, 0.0  ;;  %v519_v38 = vmul.f32 0.01, %v391_v28  ;;  %vm456_vm1 = vcmp.ge.f32.partialorder %v392_v29, 0.0 }
  0x28   : > { %646 = vst [vmem:[%s942_s27 + $0x78] sm:$0xff] %v582_v33  ;;  %v520_v39 = vmul.f32 0.01, %v392_v29  ;;  %vm457_vm2 = vcmp.ge.f32.partialorder %v393_v30, 0.0  ;;  %v521_v40 = vmul.f32 0.01, %v393_v30  ;;  %v395_v44 = vadd.f32 %v914_v1, %v324_v34 }
  0x29   : > { %vm458_vm3 = vcmp.ge.f32.partialorder %v394_v31, 0.0  ;;  %v522_v41 = vmul.f32 0.01, %v394_v31  ;;  %v583_v42 = vsel %vm455_vm0, %v391_v28, %v519_v38  ;;  %v396_v45 = vadd.f32 %v914_v1, %v325_v35 }
  0x2a   : > { %v584_v43 = vsel %vm456_vm1, %v392_v29, %v520_v39  ;;  %647 = vst [vmem:[%s942_s27 + $0x80] sm:$0xff] %v583_v42  ;;  %v585_v48 = vsel %vm457_vm2, %v393_v30, %v521_v40  ;;  %v326_v50 = vmul.f32 %v904_v0, %v255_v36  ;;  %v327_v51 = vmul.f32 %v904_v0, %v256_v37  ;;  %v267_v30 = vld [vmem:[%s909_s22 + $0x110] sm:$0xff]  ;;  %v269_v42 = vld [vmem:[%s909_s22 + $0x120] sm:$0xff] }
  0x2b   : > { %648 = vst [vmem:[%s942_s27 + $0x88] sm:$0xff] %v584_v43  ;;  %v586_v49 = vsel %vm458_vm3, %v394_v31, %v522_v41  ;;  %649 = vst [vmem:[%s942_s27 + $0x90] sm:$0xff] %v585_v48  ;;  %vm459_vm4 = vcmp.ge.f32.partialorder %v395_v44, 0.0  ;;  %v523_v54 = vmul.f32 0.01, %v395_v44  ;;  %vm460_vm5 = vcmp.ge.f32.partialorder %v396_v45, 0.0 }
  0x2c   : > { %650 = vst [vmem:[%s942_s27 + $0x98] sm:$0xff] %v586_v49  ;;  %v524_v55 = vmul.f32 0.01, %v396_v45  ;;  %v397_v56 = vadd.f32 %v914_v1, %v326_v50  ;;  %v398_v57 = vadd.f32 %v914_v1, %v327_v51  ;;  %v328_v58 = vmul.f32 %v904_v0, %v257_v46  ;;  %v268_v31 = vld [vmem:[%s909_s22 + $0x118] sm:$0xff]  ;;  %v270_v43 = vld [vmem:[%s909_s22 + $0x128] sm:$0xff] }
  0x2d   : > { %v329_v59 = vmul.f32 %v904_v0, %v258_v47  ;;  %v587_v60 = vsel %vm459_vm4, %v395_v44, %v523_v54  ;;  %v330_v62 = vmul.f32 %v904_v0, %v259_v52  ;;  %v331_v63 = vmul.f32 %v904_v0, %v260_v53  ;;  %v271_v54 = vld [vmem:[%s909_s22 + $0x130] sm:$0xff] }
  0x2e   : > { %v588_v61 = vsel %vm460_vm5, %v396_v45, %v524_v55  ;;  %651 = vst [vmem:[%s942_s27 + $0xa0] sm:$0xff] %v587_v60  ;;  %vm461_vm6 = vcmp.ge.f32.partialorder %v397_v56, 0.0  ;;  %v525_v4 = vmul.f32 0.01, %v397_v56  ;;  %vm462_vm7 = vcmp.ge.f32.partialorder %v398_v57, 0.0  ;;  %v272_v55 = vld [vmem:[%s909_s22 + $0x138] sm:$0xff] }
  0x2f   : > { %652 = vst [vmem:[%s942_s27 + $0xa8] sm:$0xff] %v588_v61  ;;  %v526_v5 = vmul.f32 0.01, %v398_v57  ;;  %v399_v6 = vadd.f32 %v914_v1, %v328_v58  ;;  %v400_v7 = vadd.f32 %v914_v1, %v329_v59  ;;  %v401_v8 = vadd.f32 %v914_v1, %v330_v62 }
  0x30   : > { %v402_v9 = vadd.f32 %v914_v1, %v331_v63  ;;  %v589_v10 = vsel %vm461_vm6, %v397_v56, %v525_v4  ;;  %v332_v12 = vmul.f32 %v904_v0, %v261_v2  ;;  %v333_v13 = vmul.f32 %v904_v0, %v262_v3  ;;  %v273_v2 = vld [vmem:[%s909_s22 + $0x140] sm:$0xff]  ;;  %v274_v3 = vld [vmem:[%s909_s22 + $0x148] sm:$0xff] }
  0x31   : > { %v590_v11 = vsel %vm462_vm7, %v398_v57, %v526_v5  ;;  %653 = vst [vmem:[%s942_s27 + $0xb0] sm:$0xff] %v589_v10  ;;  %vm463_vm8 = vcmp.ge.f32.partialorder %v399_v6, 0.0  ;;  %v527_v16 = vmul.f32 0.01, %v399_v6  ;;  %vm464_vm9 = vcmp.ge.f32.partialorder %v400_v7, 0.0 }
  0x32   : > { %654 = vst [vmem:[%s942_s27 + $0xb8] sm:$0xff] %v590_v11  ;;  %v528_v17 = vmul.f32 0.01, %v400_v7  ;;  %vm465_vm10 = vcmp.ge.f32.partialorder %v401_v8, 0.0  ;;  %v529_v18 = vmul.f32 0.01, %v401_v8  ;;  %v403_v22 = vadd.f32 %v914_v1, %v332_v12 }
  0x33   : > { %vm466_vm11 = vcmp.ge.f32.partialorder %v402_v9, 0.0  ;;  %v530_v19 = vmul.f32 0.01, %v402_v9  ;;  %v591_v20 = vsel %vm463_vm8, %v399_v6, %v527_v16  ;;  %v404_v23 = vadd.f32 %v914_v1, %v333_v13 }
  0x34   : > { %v592_v21 = vsel %vm464_vm9, %v400_v7, %v528_v17  ;;  %655 = vst [vmem:[%s942_s27 + $0xc0] sm:$0xff] %v591_v20  ;;  %v593_v26 = vsel %vm465_vm10, %v401_v8, %v529_v18  ;;  %v334_v28 = vmul.f32 %v904_v0, %v263_v14  ;;  %v335_v29 = vmul.f32 %v904_v0, %v264_v15  ;;  %v275_v8 = vld [vmem:[%s909_s22 + $0x150] sm:$0xff]  ;;  %v277_v20 = vld [vmem:[%s909_s22 + $0x160] sm:$0xff] }
  0x35   : > { %656 = vst [vmem:[%s942_s27 + $0xc8] sm:$0xff] %v592_v21  ;;  %v594_v27 = vsel %vm466_vm11, %v402_v9, %v530_v19  ;;  %657 = vst [vmem:[%s942_s27 + $0xd0] sm:$0xff] %v593_v26  ;;  %vm467_vm12 = vcmp.ge.f32.partialorder %v403_v22, 0.0  ;;  %v531_v32 = vmul.f32 0.01, %v403_v22  ;;  %vm468_vm13 = vcmp.ge.f32.partialorder %v404_v23, 0.0 }
  0x36   : > { %658 = vst [vmem:[%s942_s27 + $0xd8] sm:$0xff] %v594_v27  ;;  %v532_v33 = vmul.f32 0.01, %v404_v23  ;;  %v405_v34 = vadd.f32 %v914_v1, %v334_v28  ;;  %v406_v35 = vadd.f32 %v914_v1, %v335_v29  ;;  %v336_v36 = vmul.f32 %v904_v0, %v265_v24  ;;  %v276_v9 = vld [vmem:[%s909_s22 + $0x158] sm:$0xff]  ;;  %v278_v21 = vld [vmem:[%s909_s22 + $0x168] sm:$0xff] }
  0x37   : > { %v337_v37 = vmul.f32 %v904_v0, %v266_v25  ;;  %v595_v38 = vsel %vm467_vm12, %v403_v22, %v531_v32  ;;  %v338_v40 = vmul.f32 %v904_v0, %v267_v30  ;;  %v339_v41 = vmul.f32 %v904_v0, %v268_v31  ;;  %v279_v32 = vld [vmem:[%s909_s22 + $0x170] sm:$0xff] }
  0x38   : > { %v596_v39 = vsel %vm468_vm13, %v404_v23, %v532_v33  ;;  %659 = vst [vmem:[%s942_s27 + $0xe0] sm:$0xff] %v595_v38  ;;  %vm469_vm14 = vcmp.ge.f32.partialorder %v405_v34, 0.0  ;;  %v533_v44 = vmul.f32 0.01, %v405_v34  ;;  %vm470_vm15 = vcmp.ge.f32.partialorder %v406_v35, 0.0  ;;  %v280_v33 = vld [vmem:[%s909_s22 + $0x178] sm:$0xff] }
  0x39   : > { %660 = vst [vmem:[%s942_s27 + $0xe8] sm:$0xff] %v596_v39  ;;  %v534_v45 = vmul.f32 0.01, %v406_v35  ;;  %v407_v46 = vadd.f32 %v914_v1, %v336_v36  ;;  %v408_v47 = vadd.f32 %v914_v1, %v337_v37  ;;  %v409_v48 = vadd.f32 %v914_v1, %v338_v40 }
  0x3a   : > { %v410_v49 = vadd.f32 %v914_v1, %v339_v41  ;;  %v597_v50 = vsel %vm469_vm14, %v405_v34, %v533_v44  ;;  %v340_v52 = vmul.f32 %v904_v0, %v269_v42  ;;  %v341_v53 = vmul.f32 %v904_v0, %v270_v43  ;;  %v281_v42 = vld [vmem:[%s909_s22 + $0x180] sm:$0xff]  ;;  %v282_v43 = vld [vmem:[%s909_s22 + $0x188] sm:$0xff] }
  0x3b   : > { %v598_v51 = vsel %vm470_vm15, %v406_v35, %v534_v45  ;;  %661 = vst [vmem:[%s942_s27 + $0xf0] sm:$0xff] %v597_v50  ;;  %vm471_vm0 = vcmp.ge.f32.partialorder %v407_v46, 0.0  ;;  %v535_v56 = vmul.f32 0.01, %v407_v46  ;;  %vm472_vm1 = vcmp.ge.f32.partialorder %v408_v47, 0.0 }
  0x3c   : > { %662 = vst [vmem:[%s942_s27 + $0xf8] sm:$0xff] %v598_v51  ;;  %v536_v57 = vmul.f32 0.01, %v408_v47  ;;  %vm473_vm2 = vcmp.ge.f32.partialorder %v409_v48, 0.0  ;;  %v537_v58 = vmul.f32 0.01, %v409_v48  ;;  %v411_v62 = vadd.f32 %v914_v1, %v340_v52 }
  0x3d   : > { %vm474_vm3 = vcmp.ge.f32.partialorder %v410_v49, 0.0  ;;  %v538_v59 = vmul.f32 0.01, %v410_v49  ;;  %v599_v60 = vsel %vm471_vm0, %v407_v46, %v535_v56  ;;  %v412_v63 = vadd.f32 %v914_v1, %v341_v53 }
  0x3e   : > { %v600_v61 = vsel %vm472_vm1, %v408_v47, %v536_v57  ;;  %663 = vst [vmem:[%s942_s27 + $0x100] sm:$0xff] %v599_v60  ;;  %v601_v4 = vsel %vm473_vm2, %v409_v48, %v537_v58  ;;  %v342_v6 = vmul.f32 %v904_v0, %v271_v54  ;;  %v343_v7 = vmul.f32 %v904_v0, %v272_v55  ;;  %v283_v48 = vld [vmem:[%s909_s22 + $0x190] sm:$0xff]  ;;  %v285_v60 = vld [vmem:[%s909_s22 + $0x1a0] sm:$0xff] }
  0x3f   : > { %664 = vst [vmem:[%s942_s27 + $0x108] sm:$0xff] %v600_v61  ;;  %v602_v5 = vsel %vm474_vm3, %v410_v49, %v538_v59  ;;  %665 = vst [vmem:[%s942_s27 + $0x110] sm:$0xff] %v601_v4  ;;  %vm475_vm4 = vcmp.ge.f32.partialorder %v411_v62, 0.0  ;;  %v539_v10 = vmul.f32 0.01, %v411_v62  ;;  %vm476_vm5 = vcmp.ge.f32.partialorder %v412_v63, 0.0 }
  0x40   : > { %666 = vst [vmem:[%s942_s27 + $0x118] sm:$0xff] %v602_v5  ;;  %v540_v11 = vmul.f32 0.01, %v412_v63  ;;  %v413_v12 = vadd.f32 %v914_v1, %v342_v6  ;;  %v414_v13 = vadd.f32 %v914_v1, %v343_v7  ;;  %v344_v14 = vmul.f32 %v904_v0, %v273_v2  ;;  %v284_v49 = vld [vmem:[%s909_s22 + $0x198] sm:$0xff]  ;;  %v286_v61 = vld [vmem:[%s909_s22 + $0x1a8] sm:$0xff] }
  0x41   : > { %v345_v15 = vmul.f32 %v904_v0, %v274_v3  ;;  %v603_v16 = vsel %vm475_vm4, %v411_v62, %v539_v10  ;;  %v346_v18 = vmul.f32 %v904_v0, %v275_v8  ;;  %v347_v19 = vmul.f32 %v904_v0, %v276_v9  ;;  %v287_v10 = vld [vmem:[%s909_s22 + $0x1b0] sm:$0xff] }
  0x42   : > { %v604_v17 = vsel %vm476_vm5, %v412_v63, %v540_v11  ;;  %667 = vst [vmem:[%s942_s27 + $0x120] sm:$0xff] %v603_v16  ;;  %vm477_vm6 = vcmp.ge.f32.partialorder %v413_v12, 0.0  ;;  %v541_v22 = vmul.f32 0.01, %v413_v12  ;;  %vm478_vm7 = vcmp.ge.f32.partialorder %v414_v13, 0.0  ;;  %v288_v11 = vld [vmem:[%s909_s22 + $0x1b8] sm:$0xff] }
  0x43   : > { %668 = vst [vmem:[%s942_s27 + $0x128] sm:$0xff] %v604_v17  ;;  %v542_v23 = vmul.f32 0.01, %v414_v13  ;;  %v415_v24 = vadd.f32 %v914_v1, %v344_v14  ;;  %v416_v25 = vadd.f32 %v914_v1, %v345_v15  ;;  %v417_v26 = vadd.f32 %v914_v1, %v346_v18 }
  0x44   : > { %v418_v27 = vadd.f32 %v914_v1, %v347_v19  ;;  %v605_v28 = vsel %vm477_vm6, %v413_v12, %v541_v22  ;;  %v348_v30 = vmul.f32 %v904_v0, %v277_v20  ;;  %v349_v31 = vmul.f32 %v904_v0, %v278_v21  ;;  %v289_v20 = vld [vmem:[%s909_s22 + $0x1c0] sm:$0xff]  ;;  %v290_v21 = vld [vmem:[%s909_s22 + $0x1c8] sm:$0xff] }
  0x45   : > { %v606_v29 = vsel %vm478_vm7, %v414_v13, %v542_v23  ;;  %669 = vst [vmem:[%s942_s27 + $0x130] sm:$0xff] %v605_v28  ;;  %vm479_vm8 = vcmp.ge.f32.partialorder %v415_v24, 0.0  ;;  %v543_v34 = vmul.f32 0.01, %v415_v24  ;;  %vm480_vm9 = vcmp.ge.f32.partialorder %v416_v25, 0.0 }
  0x46   : > { %670 = vst [vmem:[%s942_s27 + $0x138] sm:$0xff] %v606_v29  ;;  %v544_v35 = vmul.f32 0.01, %v416_v25  ;;  %vm481_vm10 = vcmp.ge.f32.partialorder %v417_v26, 0.0  ;;  %v545_v36 = vmul.f32 0.01, %v417_v26  ;;  %v419_v40 = vadd.f32 %v914_v1, %v348_v30 }
  0x47   : > { %vm482_vm11 = vcmp.ge.f32.partialorder %v418_v27, 0.0  ;;  %v546_v37 = vmul.f32 0.01, %v418_v27  ;;  %v607_v38 = vsel %vm479_vm8, %v415_v24, %v543_v34  ;;  %v420_v41 = vadd.f32 %v914_v1, %v349_v31 }
  0x48   : > { %v608_v39 = vsel %vm480_vm9, %v416_v25, %v544_v35  ;;  %671 = vst [vmem:[%s942_s27 + $0x140] sm:$0xff] %v607_v38  ;;  %v609_v44 = vsel %vm481_vm10, %v417_v26, %v545_v36  ;;  %v350_v46 = vmul.f32 %v904_v0, %v279_v32  ;;  %v351_v47 = vmul.f32 %v904_v0, %v280_v33  ;;  %v291_v26 = vld [vmem:[%s909_s22 + $0x1d0] sm:$0xff]  ;;  %v293_v38 = vld [vmem:[%s909_s22 + $0x1e0] sm:$0xff] }
  0x49   : > { %672 = vst [vmem:[%s942_s27 + $0x148] sm:$0xff] %v608_v39  ;;  %v610_v45 = vsel %vm482_vm11, %v418_v27, %v546_v37  ;;  %673 = vst [vmem:[%s942_s27 + $0x150] sm:$0xff] %v609_v44  ;;  %vm483_vm12 = vcmp.ge.f32.partialorder %v419_v40, 0.0  ;;  %v547_v50 = vmul.f32 0.01, %v419_v40  ;;  %vm484_vm13 = vcmp.ge.f32.partialorder %v420_v41, 0.0 }
  0x4a   : > { %674 = vst [vmem:[%s942_s27 + $0x158] sm:$0xff] %v610_v45  ;;  %v548_v51 = vmul.f32 0.01, %v420_v41  ;;  %v421_v52 = vadd.f32 %v914_v1, %v350_v46  ;;  %v422_v53 = vadd.f32 %v914_v1, %v351_v47  ;;  %v352_v54 = vmul.f32 %v904_v0, %v281_v42  ;;  %v292_v27 = vld [vmem:[%s909_s22 + $0x1d8] sm:$0xff]  ;;  %v294_v39 = vld [vmem:[%s909_s22 + $0x1e8] sm:$0xff] }
  0x4b   : > { %v353_v55 = vmul.f32 %v904_v0, %v282_v43  ;;  %v611_v56 = vsel %vm483_vm12, %v419_v40, %v547_v50  ;;  %v354_v58 = vmul.f32 %v904_v0, %v283_v48  ;;  %v355_v59 = vmul.f32 %v904_v0, %v284_v49  ;;  %v295_v50 = vld [vmem:[%s909_s22 + $0x1f0] sm:$0xff] }
  0x4c   : > { %v612_v57 = vsel %vm484_vm13, %v420_v41, %v548_v51  ;;  %675 = vst [vmem:[%s942_s27 + $0x160] sm:$0xff] %v611_v56  ;;  %vm485_vm14 = vcmp.ge.f32.partialorder %v421_v52, 0.0  ;;  %v549_v62 = vmul.f32 0.01, %v421_v52  ;;  %vm486_vm15 = vcmp.ge.f32.partialorder %v422_v53, 0.0  ;;  %v296_v51 = vld [vmem:[%s909_s22 + $0x1f8] sm:$0xff] }
  0x4d   : > { %676 = vst [vmem:[%s942_s27 + $0x168] sm:$0xff] %v612_v57  ;;  %v550_v63 = vmul.f32 0.01, %v422_v53  ;;  %v423_v2 = vadd.f32 %v914_v1, %v352_v54  ;;  %v424_v3 = vadd.f32 %v914_v1, %v353_v55  ;;  %v425_v4 = vadd.f32 %v914_v1, %v354_v58 }
  0x4e   : > { %v426_v5 = vadd.f32 %v914_v1, %v355_v59  ;;  %v613_v6 = vsel %vm485_vm14, %v421_v52, %v549_v62  ;;  %v356_v8 = vmul.f32 %v904_v0, %v285_v60  ;;  %v357_v9 = vmul.f32 %v904_v0, %v286_v61 }
  0x4f   : > { %v614_v7 = vsel %vm486_vm15, %v422_v53, %v550_v63  ;;  %677 = vst [vmem:[%s942_s27 + $0x170] sm:$0xff] %v613_v6  ;;  %vm487_vm0 = vcmp.ge.f32.partialorder %v423_v2, 0.0  ;;  %v551_v12 = vmul.f32 0.01, %v423_v2  ;;  %vm488_vm1 = vcmp.ge.f32.partialorder %v424_v3, 0.0 }
  0x50   : > { %678 = vst [vmem:[%s942_s27 + $0x178] sm:$0xff] %v614_v7  ;;  %v552_v13 = vmul.f32 0.01, %v424_v3  ;;  %vm489_vm2 = vcmp.ge.f32.partialorder %v425_v4, 0.0  ;;  %v553_v14 = vmul.f32 0.01, %v425_v4  ;;  %v427_v18 = vadd.f32 %v914_v1, %v356_v8 }
  0x51   : > { %vm490_vm3 = vcmp.ge.f32.partialorder %v426_v5, 0.0  ;;  %v554_v15 = vmul.f32 0.01, %v426_v5  ;;  %v615_v16 = vsel %vm487_vm0, %v423_v2, %v551_v12  ;;  %v428_v19 = vadd.f32 %v914_v1, %v357_v9 }
  0x52   : > { %v616_v17 = vsel %vm488_vm1, %v424_v3, %v552_v13  ;;  %679 = vst [vmem:[%s942_s27 + $0x180] sm:$0xff] %v615_v16  ;;  %v617_v22 = vsel %vm489_vm2, %v425_v4, %v553_v14  ;;  %v358_v24 = vmul.f32 %v904_v0, %v287_v10  ;;  %v359_v25 = vmul.f32 %v904_v0, %v288_v11 }
  0x53   : > { %680 = vst [vmem:[%s942_s27 + $0x188] sm:$0xff] %v616_v17  ;;  %v618_v23 = vsel %vm490_vm3, %v426_v5, %v554_v15  ;;  %681 = vst [vmem:[%s942_s27 + $0x190] sm:$0xff] %v617_v22  ;;  %vm491_vm4 = vcmp.ge.f32.partialorder %v427_v18, 0.0  ;;  %v555_v28 = vmul.f32 0.01, %v427_v18  ;;  %vm492_vm5 = vcmp.ge.f32.partialorder %v428_v19, 0.0 }
  0x54   : > { %682 = vst [vmem:[%s942_s27 + $0x198] sm:$0xff] %v618_v23  ;;  %v556_v29 = vmul.f32 0.01, %v428_v19  ;;  %v429_v30 = vadd.f32 %v914_v1, %v358_v24  ;;  %v430_v31 = vadd.f32 %v914_v1, %v359_v25  ;;  %v360_v32 = vmul.f32 %v904_v0, %v289_v20 }
  0x55   : > { %v361_v33 = vmul.f32 %v904_v0, %v290_v21  ;;  %v619_v34 = vsel %vm491_vm4, %v427_v18, %v555_v28  ;;  %v362_v36 = vmul.f32 %v904_v0, %v291_v26  ;;  %v363_v37 = vmul.f32 %v904_v0, %v292_v27 }
  0x56   : > { %v620_v35 = vsel %vm492_vm5, %v428_v19, %v556_v29  ;;  %683 = vst [vmem:[%s942_s27 + $0x1a0] sm:$0xff] %v619_v34  ;;  %vm493_vm6 = vcmp.ge.f32.partialorder %v429_v30, 0.0  ;;  %v557_v40 = vmul.f32 0.01, %v429_v30  ;;  %vm494_vm7 = vcmp.ge.f32.partialorder %v430_v31, 0.0 }
  0x57   : > { %684 = vst [vmem:[%s942_s27 + $0x1a8] sm:$0xff] %v620_v35  ;;  %v558_v41 = vmul.f32 0.01, %v430_v31  ;;  %v431_v42 = vadd.f32 %v914_v1, %v360_v32  ;;  %v432_v43 = vadd.f32 %v914_v1, %v361_v33  ;;  %v433_v44 = vadd.f32 %v914_v1, %v362_v36 }
  0x58   : > { %v434_v45 = vadd.f32 %v914_v1, %v363_v37  ;;  %v621_v46 = vsel %vm493_vm6, %v429_v30, %v557_v40  ;;  %v364_v48 = vmul.f32 %v904_v0, %v293_v38  ;;  %v365_v49 = vmul.f32 %v904_v0, %v294_v39 }
  0x59   : > { %v622_v47 = vsel %vm494_vm7, %v430_v31, %v558_v41  ;;  %685 = vst [vmem:[%s942_s27 + $0x1b0] sm:$0xff] %v621_v46  ;;  %vm495_vm8 = vcmp.ge.f32.partialorder %v431_v42, 0.0  ;;  %v559_v52 = vmul.f32 0.01, %v431_v42  ;;  %vm496_vm9 = vcmp.ge.f32.partialorder %v432_v43, 0.0 }
  0x5a   : > { %686 = vst [vmem:[%s942_s27 + $0x1b8] sm:$0xff] %v622_v47  ;;  %v560_v53 = vmul.f32 0.01, %v432_v43  ;;  %vm497_vm10 = vcmp.ge.f32.partialorder %v433_v44, 0.0  ;;  %v561_v54 = vmul.f32 0.01, %v433_v44  ;;  %v435_v58 = vadd.f32 %v914_v1, %v364_v48 }
  0x5b   : > { %vm498_vm11 = vcmp.ge.f32.partialorder %v434_v45, 0.0  ;;  %v562_v55 = vmul.f32 0.01, %v434_v45  ;;  %v623_v56 = vsel %vm495_vm8, %v431_v42, %v559_v52  ;;  %v436_v59 = vadd.f32 %v914_v1, %v365_v49 }
  0x5c   : > { %v624_v57 = vsel %vm496_vm9, %v432_v43, %v560_v53  ;;  %687 = vst [vmem:[%s942_s27 + $0x1c0] sm:$0xff] %v623_v56  ;;  %v625_v60 = vsel %vm497_vm10, %v433_v44, %v561_v54  ;;  %v366_v62 = vmul.f32 %v904_v0, %v295_v50  ;;  %v367_v63 = vmul.f32 %v904_v0, %v296_v51 }
  0x5d   : > { %688 = vst [vmem:[%s942_s27 + $0x1c8] sm:$0xff] %v624_v57  ;;  %v626_v61 = vsel %vm498_vm11, %v434_v45, %v562_v55  ;;  %689 = vst [vmem:[%s942_s27 + $0x1d0] sm:$0xff] %v625_v60  ;;  %vm499_vm12 = vcmp.ge.f32.partialorder %v435_v58, 0.0  ;;  %v563_v2 = vmul.f32 0.01, %v435_v58  ;;  %vm500_vm13 = vcmp.ge.f32.partialorder %v436_v59, 0.0 }
  0x5e   : > { %690 = vst [vmem:[%s942_s27 + $0x1d8] sm:$0xff] %v626_v61  ;;  %v564_v3 = vmul.f32 0.01, %v436_v59  ;;  %v437_v4 = vadd.f32 %v914_v1, %v366_v62  ;;  %v438_v5 = vadd.f32 %v914_v1, %v367_v63 }
  0x5f   : > { %v627_v6 = vsel %vm499_vm12, %v435_v58, %v563_v2 }
  0x60   : > { %v628_v7 = vsel %vm500_vm13, %v436_v59, %v564_v3  ;;  %691 = vst [vmem:[%s942_s27 + $0x1e0] sm:$0xff] %v627_v6  ;;  %vm501_vm14 = vcmp.ge.f32.partialorder %v437_v4, 0.0  ;;  %v565_v8 = vmul.f32 0.01, %v437_v4  ;;  %vm502_vm15 = vcmp.ge.f32.partialorder %v438_v5, 0.0 }
  0x61   : > { %692 = vst [vmem:[%s942_s27 + $0x1e8] sm:$0xff] %v628_v7  ;;  %v566_v0 = vmul.f32 0.01, %v438_v5 }
  0x62   : > { %v629_v9 = vsel %vm501_vm14, %v437_v4, %v565_v8 }
  0x63   : > { %v630_v10 = vsel %vm502_vm15, %v438_v5, %v566_v0  ;;  %693 = vst [vmem:[%s942_s27 + $0x1f0] sm:$0xff] %v629_v9 }
  0x64   : > { %694 = vst [vmem:[%s942_s27 + $0x1f8] sm:$0xff] %v630_v10 }
  0x65 PF: > { %s13_s14 = sadd.s32 1, %s858_s14   ;;  %s1190_s12 = smov %s854_s13 }
  0x66   : > { %p10_p5 = scmp.ge.s32.totalorder %s13_s14, 4   ;;  %s1191_s13 = smov %s1193_s15 }
  0x68   :  { %12 = sbr.rel (!%p10_p5) target bundleno = 2 (0x2), region = 68 }

// kernel: dense_up_block_forward.20
= control target key start
LH: loop header
LB: loop body
LE: loop exit
PB: predicated region body
PF: predicated region fallthrough
CT: control target
= control target key end

     0   :  { %s1937_s15 = smov 0   ;;  %s1939_s16 = smov 0   ;;  %s2301_s0 = inlined_call_operand.vmem [shape: bf16[1024,128], index: 0, kind: input, shape index: {}]   ;;  %s2302_s1 = inlined_call_operand.vmem [shape: bf16[128,128], index: 1, kind: input, shape index: {}]   ;;  %s2303_s2 = inlined_call_operand.vmem [shape: f32[1024,128], index: 2, kind: output, shape index: {0}]   ;;  %s2304_s3 = inlined_call_operand.vmem [shape: f32[16,128], index: 3, kind: output, shape index: {1}]   ;;  %s2305_s4 = inlined_call_operand.vmem [shape: f32[16,128], index: 4, kind: output, shape index: {2}]  }
   0x1   :  { %s1941_s17 = smov 0  }
   0x2 LB: > { %s34_s18 = sadd.s32 1, %s1906_s16  ;;  %p1638_p0 = scmp.ge.s32.totalorder %s1910_s17, 1  ;;  %s1910_s17 = sphi %s1941_s17, %s15_s17   ;;  %s1906_s16 = sphi %s1939_s16, %s2307_s16   ;;  %s1902_s15 = sphi %s1937_s15, %s2306_s15  }
   0x3   : > { %p36_p1 = scmp.ge.s32.totalorder %s34_s18, 2  ;;  %p214_p2 = scmp.lt.s32.totalorder %s1910_s17, 3 }
   0x5   : > { %s2309_s18 = smov (%p36_p1, %s34_s18), 0  ;;  %p215_p3 = pnand %p1638_p0, %p214_p2 }
   0x6   : > { %s1639_s21 = sshll.u32 (!%p215_p3), %s1902_s15, 6  ;;  %p295_p5 = scmp.lt.s32.totalorder (!%p215_p3), %s1902_s15, 1 }
   0x7   : > { %218 = sbr.rel (%p215_p3) target bundleno = 385 (0x181), region = 28  ;;  %p269_p4 = scmp.lt.s32.totalorder (!%p215_p3), %s1639_s21, 127 }
   0xc   : > { %v1848_v0 = vld [vmem:[%s2302_s1 + $0x38] sm:$0xff]   ;;  %v1849_v1 = vld [vmem:[%s2302_s1 + $0x30] sm:$0xff]   ;;  %s2311_s21 = smov (!%p269_p4, %s1639_s21), 127  ;;  %v1850_v2 = vld [vmem:[%s2302_s1 + $0x28] sm:$0xff]   ;;  %s2313_s15 = smov (!%p295_p5, %s1902_s15), 1 }
   0xd   : > { %1727 = vmatprep.subr.bf16.mxu0 %v1848_v0  ;;  %1807 = vmatprep.subr.bf16.mxu1 %v1848_v0  ;;  %s1640_s26 = sshll.u32 %s2311_s21, 2  ;;  %v1851_v3 = vld [vmem:[%s2302_s1 + $0x20] sm:$0xff]   ;;  %v1852_v5 = vld [vmem:[%s2302_s1 + $0x18] sm:$0xff]   ;;  %v1853_v6 = vld [vmem:[%s2302_s1 + $0x10] sm:$0xff]   ;;  %s1642_s14 = sshll.u32 %s2311_s21, 3 }
   0xe   : > { %1728 = vmatpush3.bf16.msra.mxu0 %v1848_v0  ;;  %1815 = vmatpush3.bf16.msra.mxu1 %v1848_v0  ;;  %s1973_s29 = scalar_lea.vmem %s2301_s0, %s1640_s26  ;;  %v1854_v7 = vld [vmem:[%s2302_s1 + $0x8] sm:$0xff]   ;;  %v1855_v8 = vld [vmem:[%s2302_s1] sm:$0xff]   ;;  %s2026_s22 = scalar_lea.vmem %s2303_s2, %s1642_s14 }
   0xf   : > { %1729 = vmatprep.subr.bf16.mxu0 %v1849_v1  ;;  %1808 = vmatprep.subr.bf16.mxu1 %v1849_v1  ;;  %v1856_v4 = vld [vmem:[%s1973_s29] sm:$0xff]   ;;  %v1857_v10 = vld [vmem:[%s1973_s29 + $0x8] sm:$0xff]   ;;  %v1858_v11 = vld [vmem:[%s1973_s29 + $0x10] sm:$0xff]   ;;  %s1643_s21 = sshll.u32 %s2313_s15, 3 }
  0x10   : > { %1743 = vmatprep.mubr.bf16.mxu0 %v1856_v4  ;;  %v1872_v9 = vld [vmem:[%s1973_s29 + $0x80] sm:$0xff]   ;;  %v1873_v12 = vld [vmem:[%s1973_s29 + $0x88] sm:$0xff]   ;;  %v1874_v13 = vld [vmem:[%s1973_s29 + $0x90] sm:$0xff]   ;;  %s301_s25 = scalar_lea.vmem %s2304_s3, %s1643_s21  ;;  %s308_s28 = scalar_lea.vmem %s2305_s4, %s1643_s21 }
  0x11   : > { %1775 = vmatprep.mubr.bf16.mxu1 %v1872_v9  ;;  %v1859_v14 = vld [vmem:[%s1973_s29 + $0x18] sm:$0xff]   ;;  %v1860_v15 = vld [vmem:[%s1973_s29 + $0x20] sm:$0xff]   ;;  %v1861_v18 = vld [vmem:[%s1973_s29 + $0x28] sm:$0xff]  }
  0x12   : > { %1730 = vmatpush3.bf16.msra.mxu0 %v1849_v1  ;;  %1816 = vmatpush3.bf16.msra.mxu1 %v1849_v1  ;;  %v1875_v16 = vld [vmem:[%s1973_s29 + $0x98] sm:$0xff]   ;;  %v1876_v17 = vld [vmem:[%s1973_s29 + $0xa0] sm:$0xff]   ;;  %v1877_v19 = vld [vmem:[%s1973_s29 + $0xa8] sm:$0xff]  }
  0x13   : > { %1731 = vmatprep.subr.bf16.mxu0 %v1850_v2  ;;  %1809 = vmatprep.subr.bf16.mxu1 %v1850_v2  ;;  %v1862_v20 = vld [vmem:[%s1973_s29 + $0x30] sm:$0xff]   ;;  %v1863_v22 = vld [vmem:[%s1973_s29 + $0x38] sm:$0xff]   ;;  %v1864_v24 = vld [vmem:[%s1973_s29 + $0x40] sm:$0xff]  }
  0x14   : > { %v1878_v21 = vld [vmem:[%s1973_s29 + $0xb0] sm:$0xff]   ;;  %v1879_v23 = vld [vmem:[%s1973_s29 + $0xb8] sm:$0xff]   ;;  %v1880_v25 = vld [vmem:[%s1973_s29 + $0xc0] sm:$0xff]  }
  0x15   : > { %v1865_v26 = vld [vmem:[%s1973_s29 + $0x48] sm:$0xff]   ;;  %v1866_v28 = vld [vmem:[%s1973_s29 + $0x50] sm:$0xff]   ;;  %v1867_v30 = vld [vmem:[%s1973_s29 + $0x58] sm:$0xff]  }
  0x16   : > { %1732 = vmatpush3.bf16.msra.mxu0 %v1850_v2  ;;  %1817 = vmatpush3.bf16.msra.mxu1 %v1850_v2  ;;  %v1881_v27 = vld [vmem:[%s1973_s29 + $0xc8] sm:$0xff]   ;;  %v1882_v29 = vld [vmem:[%s1973_s29 + $0xd0] sm:$0xff]   ;;  %v1883_v31 = vld [vmem:[%s1973_s29 + $0xd8] sm:$0xff]  }
  0x17   : > { %1733 = vmatprep.subr.bf16.mxu0 %v1851_v3  ;;  %1810 = vmatprep.subr.bf16.mxu1 %v1851_v3  ;;  %v1868_v32 = vld [vmem:[%s1973_s29 + $0x60] sm:$0xff]   ;;  %v1869_v34 = vld [vmem:[%s1973_s29 + $0x68] sm:$0xff]   ;;  %v1870_v36 = vld [vmem:[%s1973_s29 + $0x70] sm:$0xff]  }
  0x18   : > { %v1884_v33 = vld [vmem:[%s1973_s29 + $0xe0] sm:$0xff]   ;;  %v1885_v35 = vld [vmem:[%s1973_s29 + $0xe8] sm:$0xff]   ;;  %v1886_v37 = vld [vmem:[%s1973_s29 + $0xf0] sm:$0xff]  }
  0x19   : > { %v1871_v38 = vld [vmem:[%s1973_s29 + $0x78] sm:$0xff]  }
  0x1a   : > { %1734 = vmatpush3.bf16.msra.mxu0 %v1851_v3  ;;  %1818 = vmatpush3.bf16.msra.mxu1 %v1851_v3  ;;  %v1887_v39 = vld [vmem:[%s1973_s29 + $0xf8] sm:$0xff]  }
  0x1b   : > { %1735 = vmatprep.subr.bf16.mxu0 %v1852_v5  ;;  %1811 = vmatprep.subr.bf16.mxu1 %v1852_v5 }
  0x1e   : > { %1736 = vmatpush3.bf16.msra.mxu0 %v1852_v5  ;;  %1819 = vmatpush3.bf16.msra.mxu1 %v1852_v5 }
  0x1f   : > { %1737 = vmatprep.subr.bf16.mxu0 %v1853_v6  ;;  %1812 = vmatprep.subr.bf16.mxu1 %v1853_v6 }
  0x22   : > { %1738 = vmatpush3.bf16.msra.mxu0 %v1853_v6  ;;  %1820 = vmatpush3.bf16.msra.mxu1 %v1853_v6 }
  0x23   : > { %1739 = vmatprep.subr.bf16.mxu0 %v1854_v7  ;;  %1813 = vmatprep.subr.bf16.mxu1 %v1854_v7 }
  0x26   : > { %1740 = vmatpush3.bf16.msra.mxu0 %v1854_v7  ;;  %1821 = vmatpush3.bf16.msra.mxu1 %v1854_v7 }
  0x27   : > { %1741 = vmatprep.subr.bf16.mxu0 %v1855_v8  ;;  %1814 = vmatprep.subr.bf16.mxu1 %v1855_v8 }
  0x2a   : > { %1742 = vmatpush3.bf16.msra.mxu0 %v1855_v8  ;;  %1822 = vmatpush3.bf16.msra.mxu1 %v1855_v8 }
  0x2d   : > { %1744 = vmatmul.mubr.bf16.vlgmr.msra.gmra.mxu0 %v1857_v10  ;;  %1776 = vmatmul.mubr.bf16.vlgmr.msra.gmra.mxu1 %v1873_v12 }
  0x2e   : > { %1747 = vmatprep.mubr.bf16.mxu0 %v1858_v11  ;;  %1779 = vmatprep.mubr.bf16.mxu1 %v1874_v13 }
  0x35   : > { %1748 = vmatmul.mubr.bf16.gmra.mxu0 %v1859_v14  ;;  %1780 = vmatmul.mubr.bf16.gmra.mxu1 %v1875_v16 }
  0x36   : > { %1751 = vmatprep.mubr.bf16.mxu0 %v1860_v15  ;;  %1783 = vmatprep.mubr.bf16.mxu1 %v1876_v17 }
  0x3d   : > { %1752 = vmatmul.mubr.bf16.gmra.mxu0 %v1861_v18  ;;  %1784 = vmatmul.mubr.bf16.gmra.mxu1 %v1877_v19 }
  0x3e   : > { %1755 = vmatprep.mubr.bf16.mxu0 %v1862_v20  ;;  %1787 = vmatprep.mubr.bf16.mxu1 %v1878_v21 }
  0x45   : > { %1756 = vmatmul.mubr.bf16.gmra.mxu0 %v1863_v22  ;;  %1788 = vmatmul.mubr.bf16.gmra.mxu1 %v1879_v23 }
  0x46   : > { %1759 = vmatprep.mubr.bf16.mxu0 %v1864_v24  ;;  %1791 = vmatprep.mubr.bf16.mxu1 %v1880_v25 }
  0x4d   : > { %1760 = vmatmul.mubr.bf16.gmra.mxu0 %v1865_v26  ;;  %1792 = vmatmul.mubr.bf16.gmra.mxu1 %v1881_v27 }
  0x4e   : > { %1763 = vmatprep.mubr.bf16.mxu0 %v1866_v28  ;;  %1795 = vmatprep.mubr.bf16.mxu1 %v1882_v29 }
  0x55   : > { %1764 = vmatmul.mubr.bf16.gmra.mxu0 %v1867_v30  ;;  %1796 = vmatmul.mubr.bf16.gmra.mxu1 %v1883_v31 }
  0x56   : > { %1767 = vmatprep.mubr.bf16.mxu0 %v1868_v32  ;;  %1799 = vmatprep.mubr.bf16.mxu1 %v1884_v33 }
  0x5d   : > { %1768 = vmatmul.mubr.bf16.gmra.mxu0 %v1869_v34  ;;  %1800 = vmatmul.mubr.bf16.gmra.mxu1 %v1885_v35 }
  0x5e   : > { %1771 = vmatprep.mubr.bf16.mxu0 %v1870_v36  ;;  %1803 = vmatprep.mubr.bf16.mxu1 %v1886_v37 }
  0x65   : > { %1772 = vmatmul.mubr.bf16.gmra.mxu0 %v1871_v38  ;;  %1804 = vmatmul.mubr.bf16.gmra.mxu1 %v1887_v39 }
  0xed   : > { %v1745_v40 = vpop.f32.mrf.mxu0  ;;  %v2028_v41 = vpop.f32.mrf.mxu1 }
  0xee   : > { %1117 = vst [vmem:[%s2026_s22 + $0x10] sm:$0xff] %v1745_v40  ;;  %1149 = vst [vmem:[%s2026_s22 + $0x110] sm:$0xff] %v2028_v41  ;;  %v1317_v55 = vmul.f32 %v1745_v40, %v1745_v40 }
  0xef   : > { %v796_v42 = vpop.f32.mrf.mxu0  ;;  %v2030_v43 = vpop.f32.mrf.mxu1 }
  0xf0   : > { %1115 = vst [vmem:[%s2026_s22] sm:$0xff] %v796_v42  ;;  %1147 = vst [vmem:[%s2026_s22 + $0x100] sm:$0xff] %v2030_v43  ;;  %v1315_v50 = vmul.f32 %v796_v42, %v796_v42 }
  0xf1   : > { %v1746_v44 = vpop.f32.mrf.mxu0  ;;  %v2035_v45 = vpop.f32.mrf.mxu1 }
  0xf2   : > { %1118 = vst [vmem:[%s2026_s22 + $0x18] sm:$0xff] %v1746_v44  ;;  %1150 = vst [vmem:[%s2026_s22 + $0x118] sm:$0xff] %v2035_v45  ;;  %v1318_v60 = vmul.f32 %v1746_v44, %v1746_v44 }
  0xf3   : > { %v799_v46 = vpop.f32.mrf.mxu0  ;;  %v2040_v47 = vpop.f32.mrf.mxu1 }
  0xf4   : > { %1116 = vst [vmem:[%s2026_s22 + $0x8] sm:$0xff] %v799_v46  ;;  %v1246_v51 = vadd.f32 %v799_v46, %v796_v42  ;;  %v1316_v52 = vmul.f32 %v799_v46, %v799_v46  ;;  %1148 = vst [vmem:[%s2026_s22 + $0x108] sm:$0xff] %v2040_v47 }
  0xf5   : > { %v1749_v48 = vpop.f32.mrf.mxu0  ;;  %v2045_v49 = vpop.f32.mrf.mxu1 }
  0xf6   : > { %v1247_v56 = vadd.f32 %v1745_v40, %v1246_v51  ;;  %v1379_v57 = vadd.f32 %v1316_v52, %v1315_v50  ;;  %1121 = vst [vmem:[%s2026_s22 + $0x30] sm:$0xff] %v1749_v48  ;;  %1153 = vst [vmem:[%s2026_s22 + $0x130] sm:$0xff] %v2045_v49  ;;  %v1321_v11 = vmul.f32 %v1749_v48, %v1749_v48 }
  0xf7   : > { %v812_v53 = vpop.f32.mrf.mxu0  ;;  %v2050_v54 = vpop.f32.mrf.mxu1 }
  0xf8   : > { %v1380_v61 = vadd.f32 %v1379_v57, %v1317_v55  ;;  %1119 = vst [vmem:[%s2026_s22 + $0x20] sm:$0xff] %v812_v53  ;;  %v1248_v62 = vadd.f32 %v1746_v44, %v1247_v56  ;;  %1151 = vst [vmem:[%s2026_s22 + $0x120] sm:$0xff] %v2050_v54  ;;  %v1319_v2 = vmul.f32 %v812_v53, %v812_v53 }
  0xf9   : > { %v1750_v58 = vpop.f32.mrf.mxu0  ;;  %v2055_v59 = vpop.f32.mrf.mxu1 }
  0xfa   : > { %v1249_v1 = vadd.f32 %v1248_v62, %v812_v53  ;;  %v1381_v3 = vadd.f32 %v1380_v61, %v1318_v60  ;;  %1122 = vst [vmem:[%s2026_s22 + $0x38] sm:$0xff] %v1750_v58  ;;  %1154 = vst [vmem:[%s2026_s22 + $0x138] sm:$0xff] %v2055_v59  ;;  %v1322_v16 = vmul.f32 %v1750_v58, %v1750_v58 }
  0xfb   : > { %v815_v63 = vpop.f32.mrf.mxu0  ;;  %v2060_v0 = vpop.f32.mrf.mxu1 }
  0xfc   : > { %v1382_v6 = vadd.f32 %v1381_v3, %v1319_v2  ;;  %1120 = vst [vmem:[%s2026_s22 + $0x28] sm:$0xff] %v815_v63  ;;  %v1250_v7 = vadd.f32 %v1249_v1, %v815_v63  ;;  %v1320_v8 = vmul.f32 %v815_v63, %v815_v63  ;;  %1152 = vst [vmem:[%s2026_s22 + $0x128] sm:$0xff] %v2060_v0 }
  0xfd   : > { %v1753_v4 = vpop.f32.mrf.mxu0  ;;  %v2065_v5 = vpop.f32.mrf.mxu1 }
  0xfe   : > { %v1251_v12 = vadd.f32 %v1749_v48, %v1250_v7  ;;  %v1383_v13 = vadd.f32 %v1382_v6, %v1320_v8  ;;  %1125 = vst [vmem:[%s2026_s22 + $0x50] sm:$0xff] %v1753_v4  ;;  %1157 = vst [vmem:[%s2026_s22 + $0x150] sm:$0xff] %v2065_v5  ;;  %v1325_v31 = vmul.f32 %v1753_v4, %v1753_v4 }
  0xff   : > { %v828_v9 = vpop.f32.mrf.mxu0  ;;  %v2070_v10 = vpop.f32.mrf.mxu1 }
 0x100   : > { %v1384_v17 = vadd.f32 %v1383_v13, %v1321_v11  ;;  %1123 = vst [vmem:[%s2026_s22 + $0x40] sm:$0xff] %v828_v9  ;;  %v1252_v18 = vadd.f32 %v1750_v58, %v1251_v12  ;;  %1155 = vst [vmem:[%s2026_s22 + $0x140] sm:$0xff] %v2070_v10  ;;  %v1323_v22 = vmul.f32 %v828_v9, %v828_v9 }
 0x101   : > { %v1754_v14 = vpop.f32.mrf.mxu0  ;;  %v2075_v15 = vpop.f32.mrf.mxu1 }
 0x102   : > { %v1253_v21 = vadd.f32 %v1252_v18, %v828_v9  ;;  %v1385_v23 = vadd.f32 %v1384_v17, %v1322_v16  ;;  %1126 = vst [vmem:[%s2026_s22 + $0x58] sm:$0xff] %v1754_v14  ;;  %1158 = vst [vmem:[%s2026_s22 + $0x158] sm:$0xff] %v2075_v15  ;;  %v1326_v36 = vmul.f32 %v1754_v14, %v1754_v14 }
 0x103   : > { %v831_v19 = vpop.f32.mrf.mxu0  ;;  %v2080_v20 = vpop.f32.mrf.mxu1 }
 0x104   : > { %v1386_v26 = vadd.f32 %v1385_v23, %v1323_v22  ;;  %1124 = vst [vmem:[%s2026_s22 + $0x48] sm:$0xff] %v831_v19  ;;  %v1254_v27 = vadd.f32 %v1253_v21, %v831_v19  ;;  %v1324_v28 = vmul.f32 %v831_v19, %v831_v19  ;;  %1156 = vst [vmem:[%s2026_s22 + $0x148] sm:$0xff] %v2080_v20 }
 0x105   : > { %v1757_v24 = vpop.f32.mrf.mxu0  ;;  %v2085_v25 = vpop.f32.mrf.mxu1 }
 0x106   : > { %v1255_v32 = vadd.f32 %v1753_v4, %v1254_v27  ;;  %v1387_v33 = vadd.f32 %v1386_v26, %v1324_v28  ;;  %1129 = vst [vmem:[%s2026_s22 + $0x70] sm:$0xff] %v1757_v24  ;;  %1161 = vst [vmem:[%s2026_s22 + $0x170] sm:$0xff] %v2085_v25  ;;  %v1329_v57 = vmul.f32 %v1757_v24, %v1757_v24 }
 0x107   : > { %v844_v29 = vpop.f32.mrf.mxu0  ;;  %v2090_v30 = vpop.f32.mrf.mxu1 }
 0x108   : > { %v1388_v37 = vadd.f32 %v1387_v33, %v1325_v31  ;;  %1127 = vst [vmem:[%s2026_s22 + $0x60] sm:$0xff] %v844_v29  ;;  %v1256_v38 = vadd.f32 %v1754_v14, %v1255_v32  ;;  %1159 = vst [vmem:[%s2026_s22 + $0x160] sm:$0xff] %v2090_v30  ;;  %v1327_v44 = vmul.f32 %v844_v29, %v844_v29 }
 0x109   : > { %v1758_v34 = vpop.f32.mrf.mxu0  ;;  %v2095_v35 = vpop.f32.mrf.mxu1 }
 0x10a   : > { %v1257_v42 = vadd.f32 %v1256_v38, %v844_v29  ;;  %v1389_v46 = vadd.f32 %v1388_v37, %v1326_v36  ;;  %1130 = vst [vmem:[%s2026_s22 + $0x78] sm:$0xff] %v1758_v34  ;;  %1162 = vst [vmem:[%s2026_s22 + $0x178] sm:$0xff] %v2095_v35  ;;  %v1330_v63 = vmul.f32 %v1758_v34, %v1758_v34 }
 0x10b   : > { %v847_v39 = vpop.f32.mrf.mxu0  ;;  %v2100_v40 = vpop.f32.mrf.mxu1 }
 0x10c   : > { %v1390_v51 = vadd.f32 %v1389_v46, %v1327_v44  ;;  %1128 = vst [vmem:[%s2026_s22 + $0x68] sm:$0xff] %v847_v39  ;;  %v1258_v52 = vadd.f32 %v1257_v42, %v847_v39  ;;  %v1328_v53 = vmul.f32 %v847_v39, %v847_v39  ;;  %1160 = vst [vmem:[%s2026_s22 + $0x168] sm:$0xff] %v2100_v40 }
 0x10d   : > { %v1761_v48 = vpop.f32.mrf.mxu0  ;;  %v2105_v50 = vpop.f32.mrf.mxu1 }
 0x10e   : > { %v1259_v58 = vadd.f32 %v1757_v24, %v1258_v52  ;;  %v1391_v60 = vadd.f32 %v1390_v51, %v1328_v53  ;;  %1133 = vst [vmem:[%s2026_s22 + $0x90] sm:$0xff] %v1761_v48  ;;  %1165 = vst [vmem:[%s2026_s22 + $0x190] sm:$0xff] %v2105_v50  ;;  %v1333_v18 = vmul.f32 %v1761_v48, %v1761_v48 }
 0x10f   : > { %v860_v55 = vpop.f32.mrf.mxu0  ;;  %v2110_v56 = vpop.f32.mrf.mxu1 }
 0x110   : > { %v1392_v1 = vadd.f32 %v1391_v60, %v1329_v57  ;;  %1131 = vst [vmem:[%s2026_s22 + $0x80] sm:$0xff] %v860_v55  ;;  %v1260_v2 = vadd.f32 %v1758_v34, %v1259_v58  ;;  %1163 = vst [vmem:[%s2026_s22 + $0x180] sm:$0xff] %v2110_v56  ;;  %v1331_v7 = vmul.f32 %v860_v55, %v860_v55 }
 0x111   : > { %v1762_v61 = vpop.f32.mrf.mxu0  ;;  %v2115_v62 = vpop.f32.mrf.mxu1 }
 0x112   : > { %v1261_v6 = vadd.f32 %v1260_v2, %v860_v55  ;;  %v1393_v8 = vadd.f32 %v1392_v1, %v1330_v63  ;;  %1134 = vst [vmem:[%s2026_s22 + $0x98] sm:$0xff] %v1762_v61  ;;  %1166 = vst [vmem:[%s2026_s22 + $0x198] sm:$0xff] %v2115_v62  ;;  %v1334_v24 = vmul.f32 %v1762_v61, %v1762_v61 }
 0x113   : > { %v863_v3 = vpop.f32.mrf.mxu0  ;;  %v2120_v4 = vpop.f32.mrf.mxu1 }
 0x114   : > { %v1394_v12 = vadd.f32 %v1393_v8, %v1331_v7  ;;  %1132 = vst [vmem:[%s2026_s22 + $0x88] sm:$0xff] %v863_v3  ;;  %v1262_v13 = vadd.f32 %v1261_v6, %v863_v3  ;;  %v1332_v14 = vmul.f32 %v863_v3, %v863_v3  ;;  %1164 = vst [vmem:[%s2026_s22 + $0x188] sm:$0xff] %v2120_v4 }
 0x115   : > { %v1765_v9 = vpop.f32.mrf.mxu0  ;;  %v2125_v11 = vpop.f32.mrf.mxu1 }
 0x116   : > { %v1263_v19 = vadd.f32 %v1761_v48, %v1262_v13  ;;  %v1395_v21 = vadd.f32 %v1394_v12, %v1332_v14  ;;  %1137 = vst [vmem:[%s2026_s22 + $0xb0] sm:$0xff] %v1765_v9  ;;  %1169 = vst [vmem:[%s2026_s22 + $0x1b0] sm:$0xff] %v2125_v11  ;;  %v1337_v46 = vmul.f32 %v1765_v9, %v1765_v9 }
 0x117   : > { %v876_v16 = vpop.f32.mrf.mxu0  ;;  %v2130_v17 = vpop.f32.mrf.mxu1 }
 0x118   : > { %v1396_v26 = vadd.f32 %v1395_v21, %v1333_v18  ;;  %1135 = vst [vmem:[%s2026_s22 + $0xa0] sm:$0xff] %v876_v16  ;;  %v1264_v27 = vadd.f32 %v1762_v61, %v1263_v19  ;;  %1167 = vst [vmem:[%s2026_s22 + $0x1a0] sm:$0xff] %v2130_v17  ;;  %v1335_v32 = vmul.f32 %v876_v16, %v876_v16 }
 0x119   : > { %v1766_v22 = vpop.f32.mrf.mxu0  ;;  %v2135_v23 = vpop.f32.mrf.mxu1 }
 0x11a   : > { %v1265_v31 = vadd.f32 %v1264_v27, %v876_v16  ;;  %v1397_v33 = vadd.f32 %v1396_v26, %v1334_v24  ;;  %1138 = vst [vmem:[%s2026_s22 + $0xb8] sm:$0xff] %v1766_v22  ;;  %1170 = vst [vmem:[%s2026_s22 + $0x1b8] sm:$0xff] %v2135_v23  ;;  %v1338_v55 = vmul.f32 %v1766_v22, %v1766_v22 }
 0x11b   : > { %v879_v28 = vpop.f32.mrf.mxu0  ;;  %v2140_v29 = vpop.f32.mrf.mxu1 }
 0x11c   : > { %v1398_v37 = vadd.f32 %v1397_v33, %v1335_v32  ;;  %1136 = vst [vmem:[%s2026_s22 + $0xa8] sm:$0xff] %v879_v28  ;;  %v1266_v38 = vadd.f32 %v1265_v31, %v879_v28  ;;  %v1336_v39 = vmul.f32 %v879_v28, %v879_v28  ;;  %1168 = vst [vmem:[%s2026_s22 + $0x1a8] sm:$0xff] %v2140_v29 }
 0x11d   : > { %v1769_v34 = vpop.f32.mrf.mxu0  ;;  %v2145_v36 = vpop.f32.mrf.mxu1 }
 0x11e   : > { %v1267_v48 = vadd.f32 %v1765_v9, %v1266_v38  ;;  %v1399_v51 = vadd.f32 %v1398_v37, %v1336_v39  ;;  %1141 = vst [vmem:[%s2026_s22 + $0xd0] sm:$0xff] %v1769_v34  ;;  %1173 = vst [vmem:[%s2026_s22 + $0x1d0] sm:$0xff] %v2145_v36  ;;  %v1341_v14 = vmul.f32 %v1769_v34, %v1769_v34 }
 0x11f   : > { %v892_v42 = vpop.f32.mrf.mxu0  ;;  %v2150_v44 = vpop.f32.mrf.mxu1 }
 0x120   : > { %v1400_v57 = vadd.f32 %v1399_v51, %v1337_v46  ;;  %1139 = vst [vmem:[%s2026_s22 + $0xc0] sm:$0xff] %v892_v42  ;;  %v1268_v58 = vadd.f32 %v1766_v22, %v1267_v48  ;;  %1171 = vst [vmem:[%s2026_s22 + $0x1c0] sm:$0xff] %v2150_v44  ;;  %v1339_v1 = vmul.f32 %v892_v42, %v892_v42 }
 0x121   : > { %v1770_v52 = vpop.f32.mrf.mxu0  ;;  %v2155_v53 = vpop.f32.mrf.mxu1 }
 0x122   : > { %v1269_v63 = vadd.f32 %v1268_v58, %v892_v42  ;;  %v1401_v2 = vadd.f32 %v1400_v57, %v1338_v55  ;;  %1142 = vst [vmem:[%s2026_s22 + $0xd8] sm:$0xff] %v1770_v52  ;;  %1174 = vst [vmem:[%s2026_s22 + $0x1d8] sm:$0xff] %v2155_v53  ;;  %v1342_v22 = vmul.f32 %v1770_v52, %v1770_v52 }
 0x123   : > { %v895_v60 = vpop.f32.mrf.mxu0  ;;  %v2160_v61 = vpop.f32.mrf.mxu1  ;;  %v1347_v55 = vmul.f32 %v2030_v43, %v2030_v43 }
 0x124   : > { %v1402_v7 = vadd.f32 %v1401_v2, %v1339_v1  ;;  %1140 = vst [vmem:[%s2026_s22 + $0xc8] sm:$0xff] %v895_v60  ;;  %v1270_v8 = vadd.f32 %v1269_v63, %v895_v60  ;;  %v1340_v9 = vmul.f32 %v895_v60, %v895_v60  ;;  %1172 = vst [vmem:[%s2026_s22 + $0x1c8] sm:$0xff] %v2160_v61 }
 0x125   : > { %v1773_v3 = vpop.f32.mrf.mxu0  ;;  %v2165_v6 = vpop.f32.mrf.mxu1  ;;  %v1348_v63 = vmul.f32 %v2040_v47, %v2040_v47  ;;  %v1349_v2 = vmul.f32 %v2028_v41, %v2028_v41 }
 0x126   : > { %v1271_v16 = vadd.f32 %v1769_v34, %v1270_v8  ;;  %v1403_v18 = vadd.f32 %v1402_v7, %v1340_v9  ;;  %1145 = vst [vmem:[%s2026_s22 + $0xf0] sm:$0xff] %v1773_v3  ;;  %1177 = vst [vmem:[%s2026_s22 + $0x1f0] sm:$0xff] %v2165_v6  ;;  %v1345_v39 = vmul.f32 %v1773_v3, %v1773_v3 }
 0x127   : > { %v908_v12 = vpop.f32.mrf.mxu0  ;;  %v2170_v13 = vpop.f32.mrf.mxu1  ;;  %v1350_v8 = vmul.f32 %v2035_v45, %v2035_v45 }
 0x128   : > { %v1404_v24 = vadd.f32 %v1403_v18, %v1341_v14  ;;  %1143 = vst [vmem:[%s2026_s22 + $0xe0] sm:$0xff] %v908_v12  ;;  %v1272_v26 = vadd.f32 %v1770_v52, %v1271_v16  ;;  %1175 = vst [vmem:[%s2026_s22 + $0x1e0] sm:$0xff] %v2170_v13  ;;  %v1343_v32 = vmul.f32 %v908_v12, %v908_v12 }
 0x129   : > { %v1774_v19 = vpop.f32.mrf.mxu0  ;;  %v2175_v21 = vpop.f32.mrf.mxu1  ;;  %v1351_v14 = vmul.f32 %v2050_v54, %v2050_v54 }
 0x12a   : > { %v1273_v31 = vadd.f32 %v1272_v26, %v908_v12  ;;  %v1405_v33 = vadd.f32 %v1404_v24, %v1342_v22  ;;  %1146 = vst [vmem:[%s2026_s22 + $0xf8] sm:$0xff] %v1774_v19  ;;  %1178 = vst [vmem:[%s2026_s22 + $0x1f8] sm:$0xff] %v2175_v21  ;;  %v1346_v48 = vmul.f32 %v1774_v19, %v1774_v19 }
 0x12b   : > { %v911_v27 = vpop.f32.mrf.mxu0  ;;  %v2180_v28 = vpop.f32.mrf.mxu1 }
 0x12c   : > { %v1406_v34 = vadd.f32 %v1405_v33, %v1343_v32  ;;  %1144 = vst [vmem:[%s2026_s22 + $0xe8] sm:$0xff] %v911_v27  ;;  %v1274_v37 = vadd.f32 %v1273_v31, %v911_v27  ;;  %v1344_v38 = vmul.f32 %v911_v27, %v911_v27  ;;  %1176 = vst [vmem:[%s2026_s22 + $0x1e8] sm:$0xff] %v2180_v28 }
 0x12d   : > { %v1355_v31 = vmul.f32 %v2070_v10, %v2070_v10 }
 0x12e   : > { %v1275_v42 = vadd.f32 %v1773_v3, %v1274_v37  ;;  %v1407_v46 = vadd.f32 %v1406_v34, %v1344_v38  ;;  %v1356_v34 = vmul.f32 %v2080_v20, %v2080_v20 }
 0x130   : > { %v1408_v51 = vadd.f32 %v1407_v46, %v1345_v39  ;;  %v1276_v52 = vadd.f32 %v1774_v19, %v1275_v42  ;;  %v1352_v19 = vmul.f32 %v2060_v0, %v2060_v0  ;;  %v1359_v46 = vmul.f32 %v2090_v30, %v2090_v30 }
 0x132   : > { %v1277_v57 = vadd.f32 %v1276_v52, %v2030_v43  ;;  %v1409_v58 = vadd.f32 %v1408_v51, %v1346_v48  ;;  %v1360_v52 = vmul.f32 %v2100_v40, %v2100_v40 }
 0x134   : > { %v1278_v60 = vadd.f32 %v1277_v57, %v2040_v47  ;;  %v1410_v1 = vadd.f32 %v1409_v58, %v1347_v55 }
 0x136   : > { %v1279_v3 = vadd.f32 %v2028_v41, %v1278_v60  ;;  %v1411_v7 = vadd.f32 %v1410_v1, %v1348_v63  ;;  %v1353_v41 = vmul.f32 %v2045_v49, %v2045_v49  ;;  %v1363_v63 = vmul.f32 %v2110_v56, %v2110_v56 }
 0x138   : > { %v1412_v9 = vadd.f32 %v1411_v7, %v1349_v2  ;;  %v1280_v12 = vadd.f32 %v2035_v45, %v1279_v3  ;;  %v1354_v45 = vmul.f32 %v2055_v59, %v2055_v59  ;;  %v1364_v3 = vmul.f32 %v2120_v4, %v2120_v4 }
 0x13a   : > { %v1281_v43 = vadd.f32 %v1280_v12, %v2050_v54  ;;  %v1413_v16 = vadd.f32 %v1412_v9, %v1350_v8 }
 0x13c   : > { %v1414_v47 = vadd.f32 %v1413_v16, %v1351_v14  ;;  %v1282_v18 = vadd.f32 %v1281_v43, %v2060_v0  ;;  %v1367_v43 = vmul.f32 %v2130_v17, %v2130_v17 }
 0x13e   : > { %v1283_v22 = vadd.f32 %v2045_v49, %v1282_v18  ;;  %v1415_v24 = vadd.f32 %v1414_v47, %v1352_v19  ;;  %v1357_v49 = vmul.f32 %v2065_v5, %v2065_v5  ;;  %v1368_v47 = vmul.f32 %v2140_v29, %v2140_v29 }
 0x140   : > { %v1416_v26 = vadd.f32 %v1415_v24, %v1353_v41  ;;  %v1284_v27 = vadd.f32 %v2055_v59, %v1283_v22  ;;  %v1358_v59 = vmul.f32 %v2075_v15, %v2075_v15  ;;  %v1371_v24 = vmul.f32 %v2150_v44, %v2150_v44 }
 0x142   : > { %v1285_v54 = vadd.f32 %v1284_v27, %v2070_v10  ;;  %v1417_v32 = vadd.f32 %v1416_v26, %v1354_v45  ;;  %v1372_v27 = vmul.f32 %v2160_v61, %v2160_v61 }
 0x144   : > { %v1418_v33 = vadd.f32 %v1417_v32, %v1355_v31  ;;  %v1286_v0 = vadd.f32 %v1285_v54, %v2080_v20 }
 0x146   : > { %v1287_v37 = vadd.f32 %v2065_v5, %v1286_v0  ;;  %v1419_v38 = vadd.f32 %v1418_v33, %v1356_v34  ;;  %v1361_v5 = vmul.f32 %v2085_v25, %v2085_v25  ;;  %v1375_v0 = vmul.f32 %v2170_v13, %v2170_v13 }
 0x148   : > { %v1420_v39 = vadd.f32 %v1419_v38, %v1357_v49  ;;  %v1288_v42 = vadd.f32 %v2075_v15, %v1287_v37  ;;  %v1362_v15 = vmul.f32 %v2095_v35, %v2095_v35  ;;  %v1377_v37 = vmul.f32 %v2165_v6, %v2165_v6 }
 0x14a   : > { %v1289_v10 = vadd.f32 %v1288_v42, %v2090_v30  ;;  %v1421_v48 = vadd.f32 %v1420_v39, %v1358_v59 }
 0x14c   : > { %v1422_v51 = vadd.f32 %v1421_v48, %v1359_v46  ;;  %v1290_v20 = vadd.f32 %v1289_v10, %v2100_v40 }
 0x14e   : > { %v1291_v55 = vadd.f32 %v2085_v25, %v1290_v20  ;;  %v1423_v57 = vadd.f32 %v1422_v51, %v1360_v52  ;;  %v1365_v25 = vmul.f32 %v2105_v50, %v2105_v50 }
 0x150   : > { %v1424_v58 = vadd.f32 %v1423_v57, %v1361_v5  ;;  %v1292_v60 = vadd.f32 %v2095_v35, %v1291_v55  ;;  %v1366_v35 = vmul.f32 %v2115_v62, %v2115_v62 }
 0x152   : > { %v1293_v30 = vadd.f32 %v1292_v60, %v2110_v56  ;;  %v1425_v1 = vadd.f32 %v1424_v58, %v1362_v15 }
 0x154   : > { %v1426_v2 = vadd.f32 %v1425_v1, %v1363_v63  ;;  %v1294_v40 = vadd.f32 %v1293_v30, %v2120_v4 }
 0x156   : > { %v1295_v7 = vadd.f32 %v2105_v50, %v1294_v40  ;;  %v1427_v8 = vadd.f32 %v1426_v2, %v1364_v3  ;;  %v1369_v50 = vmul.f32 %v2125_v11, %v2125_v11 }
 0x158   : > { %v1428_v9 = vadd.f32 %v1427_v8, %v1365_v25  ;;  %v1296_v12 = vadd.f32 %v2115_v62, %v1295_v7  ;;  %v1370_v62 = vmul.f32 %v2135_v23, %v2135_v23 }
 0x15a   : > { %v1297_v56 = vadd.f32 %v1296_v12, %v2130_v17  ;;  %v1429_v14 = vadd.f32 %v1428_v9, %v1366_v35 }
 0x15c   : > { %v1430_v16 = vadd.f32 %v1429_v14, %v1367_v43  ;;  %v1298_v4 = vadd.f32 %v1297_v56, %v2140_v29 }
 0x15e   : > { %v1299_v18 = vadd.f32 %v2125_v11, %v1298_v4  ;;  %v1431_v19 = vadd.f32 %v1430_v16, %v1368_v47  ;;  %v1373_v11 = vmul.f32 %v2145_v36, %v2145_v36 }
 0x160   : > { %v1432_v41 = vadd.f32 %v1431_v19, %v1369_v50  ;;  %v1300_v22 = vadd.f32 %v2135_v23, %v1299_v18  ;;  %v1374_v23 = vmul.f32 %v2155_v53, %v2155_v53 }
 0x162   : > { %v1301_v17 = vadd.f32 %v1300_v22, %v2150_v44  ;;  %v1433_v45 = vadd.f32 %v1432_v41, %v1370_v62 }
 0x164   : > { %v1434_v26 = vadd.f32 %v1433_v45, %v1371_v24  ;;  %v1302_v29 = vadd.f32 %v1301_v17, %v2160_v61 }
 0x166   : > { %v1303_v54 = vadd.f32 %v2145_v36, %v1302_v29  ;;  %v1435_v31 = vadd.f32 %v1434_v26, %v1372_v27  ;;  %v1376_v36 = vmul.f32 %v2180_v28, %v2180_v28 }
 0x168   : > { %v1436_v32 = vadd.f32 %v1435_v31, %v1373_v11  ;;  %v1304_v44 = vadd.f32 %v2155_v53, %v1303_v54  ;;  %v1378_v53 = vmul.f32 %v2175_v21, %v2175_v21 }
 0x16a   : > { %v1305_v33 = vadd.f32 %v1304_v44, %v2170_v13  ;;  %v1437_v61 = vadd.f32 %v1436_v32, %v1374_v23 }
 0x16c   : > { %v1438_v34 = vadd.f32 %v1437_v61, %v1375_v0  ;;  %v1306_v49 = vadd.f32 %v1305_v33, %v2180_v28 }
 0x16e   : > { %v1307_v38 = vadd.f32 %v2165_v6, %v1306_v49  ;;  %v1439_v59 = vadd.f32 %v1438_v34, %v1376_v36 }
 0x170   : > { %v1308_v39 = vadd.f32 %v2175_v21, %v1307_v38  ;;  %v1440_v13 = vadd.f32 %v1439_v59, %v1377_v37 }
 0x172   : > { %v1309_v42 = vrot.slane %v1308_v39, 4  ;;  %v1441_v10 = vadd.f32 %v1440_v13, %v1378_v53 }
 0x174   : > { %v1310_v46 = vadd.f32 %v1309_v42, %v1308_v39  ;;  %v1442_v48 = vrot.slane %v1441_v10, 4 }
 0x176   : > { %v1311_v51 = vrot.slane %v1310_v46, 2  ;;  %v1443_v28 = vadd.f32 %v1442_v48, %v1441_v10 }
 0x178   : > { %v1312_v20 = vadd.f32 %v1311_v51, %v1310_v46  ;;  %v1444_v52 = vrot.slane %v1443_v28, 2 }
 0x17a   : > { %v1313_v5 = vrot.slane %v1312_v20, 1  ;;  %v1445_v6 = vadd.f32 %v1444_v52, %v1443_v28 }
 0x17c   : > { %v1314_v55 = vadd.f32 %v1313_v5, %v1312_v20  ;;  %v1446_v57 = vrot.slane %v1445_v6, 1 }
 0x17e   : > { %v1447_v21 = vadd.f32 %v1446_v57, %v1445_v6  ;;  %1449 = vst [vmem:[%s301_s25] sm:$0xff] %v1314_v55 }
 0x180   : > { %1451 = vst [vmem:[%s308_s28] sm:$0xff] %v1447_v21 }
 0x181 PF: > { %s15_s17 = sadd.s32 1, %s1910_s17   ;;  %s2306_s15 = smov %s1906_s16 }
 0x182   : > { %p12_p6 = scmp.ge.s32.totalorder %s15_s17, 4   ;;  %s2307_s16 = smov %s2309_s18 }
 0x184   :  { %14 = sbr.rel (!%p12_p6) target bundleno = 2 (0x2), region = 93 }

// kernel: dense_up_block_forward.24
= control target key start
LH: loop header
LB: loop body
LE: loop exit
PB: predicated region body
PF: predicated region fallthrough
CT: control target
= control target key end

     0   :  { %s2152_s15 = smov 0   ;;  %s2154_s16 = smov 0   ;;  %s2739_s0 = inlined_call_operand.vmem [shape: bf16[1024,256], index: 0, kind: input, shape index: {}]   ;;  %s2740_s1 = inlined_call_operand.vmem [shape: bf16[256,128], index: 1, kind: input, shape index: {}]   ;;  %s2741_s2 = inlined_call_operand.vmem [shape: f32[1024,128], index: 2, kind: output, shape index: {0}]   ;;  %s2742_s3 = inlined_call_operand.vmem [shape: f32[16,128], index: 3, kind: output, shape index: {1}]   ;;  %s2743_s4 = inlined_call_operand.vmem [shape: f32[16,128], index: 4, kind: output, shape index: {2}]  }
   0x1   :  { %s2156_s17 = smov 0  }
   0x2 LB: > { %s34_s18 = sadd.s32 1, %s2120_s16  ;;  %p1841_p0 = scmp.ge.s32.totalorder %s2124_s17, 1  ;;  %s2124_s17 = sphi %s2156_s17, %s15_s17   ;;  %s2120_s16 = sphi %s2154_s16, %s2745_s16   ;;  %s2116_s15 = sphi %s2152_s15, %s2744_s15  }
   0x3   : > { %p36_p1 = scmp.ge.s32.totalorder %s34_s18, 2  ;;  %p217_p2 = scmp.lt.s32.totalorder %s2124_s17, 3 }
   0x5   : > { %s2747_s18 = smov (%p36_p1, %s34_s18), 0  ;;  %p218_p3 = pnand %p1841_p0, %p217_p2 }
   0x6   : > { %s1842_s21 = sshll.u32 (!%p218_p3), %s2116_s15, 6  ;;  %p303_p5 = scmp.lt.s32.totalorder (!%p218_p3), %s2116_s15, 1 }
   0x7   : > { %221 = sbr.rel (%p218_p3) target bundleno = 475 (0x1db), region = 28  ;;  %p275_p4 = scmp.lt.s32.totalorder (!%p218_p3), %s1842_s21, 127 }
   0xc   : > { %v1990_v0 = vld [vmem:[%s2740_s1 + $0x38] sm:$0xff]   ;;  %v2126_v1 = vmov 0   ;;  %v1991_v2 = vld [vmem:[%s2740_s1 + $0x30] sm:$0xff]   ;;  %v1992_v3 = vld [vmem:[%s2740_s1 + $0x28] sm:$0xff]   ;;  %s2749_s21 = smov (!%p275_p4, %s1842_s21), 127  ;;  %s2751_s15 = smov (!%p303_p5, %s2116_s15), 1 }
   0xd   : > { %962 = vmatprep.subr.bf16.mxu0 %v2126_v1  ;;  %1932 = vmatprep.subr.bf16.mxu1 %v2126_v1  ;;  %v1993_v4 = vld [vmem:[%s2740_s1 + $0x20] sm:$0xff]   ;;  %s1931_s28 = sshll.u32 %s2749_s21, 3  ;;  %v1994_v5 = vld [vmem:[%s2740_s1 + $0x18] sm:$0xff]   ;;  %v1995_v7 = vld [vmem:[%s2740_s1 + $0x10] sm:$0xff]   ;;  %s1847_s21 = sshll.u32 %s2751_s15, 3 }
   0xe   : > { %963 = vmatpush1.bf16.msra.mxu0 %v1990_v0  ;;  %1948 = vmatpush1.bf16.msra.mxu1 %v1990_v0  ;;  %s2204_s7 = scalar_lea.vmem %s2739_s0, %s1931_s28  ;;  %v1996_v8 = vld [vmem:[%s2740_s1 + $0x8] sm:$0xff]   ;;  %v1997_v9 = vld [vmem:[%s2740_s1] sm:$0xff]   ;;  %v1998_v11 = vld [vmem:[%s2740_s1 + $0x78] sm:$0xff]   ;;  %s2332_s13 = scalar_lea.vmem %s2741_s2, %s1931_s28 }
   0xf   : > { %964 = vmatprep.subr.bf16.mxu0 %v2126_v1  ;;  %1933 = vmatprep.subr.bf16.mxu1 %v2126_v1  ;;  %v2008_v6 = vld [vmem:[%s2204_s7 + $0x4] ss:$8 sps:$4 sm:$0xff]   ;;  %v1999_v12 = vld [vmem:[%s2740_s1 + $0x70] sm:$0xff]   ;;  %v2002_v15 = vld [vmem:[%s2740_s1 + $0x58] sm:$0xff]   ;;  %s309_s14 = scalar_lea.vmem %s2742_s3, %s1847_s21  ;;  %s316_s22 = scalar_lea.vmem %s2743_s4, %s1847_s21 }
  0x10   : > { %994 = vmatprep.mubr.bf16.mxu0 %v2008_v6  ;;  %v2032_v10 = vld [vmem:[%s2204_s7 + $0x104] ss:$8 sps:$4 sm:$0xff]   ;;  %v2003_v16 = vld [vmem:[%s2740_s1 + $0x50] sm:$0xff]   ;;  %v2006_v19 = vld [vmem:[%s2204_s7] ss:$8 sps:$4 sm:$0xff]  }
  0x11   : > { %1122 = vmatprep.mubr.bf16.mxu1 %v2032_v10  ;;  %v2000_v13 = vld [vmem:[%s2740_s1 + $0x68] sm:$0xff]   ;;  %v2001_v14 = vld [vmem:[%s2740_s1 + $0x60] sm:$0xff]   ;;  %v2009_v21 = vld [vmem:[%s2204_s7 + $0x14] ss:$8 sps:$4 sm:$0xff]  }
  0x12   : > { %965 = vmatpush1.bf16.msra.mxu0 %v1991_v2  ;;  %1949 = vmatpush1.bf16.msra.mxu1 %v1991_v2  ;;  %v2004_v17 = vld [vmem:[%s2740_s1 + $0x48] sm:$0xff]   ;;  %v2005_v18 = vld [vmem:[%s2740_s1 + $0x40] sm:$0xff]   ;;  %v2036_v22 = vld [vmem:[%s2204_s7 + $0x114] ss:$8 sps:$4 sm:$0xff]  }
  0x13   : > { %966 = vmatprep.subr.bf16.mxu0 %v2126_v1  ;;  %1934 = vmatprep.subr.bf16.mxu1 %v2126_v1  ;;  %v2030_v20 = vld [vmem:[%s2204_s7 + $0x100] ss:$8 sps:$4 sm:$0xff]   ;;  %v2011_v23 = vld [vmem:[%s2204_s7 + $0x10] ss:$8 sps:$4 sm:$0xff]   ;;  %v2012_v25 = vld [vmem:[%s2204_s7 + $0x24] ss:$8 sps:$4 sm:$0xff]  }
  0x14   : > { %v2038_v24 = vld [vmem:[%s2204_s7 + $0x110] ss:$8 sps:$4 sm:$0xff]   ;;  %v2042_v26 = vld [vmem:[%s2204_s7 + $0x124] ss:$8 sps:$4 sm:$0xff]   ;;  %v2014_v27 = vld [vmem:[%s2204_s7 + $0x20] ss:$8 sps:$4 sm:$0xff]  }
  0x15   : > { %v2044_v28 = vld [vmem:[%s2204_s7 + $0x120] ss:$8 sps:$4 sm:$0xff]   ;;  %v2015_v29 = vld [vmem:[%s2204_s7 + $0x34] ss:$8 sps:$4 sm:$0xff]   ;;  %v2017_v31 = vld [vmem:[%s2204_s7 + $0x30] ss:$8 sps:$4 sm:$0xff]  }
  0x16   : > { %967 = vmatpush1.bf16.msra.mxu0 %v1992_v3  ;;  %1950 = vmatpush1.bf16.msra.mxu1 %v1992_v3  ;;  %v2048_v30 = vld [vmem:[%s2204_s7 + $0x134] ss:$8 sps:$4 sm:$0xff]   ;;  %v2050_v32 = vld [vmem:[%s2204_s7 + $0x130] ss:$8 sps:$4 sm:$0xff]   ;;  %v2018_v33 = vld [vmem:[%s2204_s7 + $0x44] ss:$8 sps:$4 sm:$0xff]  }
  0x17   : > { %968 = vmatprep.subr.bf16.mxu0 %v2126_v1  ;;  %1935 = vmatprep.subr.bf16.mxu1 %v2126_v1  ;;  %v2054_v34 = vld [vmem:[%s2204_s7 + $0x144] ss:$8 sps:$4 sm:$0xff]   ;;  %v2020_v35 = vld [vmem:[%s2204_s7 + $0x40] ss:$8 sps:$4 sm:$0xff]   ;;  %v2021_v37 = vld [vmem:[%s2204_s7 + $0x54] ss:$8 sps:$4 sm:$0xff]  }
  0x18   : > { %v2056_v36 = vld [vmem:[%s2204_s7 + $0x140] ss:$8 sps:$4 sm:$0xff]   ;;  %v2060_v38 = vld [vmem:[%s2204_s7 + $0x154] ss:$8 sps:$4 sm:$0xff]   ;;  %v2023_v39 = vld [vmem:[%s2204_s7 + $0x50] ss:$8 sps:$4 sm:$0xff]  }
  0x19   : > { %v2062_v40 = vld [vmem:[%s2204_s7 + $0x150] ss:$8 sps:$4 sm:$0xff]   ;;  %v2024_v41 = vld [vmem:[%s2204_s7 + $0x64] ss:$8 sps:$4 sm:$0xff]   ;;  %v2026_v43 = vld [vmem:[%s2204_s7 + $0x60] ss:$8 sps:$4 sm:$0xff]  }
  0x1a   : > { %969 = vmatpush1.bf16.msra.mxu0 %v1993_v4  ;;  %1951 = vmatpush1.bf16.msra.mxu1 %v1993_v4  ;;  %v2066_v42 = vld [vmem:[%s2204_s7 + $0x164] ss:$8 sps:$4 sm:$0xff]   ;;  %v2068_v44 = vld [vmem:[%s2204_s7 + $0x160] ss:$8 sps:$4 sm:$0xff]   ;;  %v2027_v45 = vld [vmem:[%s2204_s7 + $0x74] ss:$8 sps:$4 sm:$0xff]  }
  0x1b   : > { %970 = vmatprep.subr.bf16.mxu0 %v2126_v1  ;;  %1936 = vmatprep.subr.bf16.mxu1 %v2126_v1  ;;  %v2072_v46 = vld [vmem:[%s2204_s7 + $0x174] ss:$8 sps:$4 sm:$0xff]   ;;  %v2029_v47 = vld [vmem:[%s2204_s7 + $0x70] ss:$8 sps:$4 sm:$0xff]   ;;  %v2033_v49 = vld [vmem:[%s2204_s7 + $0x84] ss:$8 sps:$4 sm:$0xff]  }
  0x1c   : > { %v2074_v48 = vld [vmem:[%s2204_s7 + $0x170] ss:$8 sps:$4 sm:$0xff]   ;;  %v2078_v50 = vld [vmem:[%s2204_s7 + $0x184] ss:$8 sps:$4 sm:$0xff]   ;;  %v2035_v51 = vld [vmem:[%s2204_s7 + $0x80] ss:$8 sps:$4 sm:$0xff]  }
  0x1d   : > { %v2080_v52 = vld [vmem:[%s2204_s7 + $0x180] ss:$8 sps:$4 sm:$0xff]   ;;  %v2039_v53 = vld [vmem:[%s2204_s7 + $0x94] ss:$8 sps:$4 sm:$0xff]   ;;  %v2041_v55 = vld [vmem:[%s2204_s7 + $0x90] ss:$8 sps:$4 sm:$0xff]  }
  0x1e   : > { %971 = vmatpush1.bf16.msra.mxu0 %v1994_v5  ;;  %1952 = vmatpush1.bf16.msra.mxu1 %v1994_v5  ;;  %v2081_v54 = vld [vmem:[%s2204_s7 + $0x194] ss:$8 sps:$4 sm:$0xff]   ;;  %v2083_v56 = vld [vmem:[%s2204_s7 + $0x190] ss:$8 sps:$4 sm:$0xff]   ;;  %v2045_v57 = vld [vmem:[%s2204_s7 + $0xa4] ss:$8 sps:$4 sm:$0xff]  }
  0x1f   : > { %972 = vmatprep.subr.bf16.mxu0 %v2126_v1  ;;  %1937 = vmatprep.subr.bf16.mxu1 %v2126_v1  ;;  %v2084_v58 = vld [vmem:[%s2204_s7 + $0x1a4] ss:$8 sps:$4 sm:$0xff]   ;;  %v2047_v59 = vld [vmem:[%s2204_s7 + $0xa0] ss:$8 sps:$4 sm:$0xff]   ;;  %v2051_v61 = vld [vmem:[%s2204_s7 + $0xb4] ss:$8 sps:$4 sm:$0xff]  }
  0x20   : > { %v2086_v60 = vld [vmem:[%s2204_s7 + $0x1a0] ss:$8 sps:$4 sm:$0xff]   ;;  %v2087_v62 = vld [vmem:[%s2204_s7 + $0x1b4] ss:$8 sps:$4 sm:$0xff]   ;;  %v2053_v63 = vld [vmem:[%s2204_s7 + $0xb0] ss:$8 sps:$4 sm:$0xff]  }
  0x21   : > { %v2089_v0 = vld [vmem:[%s2204_s7 + $0x1b0] ss:$8 sps:$4 sm:$0xff]   ;;  %v2090_v2 = vld [vmem:[%s2204_s7 + $0x1c4] ss:$8 sps:$4 sm:$0xff]   ;;  %v2059_v3 = vld [vmem:[%s2204_s7 + $0xc0] ss:$8 sps:$4 sm:$0xff]  }
  0x22   : > { %973 = vmatpush1.bf16.msra.mxu0 %v1995_v7  ;;  %1953 = vmatpush1.bf16.msra.mxu1 %v1995_v7  ;;  %v2092_v4 = vld [vmem:[%s2204_s7 + $0x1c0] ss:$8 sps:$4 sm:$0xff]   ;;  %v2063_v5 = vld [vmem:[%s2204_s7 + $0xd4] ss:$8 sps:$4 sm:$0xff]   ;;  %v2065_v7 = vld [vmem:[%s2204_s7 + $0xd0] ss:$8 sps:$4 sm:$0xff]  }
  0x23   : > { %974 = vmatprep.subr.bf16.mxu0 %v2126_v1  ;;  %1938 = vmatprep.subr.bf16.mxu1 %v2126_v1  ;;  %v2093_v6 = vld [vmem:[%s2204_s7 + $0x1d4] ss:$8 sps:$4 sm:$0xff]   ;;  %v2096_v10 = vld [vmem:[%s2204_s7 + $0x1e4] ss:$8 sps:$4 sm:$0xff]  }
  0x26   : > { %975 = vmatpush1.bf16.msra.mxu0 %v1996_v8  ;;  %1954 = vmatpush1.bf16.msra.mxu1 %v1996_v8  ;;  %v2095_v8 = vld [vmem:[%s2204_s7 + $0x1d0] ss:$8 sps:$4 sm:$0xff]  }
  0x27   : > { %976 = vmatprep.subr.bf16.mxu0 %v2126_v1  ;;  %1939 = vmatprep.subr.bf16.mxu1 %v2126_v1 }
  0x2a   : > { %977 = vmatpush1.bf16.msra.mxu0 %v1997_v9  ;;  %1955 = vmatpush1.bf16.msra.mxu1 %v1997_v9  ;;  %v2069_v9 = vld [vmem:[%s2204_s7 + $0xe4] ss:$8 sps:$4 sm:$0xff]  }
  0x2b   : > { %978 = vmatprep.subr.bf16.mxu0 %v2126_v1  ;;  %1940 = vmatprep.subr.bf16.mxu1 %v2126_v1 }
  0x2e   : > { %979 = vmatpush2.bf16.msra.mxu0 %v1998_v11  ;;  %1956 = vmatpush2.bf16.msra.mxu1 %v1998_v11  ;;  %v2071_v11 = vld [vmem:[%s2204_s7 + $0xe0] ss:$8 sps:$4 sm:$0xff]  }
  0x2f   : > { %980 = vmatprep.subr.bf16.mxu0 %v2126_v1  ;;  %1941 = vmatprep.subr.bf16.mxu1 %v2126_v1 }
  0x32   : > { %981 = vmatpush2.bf16.msra.mxu0 %v1999_v12  ;;  %1957 = vmatpush2.bf16.msra.mxu1 %v1999_v12  ;;  %v2098_v12 = vld [vmem:[%s2204_s7 + $0x1e0] ss:$8 sps:$4 sm:$0xff]  }
  0x33   : > { %982 = vmatprep.subr.bf16.mxu0 %v2126_v1  ;;  %1942 = vmatprep.subr.bf16.mxu1 %v2126_v1 }
  0x36   : > { %983 = vmatpush2.bf16.msra.mxu0 %v2000_v13  ;;  %1958 = vmatpush2.bf16.msra.mxu1 %v2000_v13  ;;  %v2075_v13 = vld [vmem:[%s2204_s7 + $0xf4] ss:$8 sps:$4 sm:$0xff]  }
  0x37   : > { %984 = vmatprep.subr.bf16.mxu0 %v2126_v1  ;;  %1943 = vmatprep.subr.bf16.mxu1 %v2126_v1 }
  0x3a   : > { %985 = vmatpush2.bf16.msra.mxu0 %v2001_v14  ;;  %1959 = vmatpush2.bf16.msra.mxu1 %v2001_v14  ;;  %v2099_v14 = vld [vmem:[%s2204_s7 + $0x1f4] ss:$8 sps:$4 sm:$0xff]  }
  0x3b   : > { %986 = vmatprep.subr.bf16.mxu0 %v2126_v1  ;;  %1944 = vmatprep.subr.bf16.mxu1 %v2126_v1 }
  0x3e   : > { %987 = vmatpush2.bf16.msra.mxu0 %v2002_v15  ;;  %1960 = vmatpush2.bf16.msra.mxu1 %v2002_v15  ;;  %v2077_v15 = vld [vmem:[%s2204_s7 + $0xf0] ss:$8 sps:$4 sm:$0xff]  }
  0x3f   : > { %988 = vmatprep.subr.bf16.mxu0 %v2126_v1  ;;  %1945 = vmatprep.subr.bf16.mxu1 %v2126_v1 }
  0x42   : > { %989 = vmatpush2.bf16.msra.mxu0 %v2003_v16  ;;  %1961 = vmatpush2.bf16.msra.mxu1 %v2003_v16  ;;  %v2101_v16 = vld [vmem:[%s2204_s7 + $0x1f0] ss:$8 sps:$4 sm:$0xff]  }
  0x43   : > { %990 = vmatprep.subr.bf16.mxu0 %v2126_v1  ;;  %1946 = vmatprep.subr.bf16.mxu1 %v2126_v1 }
  0x46   : > { %991 = vmatpush2.bf16.msra.mxu0 %v2004_v17  ;;  %1962 = vmatpush2.bf16.msra.mxu1 %v2004_v17 }
  0x47   : > { %992 = vmatprep.subr.bf16.mxu0 %v2126_v1  ;;  %1947 = vmatprep.subr.bf16.mxu1 %v2126_v1  ;;  %v2057_v1 = vld [vmem:[%s2204_s7 + $0xc4] ss:$8 sps:$4 sm:$0xff]  }
  0x4a   : > { %993 = vmatpush2.bf16.msra.mxu0 %v2005_v18  ;;  %1963 = vmatpush2.bf16.msra.mxu1 %v2005_v18 }
  0x4d   : > { %995 = vmatmul.mubr.bf16.vlgmr.msra.gmra.mxu0 %v2006_v19  ;;  %1123 = vmatmul.mubr.bf16.vlgmr.msra.gmra.mxu1 %v2030_v20 }
  0x4e   : > { %1002 = vmatprep.mubr.bf16.mxu0 %v2009_v21  ;;  %1130 = vmatprep.mubr.bf16.mxu1 %v2036_v22 }
  0x55   : > { %1003 = vmatmul.mubr.bf16.gmra.mxu0 %v2011_v23  ;;  %1131 = vmatmul.mubr.bf16.gmra.mxu1 %v2038_v24 }
  0x56   : > { %1010 = vmatprep.mubr.bf16.mxu0 %v2012_v25  ;;  %1138 = vmatprep.mubr.bf16.mxu1 %v2042_v26 }
  0x5d   : > { %1011 = vmatmul.mubr.bf16.gmra.mxu0 %v2014_v27  ;;  %1139 = vmatmul.mubr.bf16.gmra.mxu1 %v2044_v28 }
  0x5e   : > { %1018 = vmatprep.mubr.bf16.mxu0 %v2015_v29  ;;  %1146 = vmatprep.mubr.bf16.mxu1 %v2048_v30 }
  0x65   : > { %1019 = vmatmul.mubr.bf16.gmra.mxu0 %v2017_v31  ;;  %1147 = vmatmul.mubr.bf16.gmra.mxu1 %v2050_v32 }
  0x66   : > { %1026 = vmatprep.mubr.bf16.mxu0 %v2018_v33  ;;  %1154 = vmatprep.mubr.bf16.mxu1 %v2054_v34 }
  0x6d   : > { %1027 = vmatmul.mubr.bf16.gmra.mxu0 %v2020_v35  ;;  %1155 = vmatmul.mubr.bf16.gmra.mxu1 %v2056_v36 }
  0x6e   : > { %1034 = vmatprep.mubr.bf16.mxu0 %v2021_v37  ;;  %1162 = vmatprep.mubr.bf16.mxu1 %v2060_v38 }
  0x75   : > { %1035 = vmatmul.mubr.bf16.gmra.mxu0 %v2023_v39  ;;  %1163 = vmatmul.mubr.bf16.gmra.mxu1 %v2062_v40 }
  0x76   : > { %1042 = vmatprep.mubr.bf16.mxu0 %v2024_v41  ;;  %1170 = vmatprep.mubr.bf16.mxu1 %v2066_v42 }
  0x7d   : > { %1043 = vmatmul.mubr.bf16.gmra.mxu0 %v2026_v43  ;;  %1171 = vmatmul.mubr.bf16.gmra.mxu1 %v2068_v44 }
  0x7e   : > { %1050 = vmatprep.mubr.bf16.mxu0 %v2027_v45  ;;  %1178 = vmatprep.mubr.bf16.mxu1 %v2072_v46 }
  0x85   : > { %1051 = vmatmul.mubr.bf16.gmra.mxu0 %v2029_v47  ;;  %1179 = vmatmul.mubr.bf16.gmra.mxu1 %v2074_v48 }
  0x86   : > { %1058 = vmatprep.mubr.bf16.mxu0 %v2033_v49  ;;  %1186 = vmatprep.mubr.bf16.mxu1 %v2078_v50 }
  0x8d   : > { %1059 = vmatmul.mubr.bf16.gmra.mxu0 %v2035_v51  ;;  %1187 = vmatmul.mubr.bf16.gmra.mxu1 %v2080_v52 }
  0x8e   : > { %1066 = vmatprep.mubr.bf16.mxu0 %v2039_v53  ;;  %1194 = vmatprep.mubr.bf16.mxu1 %v2081_v54 }
  0x95   : > { %1067 = vmatmul.mubr.bf16.gmra.mxu0 %v2041_v55  ;;  %1195 = vmatmul.mubr.bf16.gmra.mxu1 %v2083_v56 }
  0x96   : > { %1074 = vmatprep.mubr.bf16.mxu0 %v2045_v57  ;;  %1202 = vmatprep.mubr.bf16.mxu1 %v2084_v58 }
  0x9d   : > { %1075 = vmatmul.mubr.bf16.gmra.mxu0 %v2047_v59  ;;  %1203 = vmatmul.mubr.bf16.gmra.mxu1 %v2086_v60 }
  0x9e   : > { %1082 = vmatprep.mubr.bf16.mxu0 %v2051_v61  ;;  %1210 = vmatprep.mubr.bf16.mxu1 %v2087_v62 }
  0xa5   : > { %1083 = vmatmul.mubr.bf16.gmra.mxu0 %v2053_v63  ;;  %1211 = vmatmul.mubr.bf16.gmra.mxu1 %v2089_v0 }
  0xa6   : > { %1090 = vmatprep.mubr.bf16.mxu0 %v2057_v1  ;;  %1218 = vmatprep.mubr.bf16.mxu1 %v2090_v2 }
  0xad   : > { %1091 = vmatmul.mubr.bf16.gmra.mxu0 %v2059_v3  ;;  %1219 = vmatmul.mubr.bf16.gmra.mxu1 %v2092_v4 }
  0xae   : > { %1098 = vmatprep.mubr.bf16.mxu0 %v2063_v5  ;;  %1226 = vmatprep.mubr.bf16.mxu1 %v2093_v6 }
  0xb5   : > { %1099 = vmatmul.mubr.bf16.gmra.mxu0 %v2065_v7  ;;  %1227 = vmatmul.mubr.bf16.gmra.mxu1 %v2095_v8 }
  0xb6   : > { %1106 = vmatprep.mubr.bf16.mxu0 %v2069_v9  ;;  %1234 = vmatprep.mubr.bf16.mxu1 %v2096_v10 }
  0xbd   : > { %1107 = vmatmul.mubr.bf16.gmra.mxu0 %v2071_v11  ;;  %1235 = vmatmul.mubr.bf16.gmra.mxu1 %v2098_v12 }
  0xbe   : > { %1114 = vmatprep.mubr.bf16.mxu0 %v2075_v13  ;;  %1242 = vmatprep.mubr.bf16.mxu1 %v2099_v14 }
  0xc5   : > { %1115 = vmatmul.mubr.bf16.gmra.mxu0 %v2077_v15  ;;  %1243 = vmatmul.mubr.bf16.gmra.mxu1 %v2101_v16 }
 0x10d   : > { %v2334_v17 = vpop.f32.mrf.mxu0  ;;  %v2336_v18 = vpop.f32.mrf.mxu1 }
 0x10e   : > { %1315 = vst [vmem:[%s2332_s13] sm:$0xff] %v2334_v17  ;;  %1347 = vst [vmem:[%s2332_s13 + $0x100] sm:$0xff] %v2336_v18 }
 0x10f   : > { %v998_v19 = vpop.f32.mrf.mxu0  ;;  %v1126_v20 = vpop.f32.mrf.mxu1 }
 0x111   : > { %v2342_v21 = vpop.f32.mrf.mxu0  ;;  %v2344_v22 = vpop.f32.mrf.mxu1 }
 0x112   : > { %1316 = vst [vmem:[%s2332_s13 + $0x8] sm:$0xff] %v2342_v21  ;;  %1348 = vst [vmem:[%s2332_s13 + $0x108] sm:$0xff] %v2344_v22  ;;  %v1516_v19 = vmul.f32 %v2342_v21, %v2342_v21 }
 0x113   : > { %v1001_v23 = vpop.f32.mrf.mxu0  ;;  %v1129_v24 = vpop.f32.mrf.mxu1 }
 0x114   : > { %v1515_v24 = vmul.f32 %v2334_v17, %v2334_v17 }
 0x115   : > { %v2350_v25 = vpop.f32.mrf.mxu0  ;;  %v2352_v26 = vpop.f32.mrf.mxu1 }
 0x116   : > { %1317 = vst [vmem:[%s2332_s13 + $0x10] sm:$0xff] %v2350_v25  ;;  %1349 = vst [vmem:[%s2332_s13 + $0x110] sm:$0xff] %v2352_v26 }
 0x117   : > { %v1006_v27 = vpop.f32.mrf.mxu0  ;;  %v1134_v28 = vpop.f32.mrf.mxu1 }
 0x118   : > { %v1517_v27 = vmul.f32 %v2350_v25, %v2350_v25 }
 0x119   : > { %v2358_v29 = vpop.f32.mrf.mxu0  ;;  %v2360_v30 = vpop.f32.mrf.mxu1 }
 0x11a   : > { %1318 = vst [vmem:[%s2332_s13 + $0x18] sm:$0xff] %v2358_v29  ;;  %1350 = vst [vmem:[%s2332_s13 + $0x118] sm:$0xff] %v2360_v30 }
 0x11b   : > { %v1009_v31 = vpop.f32.mrf.mxu0  ;;  %v1137_v32 = vpop.f32.mrf.mxu1 }
 0x11c   : > { %v1446_v32 = vadd.f32 %v2342_v21, %v2334_v17 }
 0x11d   : > { %v2366_v33 = vpop.f32.mrf.mxu0  ;;  %v2368_v34 = vpop.f32.mrf.mxu1 }
 0x11e   : > { %1319 = vst [vmem:[%s2332_s13 + $0x20] sm:$0xff] %v2366_v33  ;;  %1351 = vst [vmem:[%s2332_s13 + $0x120] sm:$0xff] %v2368_v34 }
 0x11f   : > { %v1014_v35 = vpop.f32.mrf.mxu0  ;;  %v1142_v36 = vpop.f32.mrf.mxu1 }
 0x120   : > { %v1579_v35 = vadd.f32 %v1516_v19, %v1515_v24  ;;  %v1518_v36 = vmul.f32 %v2358_v29, %v2358_v29 }
 0x121   : > { %v2374_v37 = vpop.f32.mrf.mxu0  ;;  %v2376_v38 = vpop.f32.mrf.mxu1 }
 0x122   : > { %1320 = vst [vmem:[%s2332_s13 + $0x28] sm:$0xff] %v2374_v37  ;;  %1352 = vst [vmem:[%s2332_s13 + $0x128] sm:$0xff] %v2376_v38 }
 0x123   : > { %v1017_v39 = vpop.f32.mrf.mxu0  ;;  %v1145_v40 = vpop.f32.mrf.mxu1 }
 0x125   : > { %v2382_v41 = vpop.f32.mrf.mxu0  ;;  %v2384_v42 = vpop.f32.mrf.mxu1 }
 0x126   : > { %1321 = vst [vmem:[%s2332_s13 + $0x30] sm:$0xff] %v2382_v41  ;;  %1353 = vst [vmem:[%s2332_s13 + $0x130] sm:$0xff] %v2384_v42 }
 0x127   : > { %v1022_v43 = vpop.f32.mrf.mxu0  ;;  %v1150_v44 = vpop.f32.mrf.mxu1 }
 0x128   : > { %v1447_v43 = vadd.f32 %v1446_v32, %v2350_v25  ;;  %v1580_v44 = vadd.f32 %v1579_v35, %v1517_v27 }
 0x129   : > { %v2390_v45 = vpop.f32.mrf.mxu0  ;;  %v2392_v46 = vpop.f32.mrf.mxu1 }
 0x12a   : > { %1322 = vst [vmem:[%s2332_s13 + $0x38] sm:$0xff] %v2390_v45  ;;  %1354 = vst [vmem:[%s2332_s13 + $0x138] sm:$0xff] %v2392_v46 }
 0x12b   : > { %v1025_v47 = vpop.f32.mrf.mxu0  ;;  %v1153_v48 = vpop.f32.mrf.mxu1 }
 0x12c   : > { %v1519_v47 = vmul.f32 %v2366_v33, %v2366_v33  ;;  %v1448_v48 = vadd.f32 %v1447_v43, %v2358_v29 }
 0x12d   : > { %v2398_v49 = vpop.f32.mrf.mxu0  ;;  %v2400_v50 = vpop.f32.mrf.mxu1 }
 0x12e   : > { %1323 = vst [vmem:[%s2332_s13 + $0x40] sm:$0xff] %v2398_v49  ;;  %1355 = vst [vmem:[%s2332_s13 + $0x140] sm:$0xff] %v2400_v50 }
 0x12f   : > { %v1030_v51 = vpop.f32.mrf.mxu0  ;;  %v1158_v52 = vpop.f32.mrf.mxu1 }
 0x130   : > { %v1581_v51 = vadd.f32 %v1580_v44, %v1518_v36  ;;  %v1520_v52 = vmul.f32 %v2374_v37, %v2374_v37 }
 0x131   : > { %v2406_v53 = vpop.f32.mrf.mxu0  ;;  %v2408_v54 = vpop.f32.mrf.mxu1 }
 0x132   : > { %1324 = vst [vmem:[%s2332_s13 + $0x48] sm:$0xff] %v2406_v53  ;;  %1356 = vst [vmem:[%s2332_s13 + $0x148] sm:$0xff] %v2408_v54  ;;  %v1524_v24 = vmul.f32 %v2406_v53, %v2406_v53 }
 0x133   : > { %v1033_v55 = vpop.f32.mrf.mxu0  ;;  %v1161_v56 = vpop.f32.mrf.mxu1 }
 0x134   : > { %v1449_v56 = vadd.f32 %v1448_v48, %v2366_v33 }
 0x135   : > { %v2414_v57 = vpop.f32.mrf.mxu0  ;;  %v2416_v58 = vpop.f32.mrf.mxu1 }
 0x136   : > { %1325 = vst [vmem:[%s2332_s13 + $0x50] sm:$0xff] %v2414_v57  ;;  %1357 = vst [vmem:[%s2332_s13 + $0x150] sm:$0xff] %v2416_v58  ;;  %v1525_v32 = vmul.f32 %v2414_v57, %v2414_v57 }
 0x137   : > { %v1038_v59 = vpop.f32.mrf.mxu0  ;;  %v1166_v60 = vpop.f32.mrf.mxu1 }
 0x138   : > { %v1582_v59 = vadd.f32 %v1581_v51, %v1519_v47  ;;  %v1521_v60 = vmul.f32 %v2382_v41, %v2382_v41 }
 0x139   : > { %v2422_v61 = vpop.f32.mrf.mxu0  ;;  %v2424_v62 = vpop.f32.mrf.mxu1 }
 0x13a   : > { %1326 = vst [vmem:[%s2332_s13 + $0x58] sm:$0xff] %v2422_v61  ;;  %1358 = vst [vmem:[%s2332_s13 + $0x158] sm:$0xff] %v2424_v62  ;;  %v1526_v44 = vmul.f32 %v2422_v61, %v2422_v61 }
 0x13b   : > { %v1041_v63 = vpop.f32.mrf.mxu0  ;;  %v1169_v0 = vpop.f32.mrf.mxu1 }
 0x13c   : > { %v1450_v0 = vadd.f32 %v1449_v56, %v2374_v37 }
 0x13d   : > { %v2430_v1 = vpop.f32.mrf.mxu0  ;;  %v2432_v2 = vpop.f32.mrf.mxu1 }
 0x13e   : > { %1327 = vst [vmem:[%s2332_s13 + $0x60] sm:$0xff] %v2430_v1  ;;  %1359 = vst [vmem:[%s2332_s13 + $0x160] sm:$0xff] %v2432_v2  ;;  %v1527_v48 = vmul.f32 %v2430_v1, %v2430_v1 }
 0x13f   : > { %v1046_v3 = vpop.f32.mrf.mxu0  ;;  %v1174_v4 = vpop.f32.mrf.mxu1 }
 0x140   : > { %v1583_v3 = vadd.f32 %v1582_v59, %v1520_v52  ;;  %v1522_v4 = vmul.f32 %v2390_v45, %v2390_v45 }
 0x141   : > { %v2438_v5 = vpop.f32.mrf.mxu0  ;;  %v2440_v6 = vpop.f32.mrf.mxu1 }
 0x142   : > { %1328 = vst [vmem:[%s2332_s13 + $0x68] sm:$0xff] %v2438_v5  ;;  %1360 = vst [vmem:[%s2332_s13 + $0x168] sm:$0xff] %v2440_v6  ;;  %v1528_v59 = vmul.f32 %v2438_v5, %v2438_v5 }
 0x143   : > { %v1049_v7 = vpop.f32.mrf.mxu0  ;;  %v1177_v8 = vpop.f32.mrf.mxu1 }
 0x144   : > { %v1451_v8 = vadd.f32 %v1450_v0, %v2382_v41 }
 0x145   : > { %v2446_v9 = vpop.f32.mrf.mxu0  ;;  %v2448_v10 = vpop.f32.mrf.mxu1 }
 0x146   : > { %1329 = vst [vmem:[%s2332_s13 + $0x70] sm:$0xff] %v2446_v9  ;;  %1361 = vst [vmem:[%s2332_s13 + $0x170] sm:$0xff] %v2448_v10  ;;  %v1529_v0 = vmul.f32 %v2446_v9, %v2446_v9 }
 0x147   : > { %v1054_v11 = vpop.f32.mrf.mxu0  ;;  %v1182_v12 = vpop.f32.mrf.mxu1 }
 0x148   : > { %v1584_v11 = vadd.f32 %v1583_v3, %v1521_v60  ;;  %v1523_v12 = vmul.f32 %v2398_v49, %v2398_v49 }
 0x149   : > { %v2454_v13 = vpop.f32.mrf.mxu0  ;;  %v2456_v14 = vpop.f32.mrf.mxu1 }
 0x14a   : > { %1330 = vst [vmem:[%s2332_s13 + $0x78] sm:$0xff] %v2454_v13  ;;  %1362 = vst [vmem:[%s2332_s13 + $0x178] sm:$0xff] %v2456_v14  ;;  %v1585_v19 = vadd.f32 %v1584_v11, %v1522_v4  ;;  %v1530_v11 = vmul.f32 %v2454_v13, %v2454_v13 }
 0x14b   : > { %v1057_v15 = vpop.f32.mrf.mxu0  ;;  %v1185_v16 = vpop.f32.mrf.mxu1 }
 0x14c   : > { %v1452_v16 = vadd.f32 %v1451_v8, %v2390_v45 }
 0x14d   : > { %v2464_v20 = vpop.f32.mrf.mxu0  ;;  %v2466_v23 = vpop.f32.mrf.mxu1 }
 0x14e   : > { %1331 = vst [vmem:[%s2332_s13 + $0x80] sm:$0xff] %v2464_v20  ;;  %1363 = vst [vmem:[%s2332_s13 + $0x180] sm:$0xff] %v2466_v23 }
 0x14f   : > { %v1062_v28 = vpop.f32.mrf.mxu0  ;;  %v1190_v31 = vpop.f32.mrf.mxu1 }
 0x150   : > { %v1453_v28 = vadd.f32 %v1452_v16, %v2398_v49  ;;  %v1586_v31 = vadd.f32 %v1585_v19, %v1523_v12  ;;  %v1531_v16 = vmul.f32 %v2464_v20, %v2464_v20 }
 0x151   : > { %v2480_v39 = vpop.f32.mrf.mxu0  ;;  %v2482_v40 = vpop.f32.mrf.mxu1 }
 0x152   : > { %1332 = vst [vmem:[%s2332_s13 + $0x88] sm:$0xff] %v2480_v39  ;;  %1364 = vst [vmem:[%s2332_s13 + $0x188] sm:$0xff] %v2482_v40  ;;  %v1454_v36 = vadd.f32 %v1453_v28, %v2406_v53  ;;  %v1587_v43 = vadd.f32 %v1586_v31, %v1524_v24  ;;  %v1532_v31 = vmul.f32 %v2480_v39, %v2480_v39 }
 0x153   : > { %v1065_v17 = vpop.f32.mrf.mxu0  ;;  %v1193_v21 = vpop.f32.mrf.mxu1 }
 0x154   : > { %v1455_v17 = vadd.f32 %v1454_v36, %v2414_v57  ;;  %v1588_v21 = vadd.f32 %v1587_v43, %v1525_v32 }
 0x155   : > { %v2494_v55 = vpop.f32.mrf.mxu0  ;;  %v2496_v25 = vpop.f32.mrf.mxu1 }
 0x156   : > { %1333 = vst [vmem:[%s2332_s13 + $0x90] sm:$0xff] %v2494_v55  ;;  %1365 = vst [vmem:[%s2332_s13 + $0x190] sm:$0xff] %v2496_v25  ;;  %v1456_v52 = vadd.f32 %v1455_v17, %v2422_v61  ;;  %v1589_v56 = vadd.f32 %v1588_v21, %v1526_v44  ;;  %v1533_v36 = vmul.f32 %v2494_v55, %v2494_v55 }
 0x157   : > { %v1070_v29 = vpop.f32.mrf.mxu0  ;;  %v1198_v63 = vpop.f32.mrf.mxu1 }
 0x158   : > { %v1457_v29 = vadd.f32 %v1456_v52, %v2430_v1  ;;  %v1590_v63 = vadd.f32 %v1589_v56, %v1527_v48 }
 0x159   : > { %v2508_v7 = vpop.f32.mrf.mxu0  ;;  %v2510_v33 = vpop.f32.mrf.mxu1 }
 0x15a   : > { %1334 = vst [vmem:[%s2332_s13 + $0x98] sm:$0xff] %v2508_v7  ;;  %1366 = vst [vmem:[%s2332_s13 + $0x198] sm:$0xff] %v2510_v33  ;;  %v1458_v4 = vadd.f32 %v1457_v29, %v2438_v5  ;;  %v1591_v8 = vadd.f32 %v1590_v63, %v1528_v59  ;;  %v1534_v21 = vmul.f32 %v2508_v7, %v2508_v7 }
 0x15b   : > { %v1073_v37 = vpop.f32.mrf.mxu0  ;;  %v1201_v15 = vpop.f32.mrf.mxu1 }
 0x15c   : > { %v1459_v1 = vadd.f32 %v1458_v4, %v2446_v9  ;;  %v1592_v15 = vadd.f32 %v1591_v8, %v1529_v0 }
 0x15d   : > { %v2522_v27 = vpop.f32.mrf.mxu0  ;;  %v2524_v41 = vpop.f32.mrf.mxu1 }
 0x15e   : > { %1335 = vst [vmem:[%s2332_s13 + $0xa0] sm:$0xff] %v2522_v27  ;;  %1367 = vst [vmem:[%s2332_s13 + $0x1a0] sm:$0xff] %v2524_v41  ;;  %v1460_v24 = vadd.f32 %v1459_v1, %v2454_v13  ;;  %v1593_v28 = vadd.f32 %v1592_v15, %v1530_v11  ;;  %v1535_v52 = vmul.f32 %v2522_v27, %v2522_v27 }
 0x15f   : > { %v1078_v45 = vpop.f32.mrf.mxu0  ;;  %v1206_v35 = vpop.f32.mrf.mxu1 }
 0x160   : > { %v1461_v9 = vadd.f32 %v1460_v24, %v2464_v20  ;;  %v1594_v35 = vadd.f32 %v1593_v28, %v1531_v16 }
 0x161   : > { %v2536_v47 = vpop.f32.mrf.mxu0  ;;  %v2538_v49 = vpop.f32.mrf.mxu1 }
 0x162   : > { %1336 = vst [vmem:[%s2332_s13 + $0xa8] sm:$0xff] %v2536_v47  ;;  %1368 = vst [vmem:[%s2332_s13 + $0x1a8] sm:$0xff] %v2538_v49  ;;  %v1462_v44 = vadd.f32 %v1461_v9, %v2480_v39  ;;  %v1595_v17 = vadd.f32 %v1594_v35, %v1532_v31  ;;  %v1536_v63 = vmul.f32 %v2536_v47, %v2536_v47 }
 0x163   : > { %v1081_v53 = vpop.f32.mrf.mxu0  ;;  %v1209_v51 = vpop.f32.mrf.mxu1 }
 0x164   : > { %v1463_v20 = vadd.f32 %v1462_v44, %v2494_v55  ;;  %v1596_v51 = vadd.f32 %v1595_v17, %v1533_v36 }
 0x165   : > { %v1084_v60 = vpop.f32.mrf.mxu0  ;;  %v2550_v57 = vpop.f32.mrf.mxu1 }
 0x166   : > { %1337 = vst [vmem:[%s2332_s13 + $0xb0] sm:$0xff] %v1084_v60  ;;  %1369 = vst [vmem:[%s2332_s13 + $0x1b0] sm:$0xff] %v2550_v57  ;;  %v1464_v59 = vadd.f32 %v1463_v20, %v2508_v7  ;;  %v1597_v29 = vadd.f32 %v1596_v51, %v1534_v21  ;;  %v1537_v4 = vmul.f32 %v1084_v60, %v1084_v60 }
 0x167   : > { %v1086_v3 = vpop.f32.mrf.mxu0  ;;  %v1214_v61 = vpop.f32.mrf.mxu1 }
 0x168   : > { %v1465_v55 = vadd.f32 %v1464_v59, %v2522_v27  ;;  %v1598_v61 = vadd.f32 %v1597_v29, %v1535_v52 }
 0x169   : > { %v1087_v12 = vpop.f32.mrf.mxu0  ;;  %v2561_v37 = vpop.f32.mrf.mxu1 }
 0x16a   : > { %1338 = vst [vmem:[%s2332_s13 + $0xb8] sm:$0xff] %v1087_v12  ;;  %1370 = vst [vmem:[%s2332_s13 + $0x1b8] sm:$0xff] %v2561_v37  ;;  %v1466_v7 = vadd.f32 %v1465_v55, %v2536_v47  ;;  %v1599_v1 = vadd.f32 %v1598_v61, %v1536_v63  ;;  %v1538_v15 = vmul.f32 %v1087_v12, %v1087_v12 }
 0x16b   : > { %v1089_v19 = vpop.f32.mrf.mxu0  ;;  %v1217_v5 = vpop.f32.mrf.mxu1 }
 0x16c   : > { %v1467_v5 = vadd.f32 %v1466_v7, %v1084_v60  ;;  %v1600_v24 = vadd.f32 %v1599_v1, %v1537_v4 }
 0x16d   : > { %v1092_v32 = vpop.f32.mrf.mxu0  ;;  %v2572_v45 = vpop.f32.mrf.mxu1 }
 0x16e   : > { %1339 = vst [vmem:[%s2332_s13 + $0xc0] sm:$0xff] %v1092_v32  ;;  %1371 = vst [vmem:[%s2332_s13 + $0x1c0] sm:$0xff] %v2572_v45  ;;  %v1539_v28 = vmul.f32 %v1092_v32, %v1092_v32  ;;  %v1468_v9 = vadd.f32 %v1467_v5, %v1087_v12  ;;  %v1601_v47 = vadd.f32 %v1600_v24, %v1538_v15 }
 0x16f   : > { %v1094_v43 = vpop.f32.mrf.mxu0  ;;  %v1222_v13 = vpop.f32.mrf.mxu1 }
 0x170   : > { %v1469_v13 = vadd.f32 %v1468_v9, %v1092_v32  ;;  %v1602_v44 = vadd.f32 %v1601_v47, %v1539_v28 }
 0x171   : > { %v1095_v48 = vpop.f32.mrf.mxu0  ;;  %v2583_v53 = vpop.f32.mrf.mxu1 }
 0x172   : > { %1340 = vst [vmem:[%s2332_s13 + $0xc8] sm:$0xff] %v1095_v48  ;;  %1372 = vst [vmem:[%s2332_s13 + $0x1c8] sm:$0xff] %v2583_v53  ;;  %v1540_v35 = vmul.f32 %v1095_v48, %v1095_v48  ;;  %v1470_v20 = vadd.f32 %v1469_v13, %v1095_v48  ;;  %v1547_v13 = vmul.f32 %v2336_v18, %v2336_v18 }
 0x173   : > { %v1097_v56 = vpop.f32.mrf.mxu0  ;;  %v1225_v39 = vpop.f32.mrf.mxu1 }
 0x174   : > { %v1603_v12 = vadd.f32 %v1602_v44, %v1540_v35 }
 0x175   : > { %v1100_v0 = vpop.f32.mrf.mxu0  ;;  %v2594_v3 = vpop.f32.mrf.mxu1 }
 0x176   : > { %1341 = vst [vmem:[%s2332_s13 + $0xd0] sm:$0xff] %v1100_v0  ;;  %1373 = vst [vmem:[%s2332_s13 + $0x1d0] sm:$0xff] %v2594_v3  ;;  %v1541_v17 = vmul.f32 %v1100_v0, %v1100_v0  ;;  %v1471_v39 = vadd.f32 %v1470_v20, %v1100_v0 }
 0x177   : > { %v1102_v8 = vpop.f32.mrf.mxu0  ;;  %v1230_v11 = vpop.f32.mrf.mxu1 }
 0x178   : > { %v1604_v59 = vadd.f32 %v1603_v12, %v1541_v17  ;;  %v1549_v12 = vmul.f32 %v2352_v26, %v2352_v26 }
 0x179   : > { %v1103_v16 = vpop.f32.mrf.mxu0  ;;  %v2601_v19 = vpop.f32.mrf.mxu1 }
 0x17a   : > { %1342 = vst [vmem:[%s2332_s13 + $0xd8] sm:$0xff] %v1103_v16  ;;  %1374 = vst [vmem:[%s2332_s13 + $0x1d8] sm:$0xff] %v2601_v19  ;;  %v1542_v51 = vmul.f32 %v1103_v16, %v1103_v16  ;;  %v1472_v63 = vadd.f32 %v1471_v39, %v1103_v16  ;;  %v1550_v39 = vmul.f32 %v2360_v30, %v2360_v30 }
 0x17b   : > { %v1105_v27 = vpop.f32.mrf.mxu0  ;;  %v1233_v31 = vpop.f32.mrf.mxu1 }
 0x17c   : > { %v1605_v48 = vadd.f32 %v1604_v59, %v1542_v51 }
 0x17d   : > { %v1108_v36 = vpop.f32.mrf.mxu0  ;;  %v2606_v43 = vpop.f32.mrf.mxu1 }
 0x17e   : > { %1343 = vst [vmem:[%s2332_s13 + $0xe0] sm:$0xff] %v1108_v36  ;;  %1375 = vst [vmem:[%s2332_s13 + $0x1e0] sm:$0xff] %v2606_v43  ;;  %v1543_v55 = vmul.f32 %v1108_v36, %v1108_v36  ;;  %v1473_v8 = vadd.f32 %v1472_v63, %v1108_v36 }
 0x17f   : > { %v1110_v60 = vpop.f32.mrf.mxu0  ;;  %v1238_v21 = vpop.f32.mrf.mxu1 }
 0x180   : > { %v1606_v0 = vadd.f32 %v1605_v48, %v1543_v55  ;;  %v1548_v60 = vmul.f32 %v2344_v22, %v2344_v22 }
 0x181   : > { %v1111_v52 = vpop.f32.mrf.mxu0  ;;  %v2611_v56 = vpop.f32.mrf.mxu1 }
 0x182   : > { %1344 = vst [vmem:[%s2332_s13 + $0xe8] sm:$0xff] %v1111_v52  ;;  %1376 = vst [vmem:[%s2332_s13 + $0x1e8] sm:$0xff] %v2611_v56  ;;  %v1544_v11 = vmul.f32 %v1111_v52, %v1111_v52  ;;  %v1474_v15 = vadd.f32 %v1473_v8, %v1111_v52 }
 0x183   : > { %v1113_v29 = vpop.f32.mrf.mxu0  ;;  %v1241_v32 = vpop.f32.mrf.mxu1 }
 0x184   : > { %v1607_v28 = vadd.f32 %v1606_v0, %v1544_v11 }
 0x185   : > { %v1116_v61 = vpop.f32.mrf.mxu0  ;;  %v2616_v4 = vpop.f32.mrf.mxu1 }
 0x186   : > { %1345 = vst [vmem:[%s2332_s13 + $0xf0] sm:$0xff] %v1116_v61  ;;  %v1545_v5 = vmul.f32 %v1116_v61, %v1116_v61  ;;  %1377 = vst [vmem:[%s2332_s13 + $0x1f0] sm:$0xff] %v2616_v4  ;;  %v1475_v27 = vadd.f32 %v1474_v15, %v1116_v61 }
 0x187   : > { %v1118_v7 = vpop.f32.mrf.mxu0  ;;  %v1246_v1 = vpop.f32.mrf.mxu1 }
 0x188   : > { %v1608_v47 = vadd.f32 %v1607_v28, %v1545_v5 }
 0x189   : > { %v1119_v16 = vpop.f32.mrf.mxu0  ;;  %v2621_v24 = vpop.f32.mrf.mxu1 }
 0x18a   : > { %1346 = vst [vmem:[%s2332_s13 + $0xf8] sm:$0xff] %v1119_v16  ;;  %v1476_v35 = vadd.f32 %v1475_v27, %v1119_v16  ;;  %v1546_v36 = vmul.f32 %v1119_v16, %v1119_v16  ;;  %1378 = vst [vmem:[%s2332_s13 + $0x1f8] sm:$0xff] %v2621_v24 }
 0x18b   : > { %v1121_v31 = vpop.f32.mrf.mxu0  ;;  %v1249_v9 = vpop.f32.mrf.mxu1 }
 0x18c   : > { %v1477_v44 = vadd.f32 %v1476_v35, %v2336_v18  ;;  %v1609_v17 = vadd.f32 %v1608_v47, %v1546_v36  ;;  %v1551_v18 = vmul.f32 %v2368_v34, %v2368_v34 }
 0x18e   : > { %v1478_v21 = vadd.f32 %v1477_v44, %v2344_v22  ;;  %v1610_v20 = vadd.f32 %v1609_v17, %v1547_v13  ;;  %v1552_v22 = vmul.f32 %v2376_v38, %v2376_v38 }
 0x190   : > { %v1479_v51 = vadd.f32 %v1478_v21, %v2352_v26  ;;  %v1611_v52 = vadd.f32 %v1610_v20, %v1548_v60  ;;  %v1553_v26 = vmul.f32 %v2384_v42, %v2384_v42 }
 0x192   : > { %v1480_v59 = vadd.f32 %v1479_v51, %v2360_v30  ;;  %v1612_v29 = vadd.f32 %v1611_v52, %v1549_v12  ;;  %v1554_v30 = vmul.f32 %v2392_v46, %v2392_v46  ;;  %v1564_v12 = vmul.f32 %v2482_v40, %v2482_v40 }
 0x194   : > { %v1481_v32 = vadd.f32 %v1480_v59, %v2368_v34  ;;  %v1613_v63 = vadd.f32 %v1612_v29, %v1550_v39  ;;  %v1555_v34 = vmul.f32 %v2400_v50, %v2400_v50  ;;  %v1565_v39 = vmul.f32 %v2496_v25, %v2496_v25 }
 0x195   : > { %v1566_v29 = vmul.f32 %v2510_v33, %v2510_v33 }
 0x196   : > { %v1482_v55 = vadd.f32 %v1481_v32, %v2376_v38  ;;  %v1614_v48 = vadd.f32 %v1613_v63, %v1551_v18  ;;  %v1556_v38 = vmul.f32 %v2408_v54, %v2408_v54  ;;  %v1567_v32 = vmul.f32 %v2524_v41, %v2524_v41 }
 0x198   : > { %v1483_v61 = vadd.f32 %v1482_v55, %v2384_v42  ;;  %v1615_v8 = vadd.f32 %v1614_v48, %v1552_v22  ;;  %v1557_v42 = vmul.f32 %v2416_v58, %v2416_v58  ;;  %v1568_v22 = vmul.f32 %v2538_v49, %v2538_v49 }
 0x199   : > { %v1569_v48 = vmul.f32 %v2550_v57, %v2550_v57 }
 0x19a   : > { %v1484_v11 = vadd.f32 %v1483_v61, %v2392_v46  ;;  %v1616_v7 = vadd.f32 %v1615_v8, %v1553_v26  ;;  %v1558_v46 = vmul.f32 %v2424_v62, %v2424_v62  ;;  %v1570_v61 = vmul.f32 %v2561_v37, %v2561_v37 }
 0x19c   : > { %v1617_v1 = vadd.f32 %v1616_v7, %v1554_v30  ;;  %v1485_v0 = vadd.f32 %v1484_v11, %v2400_v50  ;;  %v1559_v50 = vmul.f32 %v2432_v2, %v2432_v2  ;;  %v1571_v30 = vmul.f32 %v2572_v45, %v2572_v45 }
 0x19d   : > { %v1572_v7 = vmul.f32 %v2583_v53, %v2583_v53 }
 0x19e   : > { %v1486_v15 = vadd.f32 %v1485_v0, %v2408_v54  ;;  %v1618_v5 = vadd.f32 %v1617_v1, %v1555_v34  ;;  %v1560_v54 = vmul.f32 %v2440_v6, %v2440_v6  ;;  %v1573_v1 = vmul.f32 %v2594_v3, %v2594_v3 }
 0x1a0   : > { %v1487_v16 = vadd.f32 %v1486_v15, %v2416_v58  ;;  %v1619_v28 = vadd.f32 %v1618_v5, %v1556_v38  ;;  %v1561_v58 = vmul.f32 %v2448_v10, %v2448_v10  ;;  %v1574_v38 = vmul.f32 %v2601_v19, %v2601_v19 }
 0x1a2   : > { %v1488_v27 = vadd.f32 %v1487_v16, %v2424_v62  ;;  %v1620_v31 = vadd.f32 %v1619_v28, %v1557_v42  ;;  %v1562_v62 = vmul.f32 %v2456_v14, %v2456_v14  ;;  %v1576_v16 = vmul.f32 %v2611_v56, %v2611_v56 }
 0x1a4   : > { %v1489_v9 = vadd.f32 %v1488_v27, %v2432_v2  ;;  %v1621_v47 = vadd.f32 %v1620_v31, %v1558_v46  ;;  %v1563_v2 = vmul.f32 %v2466_v23, %v2466_v23  ;;  %v1577_v46 = vmul.f32 %v2616_v4, %v2616_v4 }
 0x1a5   : > { %v1578_v31 = vmul.f32 %v2621_v24, %v2621_v24 }
 0x1a6   : > { %v1490_v35 = vadd.f32 %v1489_v9, %v2440_v6  ;;  %v1622_v36 = vadd.f32 %v1621_v47, %v1559_v50 }
 0x1a8   : > { %v1491_v13 = vadd.f32 %v1490_v35, %v2448_v10  ;;  %v1623_v44 = vadd.f32 %v1622_v36, %v1560_v54 }
 0x1aa   : > { %v1492_v17 = vadd.f32 %v1491_v13, %v2456_v14  ;;  %v1624_v60 = vadd.f32 %v1623_v44, %v1561_v58 }
 0x1ac   : > { %v1493_v21 = vadd.f32 %v1492_v17, %v2466_v23  ;;  %v1625_v20 = vadd.f32 %v1624_v60, %v1562_v62 }
 0x1ae   : > { %v1494_v6 = vadd.f32 %v1493_v21, %v2482_v40  ;;  %v1626_v51 = vadd.f32 %v1625_v20, %v1563_v2 }
 0x1b0   : > { %v1627_v10 = vadd.f32 %v1626_v51, %v1564_v12  ;;  %v1495_v52 = vadd.f32 %v1494_v6, %v2496_v25 }
 0x1b2   : > { %v1628_v14 = vadd.f32 %v1627_v10, %v1565_v39  ;;  %v1496_v59 = vadd.f32 %v1495_v52, %v2510_v33 }
 0x1b4   : > { %v1629_v23 = vadd.f32 %v1628_v14, %v1566_v29  ;;  %v1497_v18 = vadd.f32 %v1496_v59, %v2524_v41 }
 0x1b6   : > { %v1630_v40 = vadd.f32 %v1629_v23, %v1567_v32  ;;  %v1498_v63 = vadd.f32 %v1497_v18, %v2538_v49 }
 0x1b8   : > { %v1631_v55 = vadd.f32 %v1630_v40, %v1568_v22  ;;  %v1499_v25 = vadd.f32 %v1498_v63, %v2550_v57 }
 0x1ba   : > { %v1632_v26 = vadd.f32 %v1631_v55, %v1569_v48  ;;  %v1500_v33 = vadd.f32 %v1499_v25, %v2561_v37 }
 0x1bc   : > { %v1633_v8 = vadd.f32 %v1632_v26, %v1570_v61  ;;  %v1501_v41 = vadd.f32 %v1500_v33, %v2572_v45 }
 0x1be   : > { %v1634_v11 = vadd.f32 %v1633_v8, %v1571_v30  ;;  %v1502_v49 = vadd.f32 %v1501_v41, %v2583_v53  ;;  %v1575_v53 = vmul.f32 %v2606_v43, %v2606_v43 }
 0x1c0   : > { %v1635_v34 = vadd.f32 %v1634_v11, %v1572_v7  ;;  %v1503_v57 = vadd.f32 %v1502_v49, %v2594_v3 }
 0x1c2   : > { %v1636_v37 = vadd.f32 %v1635_v34, %v1573_v1  ;;  %v1504_v0 = vadd.f32 %v1503_v57, %v2601_v19 }
 0x1c4   : > { %v1637_v45 = vadd.f32 %v1636_v37, %v1574_v38  ;;  %v1505_v15 = vadd.f32 %v1504_v0, %v2606_v43 }
 0x1c6   : > { %v1638_v5 = vadd.f32 %v1637_v45, %v1575_v53  ;;  %v1506_v42 = vadd.f32 %v1505_v15, %v2611_v56 }
 0x1c8   : > { %v1639_v3 = vadd.f32 %v1638_v5, %v1576_v16  ;;  %v1507_v28 = vadd.f32 %v1506_v42, %v2616_v4 }
 0x1ca   : > { %v1640_v19 = vadd.f32 %v1639_v3, %v1577_v46  ;;  %v1508_v27 = vadd.f32 %v1507_v28, %v2621_v24 }
 0x1cc   : > { %v1509_v43 = vrot.slane %v1508_v27, 4  ;;  %v1641_v50 = vadd.f32 %v1640_v19, %v1578_v31 }
 0x1ce   : > { %v1510_v9 = vadd.f32 %v1509_v43, %v1508_v27  ;;  %v1642_v47 = vrot.slane %v1641_v50, 4 }
 0x1d0   : > { %v1511_v54 = vrot.slane %v1510_v9, 2  ;;  %v1643_v56 = vadd.f32 %v1642_v47, %v1641_v50 }
 0x1d2   : > { %v1512_v35 = vadd.f32 %v1511_v54, %v1510_v9  ;;  %v1644_v36 = vrot.slane %v1643_v56, 2 }
 0x1d4   : > { %v1513_v58 = vrot.slane %v1512_v35, 1  ;;  %v1645_v13 = vadd.f32 %v1644_v36, %v1643_v56 }
 0x1d6   : > { %v1514_v4 = vadd.f32 %v1513_v58, %v1512_v35  ;;  %v1646_v44 = vrot.slane %v1645_v13, 1 }
 0x1d8   : > { %v1647_v24 = vadd.f32 %v1646_v44, %v1645_v13  ;;  %1649 = vst [vmem:[%s309_s14] sm:$0xff] %v1514_v4 }
 0x1da   : > { %1651 = vst [vmem:[%s316_s22] sm:$0xff] %v1647_v24 }
 0x1db PF: > { %s15_s17 = sadd.s32 1, %s2124_s17   ;;  %s2744_s15 = smov %s2120_s16 }
 0x1dc   : > { %p12_p6 = scmp.ge.s32.totalorder %s15_s17, 4   ;;  %s2745_s16 = smov %s2747_s18 }
 0x1de   :  { %14 = sbr.rel (!%p12_p6) target bundleno = 2 (0x2), region = 93 }

// kernel: dense_up_block_forward.26
= control target key start
LH: loop header
LB: loop body
LE: loop exit
PB: predicated region body
PF: predicated region fallthrough
CT: control target
= control target key end

     0   :  { %s2960_s15 = smov 0   ;;  %s2962_s16 = smov 0   ;;  %s3552_s0 = inlined_call_operand.vmem [shape: bf16[1024,384], index: 0, kind: input, shape index: {}]   ;;  %s3553_s1 = inlined_call_operand.vmem [shape: bf16[384,128], index: 1, kind: input, shape index: {}]   ;;  %s3554_s2 = inlined_call_operand.vmem [shape: f32[1024,128], index: 2, kind: output, shape index: {0}]   ;;  %s3555_s3 = inlined_call_operand.vmem [shape: f32[16,128], index: 3, kind: output, shape index: {1}]   ;;  %s3556_s4 = inlined_call_operand.vmem [shape: f32[16,128], index: 4, kind: output, shape index: {2}]  }
   0x1   :  { %s2964_s17 = smov 0  }
   0x2 LB: > { %s34_s18 = sadd.s32 1, %s2928_s16  ;;  %p2450_p0 = scmp.ge.s32.totalorder %s2932_s17, 1  ;;  %s2932_s17 = sphi %s2964_s17, %s15_s17   ;;  %s2928_s16 = sphi %s2962_s16, %s3558_s16   ;;  %s2924_s15 = sphi %s2960_s15, %s3557_s15  }
   0x3   : > { %p36_p1 = scmp.ge.s32.totalorder %s34_s18, 2  ;;  %p217_p2 = scmp.lt.s32.totalorder %s2932_s17, 3 }
   0x5   : > { %s3560_s18 = smov (%p36_p1, %s34_s18), 0  ;;  %p218_p3 = pnand %p2450_p0, %p217_p2 }
   0x6   : > { %s2451_s21 = sshll.u32 (!%p218_p3), %s2924_s15, 6  ;;  %p303_p5 = scmp.lt.s32.totalorder (!%p218_p3), %s2924_s15, 1 }
   0x7   : > { %221 = sbr.rel (%p218_p3) target bundleno = 509 (0x1fd), region = 28  ;;  %p275_p4 = scmp.lt.s32.totalorder (!%p218_p3), %s2451_s21, 127 }
   0xc   : > { %v2758_v0 = vld [vmem:[%s3553_s1 + $0x38] sm:$0xff]   ;;  %v2934_v1 = vmov 0   ;;  %v2759_v2 = vld [vmem:[%s3553_s1 + $0x30] sm:$0xff]   ;;  %v2760_v3 = vld [vmem:[%s3553_s1 + $0x28] sm:$0xff]   ;;  %s3562_s21 = smov (!%p275_p4, %s2451_s21), 127  ;;  %s3564_s15 = smov (!%p303_p5, %s2924_s15), 1 }
   0xd   : > { %1282 = vmatprep.subr.bf16.mxu0 %v2934_v1  ;;  %2699 = vmatprep.subr.bf16.mxu1 %v2934_v1  ;;  %v2761_v4 = vld [vmem:[%s3553_s1 + $0x20] sm:$0xff]   ;;  %s2731_s28 = smul.u32 12, %s3562_s21  ;;  %v2762_v5 = vld [vmem:[%s3553_s1 + $0x18] sm:$0xff]   ;;  %v2763_v7 = vld [vmem:[%s3553_s1 + $0x10] sm:$0xff]  }
   0xe   : > { %1283 = vmatpush1.bf16.msra.mxu0 %v2758_v0  ;;  %2715 = vmatpush1.bf16.msra.mxu1 %v2758_v0  ;;  %v2764_v9 = vld [vmem:[%s3553_s1 + $0x8] sm:$0xff]   ;;  %v2765_v10 = vld [vmem:[%s3553_s1] sm:$0xff]   ;;  %v2766_v11 = vld [vmem:[%s3553_s1 + $0x78] sm:$0xff]  }
   0xf   : > { %1284 = vmatprep.subr.bf16.mxu0 %v2934_v1  ;;  %2700 = vmatprep.subr.bf16.mxu1 %v2934_v1  ;;  %s3010_s7 = scalar_lea.vmem %s3552_s0, %s2731_s28  ;;  %v2767_v12 = vld [vmem:[%s3553_s1 + $0x70] sm:$0xff]   ;;  %v2768_v13 = vld [vmem:[%s3553_s1 + $0x68] sm:$0xff]   ;;  %v2769_v14 = vld [vmem:[%s3553_s1 + $0x60] sm:$0xff]  }
  0x10   : > { %v2776_v6 = vld [vmem:[%s3010_s7 + $0x4] ss:$12 sps:$4 sm:$0xff]   ;;  %v2770_v15 = vld [vmem:[%s3553_s1 + $0x58] sm:$0xff]   ;;  %v2772_v17 = vld [vmem:[%s3553_s1 + $0x48] sm:$0xff]  }
  0x11   : > { %v2779_v8 = vld [vmem:[%s3010_s7 + $0x244] ss:$12 sps:$4 sm:$0xff]   ;;  %1314 = vmatprep.mubr.bf16.mxu0 %v2776_v6  ;;  %v2798_v19 = vld [vmem:[%s3553_s1 + $0xb8] sm:$0xff]   ;;  %v2774_v20 = vld [vmem:[%s3010_s7] ss:$12 sps:$4 sm:$0xff]  }
  0x12   : > { %1285 = vmatpush1.bf16.msra.mxu0 %v2759_v2  ;;  %2716 = vmatpush1.bf16.msra.mxu1 %v2759_v2  ;;  %v2771_v16 = vld [vmem:[%s3553_s1 + $0x50] sm:$0xff]   ;;  %v2773_v18 = vld [vmem:[%s3553_s1 + $0x40] sm:$0xff]   ;;  %v2780_v22 = vld [vmem:[%s3010_s7 + $0x1c] ss:$12 sps:$4 sm:$0xff]  }
  0x13   : > { %1286 = vmatprep.subr.bf16.mxu0 %v2934_v1  ;;  %2701 = vmatprep.subr.bf16.mxu1 %v2934_v1  ;;  %v2777_v21 = vld [vmem:[%s3010_s7 + $0x240] ss:$12 sps:$4 sm:$0xff]   ;;  %v2782_v23 = vld [vmem:[%s3010_s7 + $0x25c] ss:$12 sps:$4 sm:$0xff]   ;;  %v2805_v24 = vld [vmem:[%s3553_s1 + $0xb0] sm:$0xff]  }
  0x14   : > { %1506 = vmatprep.mubr.bf16.mxu1 %v2779_v8  ;;  %v2784_v25 = vld [vmem:[%s3010_s7 + $0x18] ss:$12 sps:$4 sm:$0xff]   ;;  %v2812_v26 = vld [vmem:[%s3553_s1 + $0xa8] sm:$0xff]   ;;  %v2786_v28 = vld [vmem:[%s3010_s7 + $0x34] ss:$12 sps:$4 sm:$0xff]  }
  0x15   : > { %v2785_v27 = vld [vmem:[%s3010_s7 + $0x258] ss:$12 sps:$4 sm:$0xff]   ;;  %v2788_v29 = vld [vmem:[%s3010_s7 + $0x274] ss:$12 sps:$4 sm:$0xff]   ;;  %v2790_v31 = vld [vmem:[%s3010_s7 + $0x30] ss:$12 sps:$4 sm:$0xff]  }
  0x16   : > { %1287 = vmatpush1.bf16.msra.mxu0 %v2760_v3  ;;  %2717 = vmatpush1.bf16.msra.mxu1 %v2760_v3  ;;  %v2813_v30 = vld [vmem:[%s3553_s1 + $0xa0] sm:$0xff]   ;;  %v2820_v32 = vld [vmem:[%s3553_s1 + $0x98] sm:$0xff]   ;;  %v2821_v36 = vld [vmem:[%s3553_s1 + $0x90] sm:$0xff]  }
  0x17   : > { %1288 = vmatprep.subr.bf16.mxu0 %v2934_v1  ;;  %2702 = vmatprep.subr.bf16.mxu1 %v2934_v1  ;;  %v2791_v33 = vld [vmem:[%s3010_s7 + $0x270] ss:$12 sps:$4 sm:$0xff]   ;;  %v2792_v34 = vld [vmem:[%s3010_s7 + $0x4c] ss:$12 sps:$4 sm:$0xff]   ;;  %v2796_v37 = vld [vmem:[%s3010_s7 + $0x48] ss:$12 sps:$4 sm:$0xff]  }
  0x18   : > { %v2794_v35 = vld [vmem:[%s3010_s7 + $0x28c] ss:$12 sps:$4 sm:$0xff]   ;;  %v2797_v38 = vld [vmem:[%s3010_s7 + $0x288] ss:$12 sps:$4 sm:$0xff]   ;;  %v2799_v39 = vld [vmem:[%s3010_s7 + $0x64] ss:$12 sps:$4 sm:$0xff]  }
  0x19   : > { %v2801_v40 = vld [vmem:[%s3010_s7 + $0x2a4] ss:$12 sps:$4 sm:$0xff]   ;;  %v2828_v41 = vld [vmem:[%s3553_s1 + $0x88] sm:$0xff]   ;;  %v2814_v49 = vld [vmem:[%s3010_s7 + $0x94] ss:$12 sps:$4 sm:$0xff]  }
  0x1a   : > { %1289 = vmatpush1.bf16.msra.mxu0 %v2761_v4  ;;  %2718 = vmatpush1.bf16.msra.mxu1 %v2761_v4  ;;  %v2829_v42 = vld [vmem:[%s3553_s1 + $0x80] sm:$0xff]   ;;  %v2806_v45 = vld [vmem:[%s3010_s7 + $0x7c] ss:$12 sps:$4 sm:$0xff]   ;;  %v2822_v53 = vld [vmem:[%s3010_s7 + $0xac] ss:$12 sps:$4 sm:$0xff]  }
  0x1b   : > { %1290 = vmatprep.subr.bf16.mxu0 %v2934_v1  ;;  %2703 = vmatprep.subr.bf16.mxu1 %v2934_v1  ;;  %v2803_v43 = vld [vmem:[%s3010_s7 + $0x60] ss:$12 sps:$4 sm:$0xff]   ;;  %v2808_v46 = vld [vmem:[%s3010_s7 + $0x2bc] ss:$12 sps:$4 sm:$0xff]   ;;  %v2810_v47 = vld [vmem:[%s3010_s7 + $0x78] ss:$12 sps:$4 sm:$0xff]  }
  0x1c   : > { %v2804_v44 = vld [vmem:[%s3010_s7 + $0x2a0] ss:$12 sps:$4 sm:$0xff]   ;;  %v2811_v48 = vld [vmem:[%s3010_s7 + $0x2b8] ss:$12 sps:$4 sm:$0xff]   ;;  %v2818_v51 = vld [vmem:[%s3010_s7 + $0x90] ss:$12 sps:$4 sm:$0xff]  }
  0x1d   : > { %v2816_v50 = vld [vmem:[%s3010_s7 + $0x2d4] ss:$12 sps:$4 sm:$0xff]   ;;  %v2819_v52 = vld [vmem:[%s3010_s7 + $0x2d0] ss:$12 sps:$4 sm:$0xff]   ;;  %v2824_v54 = vld [vmem:[%s3010_s7 + $0x2ec] ss:$12 sps:$4 sm:$0xff]  }
  0x1e   : > { %1291 = vmatpush1.bf16.msra.mxu0 %v2762_v5  ;;  %2719 = vmatpush1.bf16.msra.mxu1 %v2762_v5  ;;  %v2826_v55 = vld [vmem:[%s3010_s7 + $0xa8] ss:$12 sps:$4 sm:$0xff]   ;;  %v2830_v57 = vld [vmem:[%s3010_s7 + $0xc4] ss:$12 sps:$4 sm:$0xff]   ;;  %v2833_v59 = vld [vmem:[%s3010_s7 + $0xc0] ss:$12 sps:$4 sm:$0xff]  }
  0x1f   : > { %1292 = vmatprep.subr.bf16.mxu0 %v2934_v1  ;;  %2704 = vmatprep.subr.bf16.mxu1 %v2934_v1  ;;  %v2827_v56 = vld [vmem:[%s3010_s7 + $0x2e8] ss:$12 sps:$4 sm:$0xff]   ;;  %v2834_v60 = vld [vmem:[%s3010_s7 + $0x20] ss:$12 sps:$4 sm:$0xff]   ;;  %v2837_v62 = vld [vmem:[%s3010_s7 + $0x38] ss:$12 sps:$4 sm:$0xff]  }
  0x20   : > { %v2832_v58 = vld [vmem:[%s3010_s7 + $0x8] ss:$12 sps:$4 sm:$0xff]   ;;  %v2838_v63 = vld [vmem:[%s3010_s7 + $0xd8] ss:$12 sps:$4 sm:$0xff]   ;;  %v2839_v0 = vld [vmem:[%s3010_s7 + $0x50] ss:$12 sps:$4 sm:$0xff]  }
  0x21   : > { %v2835_v61 = vld [vmem:[%s3010_s7 + $0xdc] ss:$12 sps:$4 sm:$0xff]   ;;  %v2844_v4 = vld [vmem:[%s3010_s7 + $0x80] ss:$12 sps:$4 sm:$0xff]   ;;  %v2847_v6 = vld [vmem:[%s3010_s7 + $0x98] ss:$12 sps:$4 sm:$0xff]  }
  0x22   : > { %1293 = vmatpush1.bf16.msra.mxu0 %v2763_v7  ;;  %2720 = vmatpush1.bf16.msra.mxu1 %v2763_v7  ;;  %v2842_v2 = vld [vmem:[%s3010_s7 + $0x68] ss:$12 sps:$4 sm:$0xff]   ;;  %v2843_v3 = vld [vmem:[%s3010_s7 + $0xf0] ss:$12 sps:$4 sm:$0xff]   ;;  %v2845_v5 = vld [vmem:[%s3010_s7 + $0x10c] ss:$12 sps:$4 sm:$0xff]  }
  0x23   : > { %1294 = vmatprep.subr.bf16.mxu0 %v2934_v1  ;;  %2705 = vmatprep.subr.bf16.mxu1 %v2934_v1  ;;  %v2848_v7 = vld [vmem:[%s3010_s7 + $0x108] ss:$12 sps:$4 sm:$0xff]   ;;  %v2849_v8 = vld [vmem:[%s3010_s7 + $0xb0] ss:$12 sps:$4 sm:$0xff]  }
  0x26   : > { %1295 = vmatpush1.bf16.msra.mxu0 %v2764_v9  ;;  %2721 = vmatpush1.bf16.msra.mxu1 %v2764_v9  ;;  %v2850_v9 = vld [vmem:[%s3010_s7 + $0x124] ss:$12 sps:$4 sm:$0xff]  }
  0x27   : > { %1296 = vmatprep.subr.bf16.mxu0 %v2934_v1  ;;  %2706 = vmatprep.subr.bf16.mxu1 %v2934_v1 }
  0x2a   : > { %1297 = vmatpush1.bf16.msra.mxu0 %v2765_v10  ;;  %2722 = vmatpush1.bf16.msra.mxu1 %v2765_v10  ;;  %v2852_v10 = vld [vmem:[%s3010_s7 + $0xc8] ss:$12 sps:$4 sm:$0xff]  }
  0x2b   : > { %1298 = vmatprep.subr.bf16.mxu0 %v2934_v1  ;;  %2707 = vmatprep.subr.bf16.mxu1 %v2934_v1 }
  0x2e   : > { %1299 = vmatpush2.bf16.msra.mxu0 %v2766_v11  ;;  %2723 = vmatpush2.bf16.msra.mxu1 %v2766_v11  ;;  %v2853_v11 = vld [vmem:[%s3010_s7 + $0x120] ss:$12 sps:$4 sm:$0xff]  }
  0x2f   : > { %1300 = vmatprep.subr.bf16.mxu0 %v2934_v1  ;;  %2708 = vmatprep.subr.bf16.mxu1 %v2934_v1 }
  0x32   : > { %1301 = vmatpush2.bf16.msra.mxu0 %v2767_v12  ;;  %2724 = vmatpush2.bf16.msra.mxu1 %v2767_v12  ;;  %v2854_v12 = vld [vmem:[%s3010_s7 + $0xe0] ss:$12 sps:$4 sm:$0xff]  }
  0x33   : > { %1302 = vmatprep.subr.bf16.mxu0 %v2934_v1  ;;  %2709 = vmatprep.subr.bf16.mxu1 %v2934_v1 }
  0x36   : > { %1303 = vmatpush2.bf16.msra.mxu0 %v2768_v13  ;;  %2725 = vmatpush2.bf16.msra.mxu1 %v2768_v13  ;;  %v2855_v13 = vld [vmem:[%s3010_s7 + $0x13c] ss:$12 sps:$4 sm:$0xff]  }
  0x37   : > { %1304 = vmatprep.subr.bf16.mxu0 %v2934_v1  ;;  %2710 = vmatprep.subr.bf16.mxu1 %v2934_v1 }
  0x3a   : > { %1305 = vmatpush2.bf16.msra.mxu0 %v2769_v14  ;;  %2726 = vmatpush2.bf16.msra.mxu1 %v2769_v14  ;;  %v2857_v14 = vld [vmem:[%s3010_s7 + $0xf8] ss:$12 sps:$4 sm:$0xff]  }
  0x3b   : > { %1306 = vmatprep.subr.bf16.mxu0 %v2934_v1  ;;  %2711 = vmatprep.subr.bf16.mxu1 %v2934_v1 }
  0x3e   : > { %1307 = vmatpush2.bf16.msra.mxu0 %v2770_v15  ;;  %2727 = vmatpush2.bf16.msra.mxu1 %v2770_v15  ;;  %v2858_v15 = vld [vmem:[%s3010_s7 + $0x138] ss:$12 sps:$4 sm:$0xff]  }
  0x3f   : > { %1308 = vmatprep.subr.bf16.mxu0 %v2934_v1  ;;  %2712 = vmatprep.subr.bf16.mxu1 %v2934_v1 }
  0x42   : > { %1309 = vmatpush2.bf16.msra.mxu0 %v2771_v16  ;;  %2728 = vmatpush2.bf16.msra.mxu1 %v2771_v16  ;;  %v2859_v16 = vld [vmem:[%s3010_s7 + $0x110] ss:$12 sps:$4 sm:$0xff]  }
  0x43   : > { %1310 = vmatprep.subr.bf16.mxu0 %v2934_v1  ;;  %2713 = vmatprep.subr.bf16.mxu1 %v2934_v1 }
  0x46   : > { %1311 = vmatpush2.bf16.msra.mxu0 %v2772_v17  ;;  %2729 = vmatpush2.bf16.msra.mxu1 %v2772_v17  ;;  %v2860_v17 = vld [vmem:[%s3010_s7 + $0x154] ss:$12 sps:$4 sm:$0xff]  }
  0x47   : > { %1312 = vmatprep.subr.bf16.mxu0 %v2934_v1  ;;  %2714 = vmatprep.subr.bf16.mxu1 %v2934_v1  ;;  %v2840_v1 = vld [vmem:[%s3010_s7 + $0xf4] ss:$12 sps:$4 sm:$0xff]  }
  0x4a   : > { %1313 = vmatpush2.bf16.msra.mxu0 %v2773_v18  ;;  %2730 = vmatpush2.bf16.msra.mxu1 %v2773_v18  ;;  %v2862_v18 = vld [vmem:[%s3010_s7 + $0x128] ss:$12 sps:$4 sm:$0xff]  }
  0x4b   : > { %2619 = vmatprep.subr.bf16.mxu1 %v2798_v19 }
  0x4d   : > { %1315 = vmatmul.mubr.bf16.vlgmr.msra.gmra.mxu0 %v2774_v20  ;;  %1507 = vmatmul.mubr.bf16.vlgmr.msra.gmra.mxu1 %v2777_v21  ;;  %v2864_v20 = vld [vmem:[%s3010_s7 + $0x140] ss:$12 sps:$4 sm:$0xff]  }
  0x4e   : > { %1322 = vmatprep.mubr.bf16.mxu0 %v2780_v22  ;;  %1514 = vmatprep.mubr.bf16.mxu1 %v2782_v23  ;;  %v2865_v21 = vld [vmem:[%s3010_s7 + $0x16c] ss:$12 sps:$4 sm:$0xff]   ;;  %v2868_v23 = vld [vmem:[%s3010_s7 + $0x168] ss:$12 sps:$4 sm:$0xff]  }
  0x4f   : > { %2620 = vmatpush3.bf16.msra.mxu1 %v2798_v19  ;;  %v2863_v19 = vld [vmem:[%s3010_s7 + $0x150] ss:$12 sps:$4 sm:$0xff]   ;;  %v2867_v22 = vld [vmem:[%s3010_s7 + $0x158] ss:$12 sps:$4 sm:$0xff]  }
  0x50   : > { %2621 = vmatprep.subr.bf16.mxu1 %v2805_v24 }
  0x53   : > { %2622 = vmatpush3.bf16.msra.mxu1 %v2805_v24  ;;  %v2869_v24 = vld [vmem:[%s3010_s7 + $0x170] ss:$12 sps:$4 sm:$0xff]  }
  0x54   : > { %2623 = vmatprep.subr.bf16.mxu1 %v2812_v26 }
  0x55   : > { %1323 = vmatmul.mubr.bf16.gmra.mxu0 %v2784_v25  ;;  %1515 = vmatmul.mubr.bf16.gmra.mxu1 %v2785_v27  ;;  %v2870_v25 = vld [vmem:[%s3010_s7 + $0x184] ss:$12 sps:$4 sm:$0xff]   ;;  %v2873_v27 = vld [vmem:[%s3010_s7 + $0x180] ss:$12 sps:$4 sm:$0xff]  }
  0x56   : > { %1330 = vmatprep.mubr.bf16.mxu0 %v2786_v28  ;;  %1522 = vmatprep.mubr.bf16.mxu1 %v2788_v29  ;;  %v2874_v28 = vld [vmem:[%s3010_s7 + $0x1a0] ss:$12 sps:$4 sm:$0xff]   ;;  %v2875_v29 = vld [vmem:[%s3010_s7 + $0x19c] ss:$12 sps:$4 sm:$0xff]  }
  0x57   : > { %2624 = vmatpush3.bf16.msra.mxu1 %v2812_v26  ;;  %v2872_v26 = vld [vmem:[%s3010_s7 + $0x188] ss:$12 sps:$4 sm:$0xff]  }
  0x58   : > { %2625 = vmatprep.subr.bf16.mxu1 %v2813_v30 }
  0x5b   : > { %2626 = vmatpush3.bf16.msra.mxu1 %v2813_v30  ;;  %v2877_v30 = vld [vmem:[%s3010_s7 + $0x1b8] ss:$12 sps:$4 sm:$0xff]  }
  0x5c   : > { %2627 = vmatprep.subr.bf16.mxu1 %v2820_v32 }
  0x5d   : > { %1331 = vmatmul.mubr.bf16.gmra.mxu0 %v2790_v31  ;;  %1523 = vmatmul.mubr.bf16.gmra.mxu1 %v2791_v33  ;;  %v2878_v31 = vld [vmem:[%s3010_s7 + $0x198] ss:$12 sps:$4 sm:$0xff]   ;;  %v2880_v33 = vld [vmem:[%s3010_s7 + $0x1b4] ss:$12 sps:$4 sm:$0xff]  }
  0x5e   : > { %1338 = vmatprep.mubr.bf16.mxu0 %v2792_v34  ;;  %1530 = vmatprep.mubr.bf16.mxu1 %v2794_v35  ;;  %v2882_v34 = vld [vmem:[%s3010_s7 + $0x1e8] ss:$12 sps:$4 sm:$0xff]   ;;  %v2883_v35 = vld [vmem:[%s3010_s7 + $0x1b0] ss:$12 sps:$4 sm:$0xff]  }
  0x5f   : > { %2628 = vmatpush3.bf16.msra.mxu1 %v2820_v32  ;;  %v2879_v32 = vld [vmem:[%s3010_s7 + $0x1d0] ss:$12 sps:$4 sm:$0xff]  }
  0x60   : > { %2629 = vmatprep.subr.bf16.mxu1 %v2821_v36 }
  0x63   : > { %2630 = vmatpush3.bf16.msra.mxu1 %v2821_v36  ;;  %v2884_v36 = vld [vmem:[%s3010_s7 + $0x200] ss:$12 sps:$4 sm:$0xff]  }
  0x64   : > { %2631 = vmatprep.subr.bf16.mxu1 %v2828_v41 }
  0x65   : > { %1339 = vmatmul.mubr.bf16.gmra.mxu0 %v2796_v37  ;;  %1531 = vmatmul.mubr.bf16.gmra.mxu1 %v2797_v38  ;;  %v2885_v37 = vld [vmem:[%s3010_s7 + $0x1cc] ss:$12 sps:$4 sm:$0xff]  }
  0x66   : > { %1346 = vmatprep.mubr.bf16.mxu0 %v2799_v39  ;;  %1538 = vmatprep.mubr.bf16.mxu1 %v2801_v40  ;;  %v2887_v38 = vld [vmem:[%s3010_s7 + $0x218] ss:$12 sps:$4 sm:$0xff]   ;;  %v2888_v39 = vld [vmem:[%s3010_s7 + $0x1c8] ss:$12 sps:$4 sm:$0xff]   ;;  %v2889_v40 = vld [vmem:[%s3010_s7 + $0x230] ss:$12 sps:$4 sm:$0xff]  }
  0x67   : > { %2632 = vmatpush3.bf16.msra.mxu1 %v2828_v41  ;;  %v2890_v41 = vld [vmem:[%s3010_s7 + $0x1e4] ss:$12 sps:$4 sm:$0xff]  }
  0x68   : > { %2633 = vmatprep.subr.bf16.mxu1 %v2829_v42 }
  0x6b   : > { %2634 = vmatpush3.bf16.msra.mxu1 %v2829_v42  ;;  %v2892_v42 = vld [vmem:[%s3010_s7 + $0x248] ss:$12 sps:$4 sm:$0xff]  }
  0x6d   : > { %1347 = vmatmul.mubr.bf16.gmra.mxu0 %v2803_v43  ;;  %1539 = vmatmul.mubr.bf16.gmra.mxu1 %v2804_v44  ;;  %v2893_v43 = vld [vmem:[%s3010_s7 + $0x1e0] ss:$12 sps:$4 sm:$0xff]  }
  0x6e   : > { %1354 = vmatprep.mubr.bf16.mxu0 %v2806_v45  ;;  %1546 = vmatprep.mubr.bf16.mxu1 %v2808_v46  ;;  %v2894_v44 = vld [vmem:[%s3010_s7 + $0x260] ss:$12 sps:$4 sm:$0xff]   ;;  %v2895_v45 = vld [vmem:[%s3010_s7 + $0x1fc] ss:$12 sps:$4 sm:$0xff]   ;;  %v2897_v46 = vld [vmem:[%s3010_s7 + $0x278] ss:$12 sps:$4 sm:$0xff]  }
  0x75   : > { %1355 = vmatmul.mubr.bf16.gmra.mxu0 %v2810_v47  ;;  %1547 = vmatmul.mubr.bf16.gmra.mxu1 %v2811_v48  ;;  %v2898_v47 = vld [vmem:[%s3010_s7 + $0x1f8] ss:$12 sps:$4 sm:$0xff]   ;;  %v2899_v48 = vld [vmem:[%s3010_s7 + $0x290] ss:$12 sps:$4 sm:$0xff]  }
  0x76   : > { %1362 = vmatprep.mubr.bf16.mxu0 %v2814_v49  ;;  %1554 = vmatprep.mubr.bf16.mxu1 %v2816_v50  ;;  %v2900_v49 = vld [vmem:[%s3010_s7 + $0x214] ss:$12 sps:$4 sm:$0xff]  }
  0x77   : > { %v2902_v50 = vld [vmem:[%s3010_s7 + $0x2a8] ss:$12 sps:$4 sm:$0xff]  }
  0x7d   : > { %1363 = vmatmul.mubr.bf16.gmra.mxu0 %v2818_v51  ;;  %1555 = vmatmul.mubr.bf16.gmra.mxu1 %v2819_v52  ;;  %v2903_v51 = vld [vmem:[%s3010_s7 + $0x210] ss:$12 sps:$4 sm:$0xff]   ;;  %v2904_v52 = vld [vmem:[%s3010_s7 + $0x2c0] ss:$12 sps:$4 sm:$0xff]  }
  0x7e   : > { %1370 = vmatprep.mubr.bf16.mxu0 %v2822_v53  ;;  %1562 = vmatprep.mubr.bf16.mxu1 %v2824_v54  ;;  %v2905_v53 = vld [vmem:[%s3010_s7 + $0x22c] ss:$12 sps:$4 sm:$0xff]  }
  0x7f   : > { %v2907_v54 = vld [vmem:[%s3010_s7 + $0x2d8] ss:$12 sps:$4 sm:$0xff]  }
  0x85   : > { %1371 = vmatmul.mubr.bf16.gmra.mxu0 %v2826_v55  ;;  %1563 = vmatmul.mubr.bf16.gmra.mxu1 %v2827_v56  ;;  %v2908_v55 = vld [vmem:[%s3010_s7 + $0x228] ss:$12 sps:$4 sm:$0xff]   ;;  %v2909_v56 = vld [vmem:[%s3010_s7 + $0x2f0] ss:$12 sps:$4 sm:$0xff]   ;;  %s2454_s7 = sshll.u32 %s3562_s21, 3  ;;  %s2455_s21 = sshll.u32 %s3564_s15, 3 }
  0x86   : > { %1378 = vmatprep.mubr.bf16.mxu0 %v2830_v57  ;;  %2635 = vmatprep.mubr.bf16.mxu1 %v2832_v58  ;;  %s3255_s8 = scalar_lea.vmem %s3554_s2, %s2454_s7  ;;  %s309_s11 = scalar_lea.vmem %s3555_s3, %s2455_s21 }
  0x87   : > { %s316_s14 = scalar_lea.vmem %s3556_s4, %s2455_s21 }
  0x8d   : > { %1379 = vmatmul.mubr.bf16.gmra.mxu0 %v2833_v59  ;;  %2636 = vmatmul.mubr.bf16.vlgmr.msra.gmra.mxu1 %v2834_v60 }
  0x8e   : > { %1386 = vmatprep.mubr.bf16.mxu0 %v2835_v61  ;;  %2639 = vmatprep.mubr.bf16.mxu1 %v2837_v62 }
  0x95   : > { %1387 = vmatmul.mubr.bf16.gmra.mxu0 %v2838_v63  ;;  %2640 = vmatmul.mubr.bf16.gmra.mxu1 %v2839_v0 }
  0x96   : > { %1394 = vmatprep.mubr.bf16.mxu0 %v2840_v1  ;;  %2643 = vmatprep.mubr.bf16.mxu1 %v2842_v2 }
  0x9d   : > { %1395 = vmatmul.mubr.bf16.gmra.mxu0 %v2843_v3  ;;  %2644 = vmatmul.mubr.bf16.gmra.mxu1 %v2844_v4 }
  0x9e   : > { %1402 = vmatprep.mubr.bf16.mxu0 %v2845_v5  ;;  %2647 = vmatprep.mubr.bf16.mxu1 %v2847_v6 }
  0xa5   : > { %1403 = vmatmul.mubr.bf16.gmra.mxu0 %v2848_v7  ;;  %2648 = vmatmul.mubr.bf16.gmra.mxu1 %v2849_v8 }
  0xa6   : > { %1410 = vmatprep.mubr.bf16.mxu0 %v2850_v9  ;;  %2651 = vmatprep.mubr.bf16.mxu1 %v2852_v10 }
  0xad   : > { %1411 = vmatmul.mubr.bf16.gmra.mxu0 %v2853_v11  ;;  %2652 = vmatmul.mubr.bf16.gmra.mxu1 %v2854_v12 }
  0xae   : > { %1418 = vmatprep.mubr.bf16.mxu0 %v2855_v13  ;;  %2655 = vmatprep.mubr.bf16.mxu1 %v2857_v14 }
  0xb5   : > { %1419 = vmatmul.mubr.bf16.gmra.mxu0 %v2858_v15  ;;  %2656 = vmatmul.mubr.bf16.gmra.mxu1 %v2859_v16 }
  0xb6   : > { %1426 = vmatprep.mubr.bf16.mxu0 %v2860_v17  ;;  %2659 = vmatprep.mubr.bf16.mxu1 %v2862_v18 }
  0xbd   : > { %1427 = vmatmul.mubr.bf16.gmra.mxu0 %v2863_v19  ;;  %2660 = vmatmul.mubr.bf16.gmra.mxu1 %v2864_v20 }
  0xbe   : > { %1434 = vmatprep.mubr.bf16.mxu0 %v2865_v21  ;;  %2663 = vmatprep.mubr.bf16.mxu1 %v2867_v22 }
  0xc5   : > { %1435 = vmatmul.mubr.bf16.gmra.mxu0 %v2868_v23  ;;  %2664 = vmatmul.mubr.bf16.gmra.mxu1 %v2869_v24 }
  0xc6   : > { %1442 = vmatprep.mubr.bf16.mxu0 %v2870_v25  ;;  %2667 = vmatprep.mubr.bf16.mxu1 %v2872_v26 }
  0xcd   : > { %1443 = vmatmul.mubr.bf16.gmra.mxu0 %v2873_v27  ;;  %2668 = vmatmul.mubr.bf16.gmra.mxu1 %v2874_v28 }
  0xce   : > { %1450 = vmatprep.mubr.bf16.mxu0 %v2875_v29  ;;  %2671 = vmatprep.mubr.bf16.mxu1 %v2877_v30 }
  0xd5   : > { %1451 = vmatmul.mubr.bf16.gmra.mxu0 %v2878_v31  ;;  %2672 = vmatmul.mubr.bf16.gmra.mxu1 %v2879_v32 }
  0xd6   : > { %1458 = vmatprep.mubr.bf16.mxu0 %v2880_v33  ;;  %2675 = vmatprep.mubr.bf16.mxu1 %v2882_v34 }
  0xdd   : > { %1459 = vmatmul.mubr.bf16.gmra.mxu0 %v2883_v35  ;;  %2676 = vmatmul.mubr.bf16.gmra.mxu1 %v2884_v36 }
  0xde   : > { %1466 = vmatprep.mubr.bf16.mxu0 %v2885_v37  ;;  %2679 = vmatprep.mubr.bf16.mxu1 %v2887_v38 }
  0xe5   : > { %1467 = vmatmul.mubr.bf16.gmra.mxu0 %v2888_v39  ;;  %2680 = vmatmul.mubr.bf16.gmra.mxu1 %v2889_v40 }
  0xe6   : > { %1474 = vmatprep.mubr.bf16.mxu0 %v2890_v41  ;;  %2683 = vmatprep.mubr.bf16.mxu1 %v2892_v42 }
  0xed   : > { %1475 = vmatmul.mubr.bf16.gmra.mxu0 %v2893_v43  ;;  %2684 = vmatmul.mubr.bf16.gmra.mxu1 %v2894_v44 }
  0xee   : > { %1482 = vmatprep.mubr.bf16.mxu0 %v2895_v45  ;;  %2687 = vmatprep.mubr.bf16.mxu1 %v2897_v46 }
  0xf5   : > { %1483 = vmatmul.mubr.bf16.gmra.mxu0 %v2898_v47  ;;  %2688 = vmatmul.mubr.bf16.gmra.mxu1 %v2899_v48 }
  0xf6   : > { %1490 = vmatprep.mubr.bf16.mxu0 %v2900_v49  ;;  %2691 = vmatprep.mubr.bf16.mxu1 %v2902_v50 }
  0xfd   : > { %1491 = vmatmul.mubr.bf16.gmra.mxu0 %v2903_v51  ;;  %2692 = vmatmul.mubr.bf16.gmra.mxu1 %v2904_v52 }
  0xfe   : > { %1498 = vmatprep.mubr.bf16.mxu0 %v2905_v53  ;;  %2695 = vmatprep.mubr.bf16.mxu1 %v2907_v54 }
 0x105   : > { %1499 = vmatmul.mubr.bf16.gmra.mxu0 %v2908_v55  ;;  %2696 = vmatmul.mubr.bf16.gmra.mxu1 %v2909_v56 }
 0x10d   : > { %v3189_v57 = vpop.f32.mrf.mxu0  ;;  %v3191_v58 = vpop.f32.mrf.mxu1 }
 0x10f   : > { %v1318_v59 = vpop.f32.mrf.mxu0  ;;  %v1510_v60 = vpop.f32.mrf.mxu1 }
 0x111   : > { %v3193_v61 = vpop.f32.mrf.mxu0  ;;  %v3195_v62 = vpop.f32.mrf.mxu1 }
 0x113   : > { %v1321_v63 = vpop.f32.mrf.mxu0  ;;  %v1513_v0 = vpop.f32.mrf.mxu1 }
 0x115   : > { %v1324_v1 = vpop.f32.mrf.mxu0  ;;  %v3197_v2 = vpop.f32.mrf.mxu1 }
 0x117   : > { %v1326_v3 = vpop.f32.mrf.mxu0  ;;  %v1518_v4 = vpop.f32.mrf.mxu1 }
 0x119   : > { %v3199_v5 = vpop.f32.mrf.mxu0  ;;  %v3201_v6 = vpop.f32.mrf.mxu1 }
 0x11b   : > { %v1329_v7 = vpop.f32.mrf.mxu0  ;;  %v1521_v8 = vpop.f32.mrf.mxu1 }
 0x11d   : > { %v3203_v9 = vpop.f32.mrf.mxu0  ;;  %v3205_v10 = vpop.f32.mrf.mxu1 }
 0x11f   : > { %v1334_v11 = vpop.f32.mrf.mxu0  ;;  %v1526_v12 = vpop.f32.mrf.mxu1 }
 0x121   : > { %v3207_v13 = vpop.f32.mrf.mxu0  ;;  %v3209_v14 = vpop.f32.mrf.mxu1 }
 0x123   : > { %v1337_v15 = vpop.f32.mrf.mxu0  ;;  %v1529_v16 = vpop.f32.mrf.mxu1 }
 0x125   : > { %v1340_v17 = vpop.f32.mrf.mxu0  ;;  %v3211_v18 = vpop.f32.mrf.mxu1 }
 0x127   : > { %v1342_v19 = vpop.f32.mrf.mxu0  ;;  %v1534_v20 = vpop.f32.mrf.mxu1 }
 0x129   : > { %v3213_v21 = vpop.f32.mrf.mxu0  ;;  %v3215_v22 = vpop.f32.mrf.mxu1 }
 0x12b   : > { %v1345_v23 = vpop.f32.mrf.mxu0  ;;  %v1537_v24 = vpop.f32.mrf.mxu1 }
 0x12d   : > { %v3217_v25 = vpop.f32.mrf.mxu0  ;;  %v3219_v26 = vpop.f32.mrf.mxu1 }
 0x12f   : > { %v1350_v27 = vpop.f32.mrf.mxu0  ;;  %v1542_v28 = vpop.f32.mrf.mxu1 }
 0x131   : > { %v3221_v29 = vpop.f32.mrf.mxu0  ;;  %v3223_v30 = vpop.f32.mrf.mxu1 }
 0x133   : > { %v1353_v31 = vpop.f32.mrf.mxu0  ;;  %v1545_v32 = vpop.f32.mrf.mxu1 }
 0x135   : > { %v3225_v33 = vpop.f32.mrf.mxu0  ;;  %v3227_v34 = vpop.f32.mrf.mxu1 }
 0x137   : > { %v1358_v35 = vpop.f32.mrf.mxu0  ;;  %v1550_v36 = vpop.f32.mrf.mxu1 }
 0x139   : > { %v3229_v37 = vpop.f32.mrf.mxu0  ;;  %v3231_v38 = vpop.f32.mrf.mxu1 }
 0x13b   : > { %v1361_v39 = vpop.f32.mrf.mxu0  ;;  %v1553_v40 = vpop.f32.mrf.mxu1 }
 0x13d   : > { %v3233_v41 = vpop.f32.mrf.mxu0  ;;  %v3235_v42 = vpop.f32.mrf.mxu1 }
 0x13f   : > { %v1366_v43 = vpop.f32.mrf.mxu0  ;;  %v1558_v44 = vpop.f32.mrf.mxu1 }
 0x141   : > { %v3237_v45 = vpop.f32.mrf.mxu0  ;;  %v3239_v46 = vpop.f32.mrf.mxu1 }
 0x143   : > { %v1369_v47 = vpop.f32.mrf.mxu0  ;;  %v1561_v48 = vpop.f32.mrf.mxu1 }
 0x145   : > { %v3241_v49 = vpop.f32.mrf.mxu0  ;;  %v3243_v50 = vpop.f32.mrf.mxu1 }
 0x147   : > { %v1374_v51 = vpop.f32.mrf.mxu0  ;;  %v1566_v52 = vpop.f32.mrf.mxu1 }
 0x149   : > { %v3245_v53 = vpop.f32.mrf.mxu0  ;;  %v3247_v54 = vpop.f32.mrf.mxu1 }
 0x14b   : > { %v1377_v55 = vpop.f32.mrf.mxu0  ;;  %v1569_v56 = vpop.f32.mrf.mxu1 }
 0x14d   : > { %v3250_v59 = vpop.f32.mrf.mxu0  ;;  %v2637_v60 = vpop.f32.mrf.mxu1 }
 0x14e   : > { %v1614_v63 = vadd.f32 %v2637_v60, %v1324_v1 }
 0x14f   : > { %v1382_v0 = vpop.f32.mrf.mxu0  ;;  %v1605_v3 = vpop.f32.mrf.mxu1 }
 0x150   : > { %v1606_v4 = vadd.f32 %v1605_v3, %v3189_v57  ;;  %1926 = vst [vmem:[%s3255_s8 + $0x10] sm:$0xff] %v1614_v63  ;;  %v2126_v35 = vmul.f32 %v1614_v63, %v1614_v63 }
 0x151   : > { %v3258_v7 = vpop.f32.mrf.mxu0  ;;  %v2638_v8 = vpop.f32.mrf.mxu1 }
 0x152   : > { %v1617_v11 = vadd.f32 %v2638_v8, %v3199_v5  ;;  %1924 = vst [vmem:[%s3255_s8] sm:$0xff] %v1606_v4  ;;  %v2124_v23 = vmul.f32 %v1606_v4, %v1606_v4 }
 0x153   : > { %v1385_v1 = vpop.f32.mrf.mxu0  ;;  %v1608_v12 = vpop.f32.mrf.mxu1 }
 0x154   : > { %v1609_v15 = vadd.f32 %v1608_v12, %v3193_v61  ;;  %1927 = vst [vmem:[%s3255_s8 + $0x18] sm:$0xff] %v1617_v11  ;;  %v2127_v43 = vmul.f32 %v1617_v11, %v1617_v11 }
 0x155   : > { %v3264_v16 = vpop.f32.mrf.mxu0  ;;  %v2641_v19 = vpop.f32.mrf.mxu1 }
 0x156   : > { %v1630_v20 = vadd.f32 %v2641_v19, %v1340_v17  ;;  %1925 = vst [vmem:[%s3255_s8 + $0x8] sm:$0xff] %v1609_v15  ;;  %v2055_v27 = vadd.f32 %v1609_v15, %v1606_v4  ;;  %v2125_v28 = vmul.f32 %v1609_v15, %v1609_v15 }
 0x157   : > { %v1390_v57 = vpop.f32.mrf.mxu0  ;;  %v1621_v24 = vpop.f32.mrf.mxu1 }
 0x158   : > { %v1622_v5 = vadd.f32 %v1621_v24, %v3203_v9  ;;  %v2056_v61 = vadd.f32 %v2055_v27, %v1614_v63  ;;  %v2188_v36 = vadd.f32 %v2125_v28, %v2124_v23  ;;  %1930 = vst [vmem:[%s3255_s8 + $0x30] sm:$0xff] %v1630_v20  ;;  %v2130_v1 = vmul.f32 %v1630_v20, %v1630_v20 }
 0x159   : > { %v3269_v31 = vpop.f32.mrf.mxu0  ;;  %v2642_v32 = vpop.f32.mrf.mxu1 }
 0x15a   : > { %v1633_v39 = vadd.f32 %v2642_v32, %v3213_v21  ;;  %v2057_v44 = vadd.f32 %v2056_v61, %v1617_v11  ;;  %v2189_v47 = vadd.f32 %v2188_v36, %v2126_v35  ;;  %1928 = vst [vmem:[%s3255_s8 + $0x20] sm:$0xff] %v1622_v5  ;;  %v2128_v9 = vmul.f32 %v1622_v5, %v1622_v5 }
 0x15b   : > { %v1393_v17 = vpop.f32.mrf.mxu0  ;;  %v1624_v40 = vpop.f32.mrf.mxu1 }
 0x15c   : > { %v1625_v48 = vadd.f32 %v1624_v40, %v3207_v13  ;;  %v2190_v55 = vadd.f32 %v2189_v47, %v2127_v43  ;;  %v2058_v56 = vadd.f32 %v2057_v44, %v1622_v5  ;;  %1931 = vst [vmem:[%s3255_s8 + $0x38] sm:$0xff] %v1633_v39  ;;  %v2131_v19 = vmul.f32 %v1633_v39, %v1633_v39 }
 0x15d   : > { %v3275_v51 = vpop.f32.mrf.mxu0  ;;  %v2645_v52 = vpop.f32.mrf.mxu1 }
 0x15e   : > { %v1646_v60 = vadd.f32 %v2645_v52, %v3225_v33  ;;  %v2191_v0 = vadd.f32 %v2190_v55, %v2128_v9  ;;  %1929 = vst [vmem:[%s3255_s8 + $0x28] sm:$0xff] %v1625_v48  ;;  %v2059_v3 = vadd.f32 %v2058_v56, %v1625_v48  ;;  %v2129_v4 = vmul.f32 %v1625_v48, %v1625_v48 }
 0x15f   : > { %v1398_v21 = vpop.f32.mrf.mxu0  ;;  %v1637_v63 = vpop.f32.mrf.mxu1 }
 0x160   : > { %v1638_v8 = vadd.f32 %v1637_v63, %v3217_v25  ;;  %v2060_v12 = vadd.f32 %v2059_v3, %v1630_v20  ;;  %v2192_v15 = vadd.f32 %v2191_v0, %v2129_v4  ;;  %1934 = vst [vmem:[%s3255_s8 + $0x50] sm:$0xff] %v1646_v60 }
 0x161   : > { %v3281_v13 = vpop.f32.mrf.mxu0  ;;  %v2646_v11 = vpop.f32.mrf.mxu1 }
 0x162   : > { %v1649_v33 = vadd.f32 %v2646_v11, %v3229_v37  ;;  %v2193_v24 = vadd.f32 %v2192_v15, %v2130_v1  ;;  %v2061_v27 = vadd.f32 %v2060_v12, %v1633_v39  ;;  %1932 = vst [vmem:[%s3255_s8 + $0x40] sm:$0xff] %v1638_v8  ;;  %v2132_v35 = vmul.f32 %v1638_v8, %v1638_v8 }
 0x163   : > { %v1401_v23 = vpop.f32.mrf.mxu0  ;;  %v1640_v57 = vpop.f32.mrf.mxu1 }
 0x164   : > { %v1641_v28 = vadd.f32 %v1640_v57, %v3221_v29  ;;  %v2062_v32 = vadd.f32 %v2061_v27, %v1638_v8  ;;  %v2194_v61 = vadd.f32 %v2193_v24, %v2131_v19  ;;  %1935 = vst [vmem:[%s3255_s8 + $0x58] sm:$0xff] %v1649_v33  ;;  %v2134_v29 = vmul.f32 %v1646_v60, %v1646_v60 }
 0x165   : > { %v1404_v25 = vpop.f32.mrf.mxu0  ;;  %v2649_v5 = vpop.f32.mrf.mxu1  ;;  %v2135_v56 = vmul.f32 %v1649_v33, %v1649_v33 }
 0x166   : > { %v1662_v20 = vadd.f32 %v2649_v5, %v3241_v49  ;;  %v2195_v17 = vadd.f32 %v2194_v61, %v2132_v35  ;;  %1933 = vst [vmem:[%s3255_s8 + $0x48] sm:$0xff] %v1641_v28  ;;  %v2063_v40 = vadd.f32 %v2062_v32, %v1641_v28  ;;  %v2133_v43 = vmul.f32 %v1641_v28, %v1641_v28 }
 0x167   : > { %v1406_v36 = vpop.f32.mrf.mxu0  ;;  %v1653_v37 = vpop.f32.mrf.mxu1 }
 0x168   : > { %v1654_v39 = vadd.f32 %v1653_v37, %v3233_v41  ;;  %v2064_v48 = vadd.f32 %v2063_v40, %v1646_v60  ;;  %v2196_v9 = vadd.f32 %v2195_v17, %v2133_v43  ;;  %1938 = vst [vmem:[%s3255_s8 + $0x70] sm:$0xff] %v1662_v20  ;;  %v2138_v24 = vmul.f32 %v1662_v20, %v1662_v20 }
 0x169   : > { %v1407_v44 = vpop.f32.mrf.mxu0  ;;  %v2650_v47 = vpop.f32.mrf.mxu1 }
 0x16a   : > { %v1665_v52 = vadd.f32 %v2650_v47, %v3245_v53  ;;  %v2197_v21 = vadd.f32 %v2196_v9, %v2134_v29  ;;  %1936 = vst [vmem:[%s3255_s8 + $0x60] sm:$0xff] %v1654_v39  ;;  %v2065_v63 = vadd.f32 %v2064_v48, %v1649_v33  ;;  %v2136_v60 = vmul.f32 %v1654_v39, %v1654_v39 }
 0x16b   : > { %v1409_v55 = vpop.f32.mrf.mxu0  ;;  %v1656_v49 = vpop.f32.mrf.mxu1 }
 0x16c   : > { %v1657_v0 = vadd.f32 %v1656_v49, %v3237_v45  ;;  %v2066_v4 = vadd.f32 %v2065_v63, %v1654_v39  ;;  %v2198_v8 = vadd.f32 %v2197_v21, %v2135_v56  ;;  %1939 = vst [vmem:[%s3255_s8 + $0x78] sm:$0xff] %v1665_v52 }
 0x16d   : > { %v3295_v3 = vpop.f32.mrf.mxu0  ;;  %v2653_v41 = vpop.f32.mrf.mxu1 }
 0x16e   : > { %v1678_v53 = vadd.f32 %v2653_v41, %v3264_v16  ;;  %v2199_v12 = vadd.f32 %v2198_v8, %v2136_v60  ;;  %1937 = vst [vmem:[%s3255_s8 + $0x68] sm:$0xff] %v1657_v0  ;;  %v2067_v33 = vadd.f32 %v2066_v4, %v1657_v0  ;;  %v2137_v19 = vmul.f32 %v1657_v0, %v1657_v0 }
 0x16f   : > { %v1414_v11 = vpop.f32.mrf.mxu0  ;;  %v1669_v1 = vpop.f32.mrf.mxu1 }
 0x170   : > { %v1670_v15 = vadd.f32 %v1669_v1, %v3250_v59  ;;  %1942 = vst [vmem:[%s3255_s8 + $0x90] sm:$0xff] %v1678_v53  ;;  %v2068_v27 = vadd.f32 %v2067_v33, %v1662_v20  ;;  %v2200_v28 = vadd.f32 %v2199_v12, %v2137_v19  ;;  %v2139_v59 = vmul.f32 %v1665_v52, %v1665_v52 }
 0x171   : > { %v3301_v45 = vpop.f32.mrf.mxu0  ;;  %v2654_v23 = vpop.f32.mrf.mxu1  ;;  %v2142_v49 = vmul.f32 %v1678_v53, %v1678_v53 }
 0x172   : > { %v1681_v57 = vadd.f32 %v2654_v23, %v3269_v31  ;;  %1940 = vst [vmem:[%s3255_s8 + $0x80] sm:$0xff] %v1670_v15  ;;  %v2201_v35 = vadd.f32 %v2200_v28, %v2138_v24  ;;  %v2069_v61 = vadd.f32 %v2068_v27, %v1665_v52  ;;  %v2140_v43 = vmul.f32 %v1670_v15, %v1670_v15 }
 0x173   : > { %v1417_v16 = vpop.f32.mrf.mxu0  ;;  %v1672_v5 = vpop.f32.mrf.mxu1 }
 0x174   : > { %v1673_v32 = vadd.f32 %v1672_v5, %v3258_v7  ;;  %1943 = vst [vmem:[%s3255_s8 + $0x98] sm:$0xff] %v1681_v57  ;;  %v2070_v40 = vadd.f32 %v2069_v61, %v1670_v15  ;;  %v2202_v31 = vadd.f32 %v2201_v35, %v2139_v59  ;;  %v2143_v41 = vmul.f32 %v1681_v57, %v1681_v57 }
 0x175   : > { %v1420_v36 = vpop.f32.mrf.mxu0  ;;  %v2657_v37 = vpop.f32.mrf.mxu1 }
 0x176   : > { %v1694_v17 = vadd.f32 %v2657_v37, %v1404_v25  ;;  %1941 = vst [vmem:[%s3255_s8 + $0x88] sm:$0xff] %v1673_v32  ;;  %v2141_v29 = vmul.f32 %v1673_v32, %v1673_v32  ;;  %v2203_v48 = vadd.f32 %v2202_v31, %v2140_v43  ;;  %v2071_v7 = vadd.f32 %v2070_v40, %v1673_v32 }
 0x177   : > { %v1422_v39 = vpop.f32.mrf.mxu0  ;;  %v1685_v20 = vpop.f32.mrf.mxu1 }
 0x178   : > { %v1686_v47 = vadd.f32 %v1685_v20, %v3275_v51  ;;  %1946 = vst [vmem:[%s3255_s8 + $0xb0] sm:$0xff] %v1694_v17  ;;  %v2072_v56 = vadd.f32 %v2071_v7, %v1678_v53  ;;  %v2204_v25 = vadd.f32 %v2203_v48, %v2141_v29  ;;  %v2146_v28 = vmul.f32 %v1694_v17, %v1694_v17 }
 0x179   : > { %v1423_v9 = vpop.f32.mrf.mxu0  ;;  %v2658_v52 = vpop.f32.mrf.mxu1 }
 0x17a   : > { %v1697_v55 = vadd.f32 %v2658_v52, %v1407_v44  ;;  %1944 = vst [vmem:[%s3255_s8 + $0xa0] sm:$0xff] %v1686_v47  ;;  %v2205_v4 = vadd.f32 %v2204_v25, %v2142_v49  ;;  %v2073_v60 = vadd.f32 %v2072_v56, %v1681_v57  ;;  %v2144_v12 = vmul.f32 %v1686_v47, %v1686_v47 }
 0x17b   : > { %v1425_v21 = vpop.f32.mrf.mxu0  ;;  %v1688_v63 = vpop.f32.mrf.mxu1 }
 0x17c   : > { %v1689_v0 = vadd.f32 %v1688_v63, %v3281_v13  ;;  %1947 = vst [vmem:[%s3255_s8 + $0xb8] sm:$0xff] %v1697_v55  ;;  %v2074_v1 = vadd.f32 %v2073_v60, %v1686_v47  ;;  %v2206_v44 = vadd.f32 %v2205_v4, %v2143_v41  ;;  %v2147_v40 = vmul.f32 %v1697_v55, %v1697_v55 }
 0x17d   : > { %v1428_v51 = vpop.f32.mrf.mxu0  ;;  %v2661_v8 = vpop.f32.mrf.mxu1 }
 0x17e   : > { %v1710_v11 = vadd.f32 %v2661_v8, %v1420_v36  ;;  %1945 = vst [vmem:[%s3255_s8 + $0xa8] sm:$0xff] %v1689_v0  ;;  %v2145_v33 = vmul.f32 %v1689_v0, %v1689_v0  ;;  %v2207_v23 = vadd.f32 %v2206_v44, %v2144_v12  ;;  %v2075_v13 = vadd.f32 %v2074_v1, %v1689_v0 }
 0x17f   : > { %v1430_v15 = vpop.f32.mrf.mxu0  ;;  %v1701_v53 = vpop.f32.mrf.mxu1 }
 0x180   : > { %v1702_v19 = vadd.f32 %v1701_v53, %v3295_v3  ;;  %1950 = vst [vmem:[%s3255_s8 + $0xd0] sm:$0xff] %v1710_v11  ;;  %v2208_v16 = vadd.f32 %v2207_v23, %v2145_v33  ;;  %v2076_v59 = vadd.f32 %v2075_v13, %v1694_v17  ;;  %v2150_v1 = vmul.f32 %v1710_v11, %v1710_v11 }
 0x181   : > { %v1431_v24 = vpop.f32.mrf.mxu0  ;;  %v2662_v57 = vpop.f32.mrf.mxu1 }
 0x182   : > { %v1713_v27 = vadd.f32 %v2662_v57, %v1423_v9  ;;  %1948 = vst [vmem:[%s3255_s8 + $0xc0] sm:$0xff] %v1702_v19  ;;  %v2209_v61 = vadd.f32 %v2208_v16, %v2146_v28  ;;  %v2077_v39 = vadd.f32 %v2076_v59, %v1697_v55  ;;  %v2148_v48 = vmul.f32 %v1702_v19, %v1702_v19 }
 0x183   : > { %v1433_v5 = vpop.f32.mrf.mxu0  ;;  %v1704_v32 = vpop.f32.mrf.mxu1 }
 0x184   : > { %v1705_v35 = vadd.f32 %v1704_v32, %v3301_v45  ;;  %1951 = vst [vmem:[%s3255_s8 + $0xd8] sm:$0xff] %v1713_v27  ;;  %v2210_v29 = vadd.f32 %v2209_v61, %v2147_v40  ;;  %v2078_v52 = vadd.f32 %v2077_v39, %v1702_v19 }
 0x185   : > { %v1436_v36 = vpop.f32.mrf.mxu0  ;;  %v2665_v3 = vpop.f32.mrf.mxu1 }
 0x186   : > { %v3320_v37 = vadd.f32 %v2665_v3, %v1436_v36  ;;  %1949 = vst [vmem:[%s3255_s8 + $0xc8] sm:$0xff] %v1705_v35  ;;  %v2211_v56 = vadd.f32 %v2210_v29, %v2148_v48  ;;  %v2149_v25 = vmul.f32 %v1705_v35, %v1705_v35  ;;  %v2079_v41 = vadd.f32 %v2078_v52, %v1705_v35 }
 0x187   : > { %v1438_v43 = vpop.f32.mrf.mxu0  ;;  %v1717_v31 = vpop.f32.mrf.mxu1 }
 0x188   : > { %v1718_v20 = vadd.f32 %v1717_v31, %v1428_v51  ;;  %1954 = vst [vmem:[%s3255_s8 + $0xf0] sm:$0xff] %v3320_v37  ;;  %v2212_v60 = vadd.f32 %v2211_v56, %v2149_v25  ;;  %v2080_v15 = vadd.f32 %v2079_v41, %v1710_v11  ;;  %v2154_v52 = vmul.f32 %v3320_v37, %v3320_v37 }
 0x189   : > { %v1439_v17 = vpop.f32.mrf.mxu0  ;;  %v2666_v47 = vpop.f32.mrf.mxu1 }
 0x18a   : > { %v3325_v45 = vadd.f32 %v2666_v47, %v1439_v17  ;;  %1952 = vst [vmem:[%s3255_s8 + $0xe0] sm:$0xff] %v1718_v20  ;;  %v2213_v33 = vadd.f32 %v2212_v60, %v2150_v1  ;;  %v2081_v16 = vadd.f32 %v2080_v15, %v1713_v27  ;;  %v2152_v35 = vmul.f32 %v1718_v20, %v1718_v20 }
 0x18b   : > { %v1441_v7 = vpop.f32.mrf.mxu0  ;;  %v1720_v9 = vpop.f32.mrf.mxu1 }
 0x18c   : > { %v1721_v49 = vadd.f32 %v1720_v9, %v1431_v24  ;;  %1955 = vst [vmem:[%s3255_s8 + $0xf8] sm:$0xff] %v3325_v45  ;;  %v2151_v24 = vmul.f32 %v1713_v27, %v1713_v27  ;;  %v2082_v3 = vadd.f32 %v2081_v16, %v1718_v20  ;;  %v2155_v41 = vmul.f32 %v3325_v45, %v3325_v45 }
 0x18d   : > { %v1444_v55 = vpop.f32.mrf.mxu0  ;;  %v2669_v21 = vpop.f32.mrf.mxu1 }
 0x18e   : > { %1953 = vst [vmem:[%s3255_s8 + $0xe8] sm:$0xff] %v1721_v49  ;;  %v2214_v5 = vadd.f32 %v2213_v33, %v2151_v24  ;;  %v2153_v43 = vmul.f32 %v1721_v49, %v1721_v49  ;;  %v2083_v47 = vadd.f32 %v2082_v3, %v1721_v49 }
 0x18f   : > { %v1446_v63 = vpop.f32.mrf.mxu0  ;;  %v1733_v0 = vpop.f32.mrf.mxu1 }
 0x190   : > { %v3331_v4 = vadd.f32 %v1733_v0, %v1444_v55  ;;  %v2215_v40 = vadd.f32 %v2214_v5, %v2152_v35  ;;  %v2084_v55 = vadd.f32 %v2083_v47, %v3320_v37 }
 0x191   : > { %v1447_v51 = vpop.f32.mrf.mxu0  ;;  %v2670_v8 = vpop.f32.mrf.mxu1 }
 0x192   : > { %1956 = vst [vmem:[%s3255_s8 + $0x100] sm:$0xff] %v3331_v4  ;;  %v2216_v48 = vadd.f32 %v2215_v40, %v2153_v43  ;;  %v2156_v15 = vmul.f32 %v3331_v4, %v3331_v4 }
 0x193   : > { %v1449_v12 = vpop.f32.mrf.mxu0  ;;  %v1736_v44 = vpop.f32.mrf.mxu1 }
 0x194   : > { %v3335_v53 = vadd.f32 %v1736_v44, %v1447_v51 }
 0x195   : > { %v1452_v19 = vpop.f32.mrf.mxu0  ;;  %v2673_v23 = vpop.f32.mrf.mxu1 }
 0x196   : > { %v3337_v13 = vadd.f32 %v2669_v21, %v1452_v19  ;;  %1957 = vst [vmem:[%s3255_s8 + $0x108] sm:$0xff] %v3335_v53  ;;  %v2217_v21 = vadd.f32 %v2216_v48, %v2154_v52 }
 0x197   : > { %v1454_v57 = vpop.f32.mrf.mxu0  ;;  %v1749_v28 = vpop.f32.mrf.mxu1 }
 0x198   : > { %1958 = vst [vmem:[%s3255_s8 + $0x110] sm:$0xff] %v3337_v13  ;;  %v2218_v1 = vadd.f32 %v2217_v21, %v2155_v41 }
 0x199   : > { %v1455_v32 = vpop.f32.mrf.mxu0  ;;  %v2674_v59 = vpop.f32.mrf.mxu1 }
 0x19a   : > { %v3343_v11 = vadd.f32 %v2670_v8, %v1455_v32  ;;  %v2085_v8 = vadd.f32 %v2084_v55, %v3325_v45  ;;  %v2219_v24 = vadd.f32 %v2218_v1, %v2156_v15  ;;  %v2157_v45 = vmul.f32 %v3335_v53, %v3335_v53 }
 0x19b   : > { %v1457_v61 = vpop.f32.mrf.mxu0  ;;  %v1752_v36 = vpop.f32.mrf.mxu1 }
 0x19c   : > { %1959 = vst [vmem:[%s3255_s8 + $0x118] sm:$0xff] %v3343_v11  ;;  %v2220_v61 = vadd.f32 %v2219_v24, %v2157_v45 }
 0x19d   : > { %v1460_v31 = vpop.f32.mrf.mxu0  ;;  %v3345_v39 = vpop.f32.mrf.mxu1 }
 0x19e   : > { %v3349_v27 = vadd.f32 %v1749_v28, %v1460_v31 }
 0x19f   : > { %v1462_v29 = vpop.f32.mrf.mxu0  ;;  %v1765_v17 = vpop.f32.mrf.mxu1 }
 0x1a0   : > { %1960 = vst [vmem:[%s3255_s8 + $0x120] sm:$0xff] %v3349_v27  ;;  %v2160_v48 = vmul.f32 %v3349_v27, %v3349_v27 }
 0x1a1   : > { %v1463_v7 = vpop.f32.mrf.mxu0  ;;  %v3351_v9 = vpop.f32.mrf.mxu1 }
 0x1a2   : > { %v3355_v20 = vadd.f32 %v1752_v36, %v1463_v7  ;;  %v2158_v36 = vmul.f32 %v3337_v13, %v3337_v13 }
 0x1a3   : > { %v1465_v56 = vpop.f32.mrf.mxu0  ;;  %v1768_v25 = vpop.f32.mrf.mxu1 }
 0x1a4   : > { %1961 = vst [vmem:[%s3255_s8 + $0x128] sm:$0xff] %v3355_v20  ;;  %v2221_v47 = vadd.f32 %v2220_v61, %v2158_v36 }
 0x1a5   : > { %v1468_v63 = vpop.f32.mrf.mxu0  ;;  %v3360_v0 = vpop.f32.mrf.mxu1 }
 0x1a6   : > { %v3364_v49 = vadd.f32 %v2673_v23, %v1468_v63  ;;  %v2086_v23 = vadd.f32 %v2085_v8, %v3331_v4 }
 0x1a7   : > { %v1470_v60 = vpop.f32.mrf.mxu0  ;;  %v3368_v51 = vpop.f32.mrf.mxu1 }
 0x1a8   : > { %1962 = vst [vmem:[%s3255_s8 + $0x130] sm:$0xff] %v3364_v49  ;;  %v2087_v4 = vadd.f32 %v2086_v23, %v3335_v53 }
 0x1a9   : > { %v1471_v12 = vpop.f32.mrf.mxu0  ;;  %v3371_v37 = vpop.f32.mrf.mxu1 }
 0x1aa   : > { %v3375_v44 = vadd.f32 %v2674_v59, %v1471_v12  ;;  %v2088_v29 = vadd.f32 %v2087_v4, %v3337_v13 }
 0x1ab   : > { %v1473_v33 = vpop.f32.mrf.mxu0  ;;  %v3379_v19 = vpop.f32.mrf.mxu1 }
 0x1ac   : > { %1963 = vst [vmem:[%s3255_s8 + $0x138] sm:$0xff] %v3375_v44 }
 0x1ad   : > { %v1476_v57 = vpop.f32.mrf.mxu0  ;;  %v2685_v28 = vpop.f32.mrf.mxu1 }
 0x1ae   : > { %v3386_v16 = vadd.f32 %v1765_v17, %v1476_v57  ;;  %v3389_v5 = vadd.f32 %v2685_v28, %v3197_v2  ;;  %v2159_v2 = vmul.f32 %v3343_v11, %v3343_v11 }
 0x1af   : > { %v1478_v32 = vpop.f32.mrf.mxu0  ;;  %v1797_v59 = vpop.f32.mrf.mxu1 }
 0x1b0   : > { %v3393_v35 = vadd.f32 %v1797_v59, %v3191_v58  ;;  %1964 = vst [vmem:[%s3255_s8 + $0x140] sm:$0xff] %v3386_v16  ;;  %1974 = vst [vmem:[%s3255_s8 + $0x190] sm:$0xff] %v3389_v5  ;;  %v2222_v13 = vadd.f32 %v2221_v47, %v2159_v2  ;;  %v2164_v45 = vmul.f32 %v3386_v16, %v3386_v16 }
 0x1b1   : > { %v1479_v3 = vpop.f32.mrf.mxu0  ;;  %v2686_v40 = vpop.f32.mrf.mxu1 }
 0x1b2   : > { %v1769_v43 = vadd.f32 %v1768_v25, %v1479_v3  ;;  %v3404_v53 = vadd.f32 %v2686_v40, %v3201_v6  ;;  %1972 = vst [vmem:[%s3255_s8 + $0x180] sm:$0xff] %v3393_v35  ;;  %v2089_v6 = vadd.f32 %v2088_v29, %v3343_v11 }
 0x1b3   : > { %v1481_v58 = vpop.f32.mrf.mxu0  ;;  %v1800_v31 = vpop.f32.mrf.mxu1 }
 0x1b4   : > { %v3410_v17 = vadd.f32 %v1800_v31, %v3195_v62  ;;  %v2161_v62 = vmul.f32 %v3355_v20, %v3355_v20  ;;  %1965 = vst [vmem:[%s3255_s8 + $0x148] sm:$0xff] %v1769_v43  ;;  %1975 = vst [vmem:[%s3255_s8 + $0x198] sm:$0xff] %v3404_v53  ;;  %v2090_v63 = vadd.f32 %v2089_v6, %v3349_v27 }
 0x1b5   : > { %v1484_v7 = vpop.f32.mrf.mxu0  ;;  %v2689_v52 = vpop.f32.mrf.mxu1  ;;  %v2163_v27 = vmul.f32 %v3375_v44, %v3375_v44  ;;  %v2165_v59 = vmul.f32 %v1769_v43, %v1769_v43 }
 0x1b6   : > { %v1774_v56 = vadd.f32 %v3345_v39, %v1484_v7  ;;  %v3417_v25 = vadd.f32 %v2689_v52, %v3211_v18  ;;  %1973 = vst [vmem:[%s3255_s8 + $0x188] sm:$0xff] %v3410_v17  ;;  %v2223_v18 = vadd.f32 %v2222_v13, %v2160_v48  ;;  %v2162_v39 = vmul.f32 %v3364_v49, %v3364_v49 }
 0x1b7   : > { %v1486_v55 = vpop.f32.mrf.mxu0  ;;  %v1813_v21 = vpop.f32.mrf.mxu1  ;;  %v2091_v8 = vadd.f32 %v2090_v63, %v3355_v20 }
 0x1b8   : > { %v3428_v11 = vadd.f32 %v1813_v21, %v3205_v10  ;;  %1966 = vst [vmem:[%s3255_s8 + $0x150] sm:$0xff] %v1774_v56  ;;  %1978 = vst [vmem:[%s3255_s8 + $0x1b0] sm:$0xff] %v3417_v25  ;;  %v2224_v1 = vadd.f32 %v2223_v18, %v2161_v62  ;;  %v2166_v36 = vmul.f32 %v1774_v56, %v1774_v56 }
 0x1b9   : > { %v1487_v41 = vpop.f32.mrf.mxu0  ;;  %v2690_v60 = vpop.f32.mrf.mxu1  ;;  %v2092_v23 = vadd.f32 %v2091_v8, %v3364_v49 }
 0x1ba   : > { %v1777_v12 = vadd.f32 %v3351_v9, %v1487_v41  ;;  %v3440_v10 = vadd.f32 %v2690_v60, %v3215_v22  ;;  %1976 = vst [vmem:[%s3255_s8 + $0x1a0] sm:$0xff] %v3428_v11  ;;  %v2225_v24 = vadd.f32 %v2224_v1, %v2162_v39 }
 0x1bb   : > { %v1489_v15 = vpop.f32.mrf.mxu0  ;;  %v1816_v33 = vpop.f32.mrf.mxu1  ;;  %v2093_v49 = vadd.f32 %v2092_v23, %v3375_v44 }
 0x1bc   : > { %v3446_v20 = vadd.f32 %v1816_v33, %v3209_v14  ;;  %v2226_v32 = vadd.f32 %v2225_v24, %v2163_v27  ;;  %1967 = vst [vmem:[%s3255_s8 + $0x158] sm:$0xff] %v1777_v12  ;;  %1979 = vst [vmem:[%s3255_s8 + $0x1b8] sm:$0xff] %v3440_v10  ;;  %v2167_v47 = vmul.f32 %v1777_v12, %v1777_v12 }
 0x1bd   : > { %v1492_v9 = vpop.f32.mrf.mxu0  ;;  %v2693_v57 = vpop.f32.mrf.mxu1 }
 0x1be   : > { %v1782_v22 = vadd.f32 %v3368_v51, %v1492_v9  ;;  %v3452_v28 = vadd.f32 %v2693_v57, %v3227_v34  ;;  %1977 = vst [vmem:[%s3255_s8 + $0x1a8] sm:$0xff] %v3446_v20  ;;  %v2094_v51 = vadd.f32 %v2093_v49, %v3386_v16  ;;  %v2227_v34 = vadd.f32 %v2226_v32, %v2164_v45 }
 0x1bf   : > { %v1494_v14 = vpop.f32.mrf.mxu0  ;;  %v1829_v4 = vpop.f32.mrf.mxu1  ;;  %v2172_v45 = vmul.f32 %v3393_v35, %v3393_v35 }
 0x1c0   : > { %v3461_v61 = vadd.f32 %v1829_v4, %v3219_v26  ;;  %1968 = vst [vmem:[%s3255_s8 + $0x160] sm:$0xff] %v1782_v22  ;;  %1982 = vst [vmem:[%s3255_s8 + $0x1d0] sm:$0xff] %v3452_v28  ;;  %v2095_v44 = vadd.f32 %v2094_v51, %v1769_v43  ;;  %v2228_v2 = vadd.f32 %v2227_v34, %v2165_v59 }
 0x1c1   : > { %v1495_v3 = vpop.f32.mrf.mxu0  ;;  %v2694_v40 = vpop.f32.mrf.mxu1  ;;  %v2168_v6 = vmul.f32 %v1782_v22, %v1782_v22  ;;  %v2175_v59 = vmul.f32 %v3404_v53, %v3404_v53 }
 0x1c2   : > { %v1785_v58 = vadd.f32 %v3379_v19, %v1495_v3  ;;  %v3469_v31 = vadd.f32 %v2694_v40, %v3231_v38  ;;  %1980 = vst [vmem:[%s3255_s8 + $0x1c0] sm:$0xff] %v3461_v61  ;;  %v2096_v48 = vadd.f32 %v2095_v44, %v1774_v56  ;;  %v2229_v7 = vadd.f32 %v2228_v2, %v2166_v36 }
 0x1c3   : > { %v1497_v26 = vpop.f32.mrf.mxu0  ;;  %v1832_v29 = vpop.f32.mrf.mxu1 }
 0x1c4   : > { %v3474_v16 = vadd.f32 %v1832_v29, %v3223_v30  ;;  %v2097_v13 = vadd.f32 %v2096_v48, %v1777_v12  ;;  %1969 = vst [vmem:[%s3255_s8 + $0x168] sm:$0xff] %v1785_v58  ;;  %1983 = vst [vmem:[%s3255_s8 + $0x1d8] sm:$0xff] %v3469_v31  ;;  %v2230_v30 = vadd.f32 %v2229_v7, %v2167_v47 }
 0x1c5   : > { %v1500_v43 = vpop.f32.mrf.mxu0  ;;  %v2697_v52 = vpop.f32.mrf.mxu1  ;;  %v2169_v63 = vmul.f32 %v1785_v58, %v1785_v58 }
 0x1c6   : > { %v1790_v19 = vadd.f32 %v3360_v0, %v1500_v43  ;;  %v3478_v38 = vadd.f32 %v2697_v52, %v3243_v50  ;;  %1981 = vst [vmem:[%s3255_s8 + $0x1c8] sm:$0xff] %v3474_v16  ;;  %v2098_v21 = vadd.f32 %v2097_v13, %v1782_v22  ;;  %v2231_v39 = vadd.f32 %v2230_v30, %v2168_v6 }
 0x1c7   : > { %v1502_v62 = vpop.f32.mrf.mxu0  ;;  %v1845_v55 = vpop.f32.mrf.mxu1  ;;  %v2174_v22 = vmul.f32 %v3389_v5, %v3389_v5  ;;  %v2183_v43 = vmul.f32 %v3469_v31, %v3469_v31 }
 0x1c8   : > { %v1846_v56 = vadd.f32 %v1845_v55, %v3235_v42  ;;  %1970 = vst [vmem:[%s3255_s8 + $0x170] sm:$0xff] %v1790_v19  ;;  %1986 = vst [vmem:[%s3255_s8 + $0x1f0] sm:$0xff] %v3478_v38  ;;  %v2099_v50 = vadd.f32 %v2098_v21, %v1785_v58  ;;  %v2170_v41 = vmul.f32 %v1790_v19, %v1790_v19 }
 0x1c9   : > { %v1503_v18 = vpop.f32.mrf.mxu0  ;;  %v2698_v0 = vpop.f32.mrf.mxu1  ;;  %v2232_v12 = vadd.f32 %v2231_v39, %v2169_v63  ;;  %v2186_v30 = vmul.f32 %v3478_v38, %v3478_v38 }
 0x1ca   : > { %v1793_v60 = vadd.f32 %v3371_v37, %v1503_v18  ;;  %v1857_v8 = vadd.f32 %v2698_v0, %v3247_v54  ;;  %1984 = vst [vmem:[%s3255_s8 + $0x1e0] sm:$0xff] %v1846_v56  ;;  %v2100_v15 = vadd.f32 %v2099_v50, %v1790_v19  ;;  %v2173_v54 = vmul.f32 %v3410_v17, %v3410_v17 }
 0x1cb   : > { %v1505_v1 = vpop.f32.mrf.mxu0  ;;  %v1848_v27 = vpop.f32.mrf.mxu1  ;;  %v2233_v33 = vadd.f32 %v2232_v12, %v2170_v41  ;;  %v2184_v6 = vmul.f32 %v1846_v56, %v1846_v56 }
 0x1cc   : > { %v1849_v42 = vadd.f32 %v1848_v27, %v3239_v46  ;;  %1971 = vst [vmem:[%s3255_s8 + $0x178] sm:$0xff] %v1793_v60  ;;  %v2101_v23 = vadd.f32 %v2100_v15, %v1793_v60  ;;  %v2171_v24 = vmul.f32 %v1793_v60, %v1793_v60  ;;  %1987 = vst [vmem:[%s3255_s8 + $0x1f8] sm:$0xff] %v1857_v8 }
 0x1cd   : > { %v2187_v63 = vmul.f32 %v1857_v8, %v1857_v8 }
 0x1ce   : > { %1985 = vst [vmem:[%s3255_s8 + $0x1e8] sm:$0xff] %v1849_v42  ;;  %v2102_v37 = vadd.f32 %v2101_v23, %v3393_v35  ;;  %v2234_v9 = vadd.f32 %v2233_v33, %v2171_v24  ;;  %v2176_v35 = vmul.f32 %v3428_v11, %v3428_v11 }
 0x1d0   : > { %v2103_v57 = vadd.f32 %v2102_v37, %v3410_v17  ;;  %v2235_v46 = vadd.f32 %v2234_v9, %v2172_v45  ;;  %v2177_v17 = vmul.f32 %v3446_v20, %v3446_v20 }
 0x1d2   : > { %v2104_v49 = vadd.f32 %v2103_v57, %v3389_v5  ;;  %v2236_v32 = vadd.f32 %v2235_v46, %v2173_v54  ;;  %v2178_v5 = vmul.f32 %v3417_v25, %v3417_v25 }
 0x1d4   : > { %v2105_v14 = vadd.f32 %v2104_v49, %v3404_v53  ;;  %v2237_v4 = vadd.f32 %v2236_v32, %v2174_v22  ;;  %v2179_v53 = vmul.f32 %v3440_v10, %v3440_v10 }
 0x1d6   : > { %v2106_v51 = vadd.f32 %v2105_v14, %v3428_v11  ;;  %v2238_v34 = vadd.f32 %v2237_v4, %v2175_v59  ;;  %v2180_v11 = vmul.f32 %v3461_v61, %v3461_v61 }
 0x1d8   : > { %v2107_v36 = vadd.f32 %v2106_v51, %v3446_v20  ;;  %v2239_v3 = vadd.f32 %v2238_v34, %v2176_v35  ;;  %v2181_v20 = vmul.f32 %v3474_v16, %v3474_v16 }
 0x1da   : > { %v2240_v40 = vadd.f32 %v2239_v3, %v2177_v17  ;;  %v2108_v44 = vadd.f32 %v2107_v36, %v3417_v25  ;;  %v2182_v25 = vmul.f32 %v3452_v28, %v3452_v28 }
 0x1dc   : > { %v2109_v2 = vadd.f32 %v2108_v44, %v3440_v10  ;;  %v2241_v58 = vadd.f32 %v2240_v40, %v2178_v5 }
 0x1de   : > { %v2110_v26 = vadd.f32 %v2109_v2, %v3461_v61  ;;  %v2242_v29 = vadd.f32 %v2241_v58, %v2179_v53 }
 0x1e0   : > { %v2111_v47 = vadd.f32 %v2110_v26, %v3474_v16  ;;  %v2243_v48 = vadd.f32 %v2242_v29, %v2180_v11  ;;  %v2185_v16 = vmul.f32 %v1849_v42, %v1849_v42 }
 0x1e2   : > { %v2112_v7 = vadd.f32 %v2111_v47, %v3452_v28  ;;  %v2244_v10 = vadd.f32 %v2243_v48, %v2181_v20 }
 0x1e4   : > { %v2113_v52 = vadd.f32 %v2112_v7, %v3469_v31  ;;  %v2245_v61 = vadd.f32 %v2244_v10, %v2182_v25 }
 0x1e6   : > { %v2114_v19 = vadd.f32 %v2113_v52, %v1846_v56  ;;  %v2246_v13 = vadd.f32 %v2245_v61, %v2183_v43 }
 0x1e8   : > { %v2115_v62 = vadd.f32 %v2114_v19, %v1849_v42  ;;  %v2247_v55 = vadd.f32 %v2246_v13, %v2184_v6 }
 0x1ea   : > { %v2116_v21 = vadd.f32 %v2115_v62, %v3478_v38  ;;  %v2248_v28 = vadd.f32 %v2247_v55, %v2185_v16 }
 0x1ec   : > { %v2117_v18 = vadd.f32 %v2116_v21, %v1857_v8  ;;  %v2249_v0 = vadd.f32 %v2248_v28, %v2186_v30 }
 0x1ee   : > { %v2118_v39 = vrot.slane %v2117_v18, 4  ;;  %v2250_v31 = vadd.f32 %v2249_v0, %v2187_v63 }
 0x1f0   : > { %v2119_v50 = vadd.f32 %v2118_v39, %v2117_v18  ;;  %v2251_v41 = vrot.slane %v2250_v31, 4 }
 0x1f2   : > { %v2120_v56 = vrot.slane %v2119_v50, 2  ;;  %v2252_v60 = vadd.f32 %v2251_v41, %v2250_v31 }
 0x1f4   : > { %v2121_v1 = vadd.f32 %v2120_v56, %v2119_v50  ;;  %v2253_v27 = vrot.slane %v2252_v60, 2 }
 0x1f6   : > { %v2122_v42 = vrot.slane %v2121_v1, 1  ;;  %v2254_v12 = vadd.f32 %v2253_v27, %v2252_v60 }
 0x1f8   : > { %v2123_v38 = vadd.f32 %v2122_v42, %v2121_v1  ;;  %v2255_v15 = vrot.slane %v2254_v12, 1 }
 0x1fa   : > { %v2256_v8 = vadd.f32 %v2255_v15, %v2254_v12  ;;  %2258 = vst [vmem:[%s309_s11] sm:$0xff] %v2123_v38 }
 0x1fc   : > { %2260 = vst [vmem:[%s316_s14] sm:$0xff] %v2256_v8 }
 0x1fd PF: > { %s15_s17 = sadd.s32 1, %s2932_s17   ;;  %s3557_s15 = smov %s2928_s16 }
 0x1fe   : > { %p12_p6 = scmp.ge.s32.totalorder %s15_s17, 4   ;;  %s3558_s16 = smov %s3560_s18 }
 0x200   :  { %14 = sbr.rel (!%p12_p6) target bundleno = 2 (0x2), region = 93 }

// kernel: dense_up_block_forward.34
= control target key start
LH: loop header
LB: loop body
LE: loop exit
PB: predicated region body
PF: predicated region fallthrough
CT: control target
= control target key end

     0   :  { %s3113_s15 = smov 0   ;;  %s3115_s16 = smov 0   ;;  %s3629_s0 = inlined_call_operand.vmem [shape: bf16[1024,512], index: 0, kind: input, shape index: {}]   ;;  %s3630_s1 = inlined_call_operand.vmem [shape: bf16[512,128], index: 1, kind: input, shape index: {}]   ;;  %s3631_s2 = inlined_call_operand.vmem [shape: f32[1024,128], index: 2, kind: output, shape index: {0}]   ;;  %s3632_s3 = inlined_call_operand.vmem [shape: f32[16,128], index: 3, kind: output, shape index: {1}]   ;;  %s3633_s4 = inlined_call_operand.vmem [shape: f32[16,128], index: 4, kind: output, shape index: {2}]  }
   0x1   :  { %s3117_s17 = smov 0  }
   0x2 LB: > { %s34_s18 = sadd.s32 1, %s3081_s16  ;;  %p2642_p0 = scmp.ge.s32.totalorder %s3085_s17, 1  ;;  %s3085_s17 = sphi %s3117_s17, %s15_s17   ;;  %s3081_s16 = sphi %s3115_s16, %s3635_s16   ;;  %s3077_s15 = sphi %s3113_s15, %s3634_s15  }
   0x3   : > { %p36_p1 = scmp.ge.s32.totalorder %s34_s18, 2  ;;  %p217_p2 = scmp.lt.s32.totalorder %s3085_s17, 3 }
   0x5   : > { %s3637_s18 = smov (%p36_p1, %s34_s18), 0  ;;  %p218_p3 = pnand %p2642_p0, %p217_p2 }
   0x6   : > { %s2643_s13 = sshll.u32 (!%p218_p3), %s3077_s15, 6  ;;  %p303_p5 = scmp.lt.s32.totalorder (!%p218_p3), %s3077_s15, 1 }
   0x7   : > { %221 = sbr.rel (%p218_p3) target bundleno = 541 (0x21d), region = 28  ;;  %p275_p4 = scmp.lt.s32.totalorder (!%p218_p3), %s2643_s13, 127 }
   0xc   : > { %v2839_v0 = vld [vmem:[%s3630_s1 + $0x38] sm:$0xff]   ;;  %v3087_v1 = vmov 0   ;;  %v2841_v3 = vld [vmem:[%s3630_s1 + $0x30] sm:$0xff]   ;;  %v2843_v5 = vld [vmem:[%s3630_s1 + $0x28] sm:$0xff]   ;;  %s3639_s13 = smov (!%p275_p4, %s2643_s13), 127  ;;  %s3641_s15 = smov (!%p303_p5, %s3077_s15), 1 }
   0xd   : > { %1474 = vmatprep.subr.bf16.mxu0 %v3087_v1  ;;  %1763 = vmatprep.subr.bf16.mxu1 %v3087_v1  ;;  %v2840_v2 = vld [vmem:[%s3630_s1 + $0xb8] sm:$0xff]   ;;  %v2842_v4 = vld [vmem:[%s3630_s1 + $0xb0] sm:$0xff]   ;;  %v2844_v6 = vld [vmem:[%s3630_s1 + $0xa8] sm:$0xff]   ;;  %s2812_s30 = sshll.u32 %s3639_s13, 4  ;;  %s2647_s25 = sshll.u32 %s3639_s13, 3 }
   0xe   : > { %1475 = vmatpush1.bf16.msra.mxu0 %v2839_v0  ;;  %1764 = vmatpush1.bf16.msra.mxu1 %v2840_v2  ;;  %v2845_v7 = vld [vmem:[%s3630_s1 + $0x20] sm:$0xff]   ;;  %v2847_v9 = vld [vmem:[%s3630_s1 + $0x18] sm:$0xff]   ;;  %v2849_v11 = vld [vmem:[%s3630_s1 + $0x10] sm:$0xff]   ;;  %s3207_s9 = scalar_lea.vmem %s3629_s0, %s2812_s30  ;;  %s3376_s28 = scalar_lea.vmem %s3631_s2, %s2647_s25 }
   0xf   : > { %1476 = vmatprep.subr.bf16.mxu0 %v3087_v1  ;;  %1765 = vmatprep.subr.bf16.mxu1 %v3087_v1  ;;  %v2846_v8 = vld [vmem:[%s3630_s1 + $0xa0] sm:$0xff]   ;;  %v2848_v10 = vld [vmem:[%s3630_s1 + $0x98] sm:$0xff]   ;;  %v2850_v12 = vld [vmem:[%s3630_s1 + $0x90] sm:$0xff]   ;;  %s2648_s13 = sshll.u32 %s3641_s15, 3 }
  0x10   : > { %v2851_v13 = vld [vmem:[%s3630_s1 + $0x8] sm:$0xff]   ;;  %v2853_v15 = vld [vmem:[%s3630_s1] sm:$0xff]   ;;  %v2855_v17 = vld [vmem:[%s3630_s1 + $0x78] sm:$0xff]   ;;  %s309_s30 = scalar_lea.vmem %s3632_s3, %s2648_s13  ;;  %s316_s7 = scalar_lea.vmem %s3633_s4, %s2648_s13 }
  0x11   : > { %v2852_v14 = vld [vmem:[%s3630_s1 + $0x88] sm:$0xff]   ;;  %v2854_v16 = vld [vmem:[%s3630_s1 + $0x80] sm:$0xff]   ;;  %v2856_v18 = vld [vmem:[%s3630_s1 + $0xf8] sm:$0xff]  }
  0x12   : > { %1477 = vmatpush1.bf16.msra.mxu0 %v2841_v3  ;;  %1766 = vmatpush1.bf16.msra.mxu1 %v2842_v4  ;;  %v2873_v19 = vld [vmem:[%s3207_s9 + $0x4] ss:$16 sps:$4 sm:$0xff]   ;;  %v2876_v21 = vld [vmem:[%s3207_s9 + $0xc] ss:$16 sps:$4 sm:$0xff]   ;;  %v2871_v35 = vld [vmem:[%s3207_s9] ss:$16 sps:$4 sm:$0xff]  }
  0x13   : > { %1478 = vmatprep.subr.bf16.mxu0 %v3087_v1  ;;  %1767 = vmatprep.subr.bf16.mxu1 %v3087_v1  ;;  %v2857_v20 = vld [vmem:[%s3630_s1 + $0x70] sm:$0xff]   ;;  %v2859_v23 = vld [vmem:[%s3630_s1 + $0x68] sm:$0xff]   ;;  %v2861_v25 = vld [vmem:[%s3630_s1 + $0x60] sm:$0xff]  }
  0x14   : > { %v2858_v22 = vld [vmem:[%s3630_s1 + $0xf0] sm:$0xff]   ;;  %1506 = vmatprep.mubr.bf16.mxu0 %v2873_v19  ;;  %1795 = vmatprep.mubr.bf16.mxu1 %v2876_v21  ;;  %v2860_v24 = vld [vmem:[%s3630_s1 + $0xe8] sm:$0xff]   ;;  %v2862_v26 = vld [vmem:[%s3630_s1 + $0xe0] sm:$0xff]  }
  0x15   : > { %v2863_v27 = vld [vmem:[%s3630_s1 + $0x58] sm:$0xff]   ;;  %v2865_v29 = vld [vmem:[%s3630_s1 + $0x50] sm:$0xff]   ;;  %v2867_v31 = vld [vmem:[%s3630_s1 + $0x48] sm:$0xff]  }
  0x16   : > { %1479 = vmatpush1.bf16.msra.mxu0 %v2843_v5  ;;  %1768 = vmatpush1.bf16.msra.mxu1 %v2844_v6  ;;  %v2864_v28 = vld [vmem:[%s3630_s1 + $0xd8] sm:$0xff]   ;;  %v2866_v30 = vld [vmem:[%s3630_s1 + $0xd0] sm:$0xff]   ;;  %v2868_v32 = vld [vmem:[%s3630_s1 + $0xc8] sm:$0xff]  }
  0x17   : > { %1480 = vmatprep.subr.bf16.mxu0 %v3087_v1  ;;  %1769 = vmatprep.subr.bf16.mxu1 %v3087_v1  ;;  %v2869_v33 = vld [vmem:[%s3630_s1 + $0x40] sm:$0xff]   ;;  %v2874_v36 = vld [vmem:[%s3207_s9 + $0x8] ss:$16 sps:$4 sm:$0xff]   ;;  %v2879_v38 = vld [vmem:[%s3207_s9 + $0x2c] ss:$16 sps:$4 sm:$0xff]  }
  0x18   : > { %v2870_v34 = vld [vmem:[%s3630_s1 + $0xc0] sm:$0xff]   ;;  %v2882_v40 = vld [vmem:[%s3207_s9 + $0x28] ss:$16 sps:$4 sm:$0xff]   ;;  %v2885_v42 = vld [vmem:[%s3207_s9 + $0x4c] ss:$16 sps:$4 sm:$0xff]  }
  0x19   : > { %v2877_v37 = vld [vmem:[%s3207_s9 + $0x24] ss:$16 sps:$4 sm:$0xff]   ;;  %v2881_v39 = vld [vmem:[%s3207_s9 + $0x20] ss:$16 sps:$4 sm:$0xff]   ;;  %v2888_v44 = vld [vmem:[%s3207_s9 + $0x48] ss:$16 sps:$4 sm:$0xff]  }
  0x1a   : > { %1481 = vmatpush1.bf16.msra.mxu0 %v2845_v7  ;;  %1770 = vmatpush1.bf16.msra.mxu1 %v2846_v8  ;;  %v2883_v41 = vld [vmem:[%s3207_s9 + $0x44] ss:$16 sps:$4 sm:$0xff]   ;;  %v2887_v43 = vld [vmem:[%s3207_s9 + $0x40] ss:$16 sps:$4 sm:$0xff]   ;;  %v2891_v46 = vld [vmem:[%s3207_s9 + $0x6c] ss:$16 sps:$4 sm:$0xff]  }
  0x1b   : > { %1482 = vmatprep.subr.bf16.mxu0 %v3087_v1  ;;  %1771 = vmatprep.subr.bf16.mxu1 %v3087_v1  ;;  %v2889_v45 = vld [vmem:[%s3207_s9 + $0x64] ss:$16 sps:$4 sm:$0xff]   ;;  %v2893_v47 = vld [vmem:[%s3207_s9 + $0x60] ss:$16 sps:$4 sm:$0xff]   ;;  %v2894_v48 = vld [vmem:[%s3207_s9 + $0x68] ss:$16 sps:$4 sm:$0xff]  }
  0x1c   : > { %v2895_v49 = vld [vmem:[%s3207_s9 + $0x84] ss:$16 sps:$4 sm:$0xff]   ;;  %v2897_v50 = vld [vmem:[%s3207_s9 + $0x8c] ss:$16 sps:$4 sm:$0xff]   ;;  %v2899_v51 = vld [vmem:[%s3207_s9 + $0x80] ss:$16 sps:$4 sm:$0xff]  }
  0x1d   : > { %v2900_v52 = vld [vmem:[%s3207_s9 + $0x88] ss:$16 sps:$4 sm:$0xff]   ;;  %v2901_v53 = vld [vmem:[%s3207_s9 + $0xa4] ss:$16 sps:$4 sm:$0xff]   ;;  %v2903_v54 = vld [vmem:[%s3207_s9 + $0xac] ss:$16 sps:$4 sm:$0xff]  }
  0x1e   : > { %1483 = vmatpush1.bf16.msra.mxu0 %v2847_v9  ;;  %1772 = vmatpush1.bf16.msra.mxu1 %v2848_v10  ;;  %v2905_v55 = vld [vmem:[%s3207_s9 + $0xa0] ss:$16 sps:$4 sm:$0xff]   ;;  %v2906_v56 = vld [vmem:[%s3207_s9 + $0xa8] ss:$16 sps:$4 sm:$0xff]   ;;  %v2907_v57 = vld [vmem:[%s3207_s9 + $0xc4] ss:$16 sps:$4 sm:$0xff]  }
  0x1f   : > { %1484 = vmatprep.subr.bf16.mxu0 %v3087_v1  ;;  %1773 = vmatprep.subr.bf16.mxu1 %v3087_v1  ;;  %v2909_v58 = vld [vmem:[%s3207_s9 + $0xcc] ss:$16 sps:$4 sm:$0xff]   ;;  %v2911_v59 = vld [vmem:[%s3207_s9 + $0xc0] ss:$16 sps:$4 sm:$0xff]   ;;  %v2912_v60 = vld [vmem:[%s3207_s9 + $0xc8] ss:$16 sps:$4 sm:$0xff]  }
  0x20   : > { %v2913_v61 = vld [vmem:[%s3207_s9 + $0xe4] ss:$16 sps:$4 sm:$0xff]   ;;  %v2915_v62 = vld [vmem:[%s3207_s9 + $0xec] ss:$16 sps:$4 sm:$0xff]   ;;  %v2917_v63 = vld [vmem:[%s3207_s9 + $0xe0] ss:$16 sps:$4 sm:$0xff]  }
  0x21   : > { %v2918_v0 = vld [vmem:[%s3207_s9 + $0xe8] ss:$16 sps:$4 sm:$0xff]   ;;  %v2921_v2 = vld [vmem:[%s3207_s9 + $0x10c] ss:$16 sps:$4 sm:$0xff]   ;;  %v2923_v3 = vld [vmem:[%s3207_s9 + $0x100] ss:$16 sps:$4 sm:$0xff]  }
  0x22   : > { %1485 = vmatpush1.bf16.msra.mxu0 %v2849_v11  ;;  %1774 = vmatpush1.bf16.msra.mxu1 %v2850_v12  ;;  %v2924_v4 = vld [vmem:[%s3207_s9 + $0x108] ss:$16 sps:$4 sm:$0xff]   ;;  %v2925_v5 = vld [vmem:[%s3207_s9 + $0x124] ss:$16 sps:$4 sm:$0xff]   ;;  %v2927_v6 = vld [vmem:[%s3207_s9 + $0x12c] ss:$16 sps:$4 sm:$0xff]  }
  0x23   : > { %1486 = vmatprep.subr.bf16.mxu0 %v3087_v1  ;;  %1775 = vmatprep.subr.bf16.mxu1 %v3087_v1  ;;  %v2929_v7 = vld [vmem:[%s3207_s9 + $0x120] ss:$16 sps:$4 sm:$0xff]   ;;  %v2930_v8 = vld [vmem:[%s3207_s9 + $0x128] ss:$16 sps:$4 sm:$0xff]   ;;  %v2931_v9 = vld [vmem:[%s3207_s9 + $0x144] ss:$16 sps:$4 sm:$0xff]  }
  0x24   : > { %v2933_v10 = vld [vmem:[%s3207_s9 + $0x14c] ss:$16 sps:$4 sm:$0xff]   ;;  %v2935_v11 = vld [vmem:[%s3207_s9 + $0x140] ss:$16 sps:$4 sm:$0xff]   ;;  %v2936_v12 = vld [vmem:[%s3207_s9 + $0x148] ss:$16 sps:$4 sm:$0xff]  }
  0x25   : > { %v2947_v19 = vld [vmem:[%s3207_s9 + $0x180] ss:$16 sps:$4 sm:$0xff]   ;;  %v2949_v21 = vld [vmem:[%s3207_s9 + $0x1a4] ss:$16 sps:$4 sm:$0xff]  }
  0x26   : > { %1487 = vmatpush1.bf16.msra.mxu0 %v2851_v13  ;;  %1776 = vmatpush1.bf16.msra.mxu1 %v2852_v14  ;;  %v2937_v13 = vld [vmem:[%s3207_s9 + $0x164] ss:$16 sps:$4 sm:$0xff]   ;;  %v2939_v14 = vld [vmem:[%s3207_s9 + $0x16c] ss:$16 sps:$4 sm:$0xff]  }
  0x27   : > { %1488 = vmatprep.subr.bf16.mxu0 %v3087_v1  ;;  %1777 = vmatprep.subr.bf16.mxu1 %v3087_v1 }
  0x2a   : > { %1489 = vmatpush1.bf16.msra.mxu0 %v2853_v15  ;;  %1778 = vmatpush1.bf16.msra.mxu1 %v2854_v16  ;;  %v2941_v15 = vld [vmem:[%s3207_s9 + $0x160] ss:$16 sps:$4 sm:$0xff]   ;;  %v2942_v16 = vld [vmem:[%s3207_s9 + $0x168] ss:$16 sps:$4 sm:$0xff]  }
  0x2b   : > { %1490 = vmatprep.subr.bf16.mxu0 %v3087_v1  ;;  %1779 = vmatprep.subr.bf16.mxu1 %v3087_v1 }
  0x2e   : > { %1491 = vmatpush2.bf16.msra.mxu0 %v2855_v17  ;;  %1780 = vmatpush2.bf16.msra.mxu1 %v2856_v18  ;;  %v2943_v17 = vld [vmem:[%s3207_s9 + $0x184] ss:$16 sps:$4 sm:$0xff]   ;;  %v2945_v18 = vld [vmem:[%s3207_s9 + $0x18c] ss:$16 sps:$4 sm:$0xff]  }
  0x2f   : > { %1492 = vmatprep.subr.bf16.mxu0 %v3087_v1  ;;  %1781 = vmatprep.subr.bf16.mxu1 %v3087_v1 }
  0x32   : > { %1493 = vmatpush2.bf16.msra.mxu0 %v2857_v20  ;;  %1782 = vmatpush2.bf16.msra.mxu1 %v2858_v22  ;;  %v2948_v20 = vld [vmem:[%s3207_s9 + $0x188] ss:$16 sps:$4 sm:$0xff]   ;;  %v2951_v22 = vld [vmem:[%s3207_s9 + $0x1ac] ss:$16 sps:$4 sm:$0xff]  }
  0x33   : > { %1494 = vmatprep.subr.bf16.mxu0 %v3087_v1  ;;  %1783 = vmatprep.subr.bf16.mxu1 %v3087_v1 }
  0x36   : > { %1495 = vmatpush2.bf16.msra.mxu0 %v2859_v23  ;;  %1784 = vmatpush2.bf16.msra.mxu1 %v2860_v24  ;;  %v2953_v23 = vld [vmem:[%s3207_s9 + $0x1a0] ss:$16 sps:$4 sm:$0xff]   ;;  %v2954_v24 = vld [vmem:[%s3207_s9 + $0x1a8] ss:$16 sps:$4 sm:$0xff]  }
  0x37   : > { %1496 = vmatprep.subr.bf16.mxu0 %v3087_v1  ;;  %1785 = vmatprep.subr.bf16.mxu1 %v3087_v1 }
  0x3a   : > { %1497 = vmatpush2.bf16.msra.mxu0 %v2861_v25  ;;  %1786 = vmatpush2.bf16.msra.mxu1 %v2862_v26  ;;  %v2955_v25 = vld [vmem:[%s3207_s9 + $0x1c4] ss:$16 sps:$4 sm:$0xff]   ;;  %v2957_v26 = vld [vmem:[%s3207_s9 + $0x1cc] ss:$16 sps:$4 sm:$0xff]  }
  0x3b   : > { %1498 = vmatprep.subr.bf16.mxu0 %v3087_v1  ;;  %1787 = vmatprep.subr.bf16.mxu1 %v3087_v1 }
  0x3e   : > { %1499 = vmatpush2.bf16.msra.mxu0 %v2863_v27  ;;  %1788 = vmatpush2.bf16.msra.mxu1 %v2864_v28  ;;  %v2959_v27 = vld [vmem:[%s3207_s9 + $0x1c0] ss:$16 sps:$4 sm:$0xff]   ;;  %v2960_v28 = vld [vmem:[%s3207_s9 + $0x1c8] ss:$16 sps:$4 sm:$0xff]  }
  0x3f   : > { %1500 = vmatprep.subr.bf16.mxu0 %v3087_v1  ;;  %1789 = vmatprep.subr.bf16.mxu1 %v3087_v1 }
  0x42   : > { %1501 = vmatpush2.bf16.msra.mxu0 %v2865_v29  ;;  %1790 = vmatpush2.bf16.msra.mxu1 %v2866_v30  ;;  %v2961_v29 = vld [vmem:[%s3207_s9 + $0x1e4] ss:$16 sps:$4 sm:$0xff]   ;;  %v2963_v30 = vld [vmem:[%s3207_s9 + $0x1ec] ss:$16 sps:$4 sm:$0xff]  }
  0x43   : > { %1502 = vmatprep.subr.bf16.mxu0 %v3087_v1  ;;  %1791 = vmatprep.subr.bf16.mxu1 %v3087_v1 }
  0x46   : > { %1503 = vmatpush2.bf16.msra.mxu0 %v2867_v31  ;;  %1792 = vmatpush2.bf16.msra.mxu1 %v2868_v32  ;;  %v2965_v31 = vld [vmem:[%s3207_s9 + $0x1e0] ss:$16 sps:$4 sm:$0xff]   ;;  %v2966_v32 = vld [vmem:[%s3207_s9 + $0x1e8] ss:$16 sps:$4 sm:$0xff]  }
  0x47   : > { %1504 = vmatprep.subr.bf16.mxu0 %v3087_v1  ;;  %1793 = vmatprep.subr.bf16.mxu1 %v3087_v1  ;;  %v2919_v1 = vld [vmem:[%s3207_s9 + $0x104] ss:$16 sps:$4 sm:$0xff]  }
  0x4a   : > { %1505 = vmatpush2.bf16.msra.mxu0 %v2869_v33  ;;  %1794 = vmatpush2.bf16.msra.mxu1 %v2870_v34  ;;  %v2967_v33 = vld [vmem:[%s3207_s9 + $0x204] ss:$16 sps:$4 sm:$0xff]   ;;  %v2969_v34 = vld [vmem:[%s3207_s9 + $0x20c] ss:$16 sps:$4 sm:$0xff]  }
  0x4d   : > { %1507 = vmatmul.mubr.bf16.vlgmr.msra.gmra.mxu0 %v2871_v35  ;;  %1796 = vmatmul.mubr.bf16.vlgmr.msra.gmra.mxu1 %v2874_v36  ;;  %v2971_v35 = vld [vmem:[%s3207_s9 + $0x200] ss:$16 sps:$4 sm:$0xff]   ;;  %v2972_v36 = vld [vmem:[%s3207_s9 + $0x208] ss:$16 sps:$4 sm:$0xff]  }
  0x4e   : > { %1514 = vmatprep.mubr.bf16.mxu0 %v2877_v37  ;;  %1803 = vmatprep.mubr.bf16.mxu1 %v2879_v38  ;;  %v2973_v37 = vld [vmem:[%s3207_s9 + $0x224] ss:$16 sps:$4 sm:$0xff]   ;;  %v2975_v38 = vld [vmem:[%s3207_s9 + $0x22c] ss:$16 sps:$4 sm:$0xff]  }
  0x55   : > { %1515 = vmatmul.mubr.bf16.gmra.mxu0 %v2881_v39  ;;  %1804 = vmatmul.mubr.bf16.gmra.mxu1 %v2882_v40  ;;  %v2977_v39 = vld [vmem:[%s3207_s9 + $0x220] ss:$16 sps:$4 sm:$0xff]   ;;  %v2978_v40 = vld [vmem:[%s3207_s9 + $0x228] ss:$16 sps:$4 sm:$0xff]  }
  0x56   : > { %1522 = vmatprep.mubr.bf16.mxu0 %v2883_v41  ;;  %1811 = vmatprep.mubr.bf16.mxu1 %v2885_v42  ;;  %v2979_v41 = vld [vmem:[%s3207_s9 + $0x244] ss:$16 sps:$4 sm:$0xff]   ;;  %v2981_v42 = vld [vmem:[%s3207_s9 + $0x24c] ss:$16 sps:$4 sm:$0xff]  }
  0x5d   : > { %1523 = vmatmul.mubr.bf16.gmra.mxu0 %v2887_v43  ;;  %1812 = vmatmul.mubr.bf16.gmra.mxu1 %v2888_v44  ;;  %v2983_v43 = vld [vmem:[%s3207_s9 + $0x240] ss:$16 sps:$4 sm:$0xff]   ;;  %v2984_v44 = vld [vmem:[%s3207_s9 + $0x248] ss:$16 sps:$4 sm:$0xff]  }
  0x5e   : > { %1530 = vmatprep.mubr.bf16.mxu0 %v2889_v45  ;;  %1819 = vmatprep.mubr.bf16.mxu1 %v2891_v46  ;;  %v2985_v45 = vld [vmem:[%s3207_s9 + $0x264] ss:$16 sps:$4 sm:$0xff]   ;;  %v2987_v46 = vld [vmem:[%s3207_s9 + $0x26c] ss:$16 sps:$4 sm:$0xff]  }
  0x65   : > { %1531 = vmatmul.mubr.bf16.gmra.mxu0 %v2893_v47  ;;  %1820 = vmatmul.mubr.bf16.gmra.mxu1 %v2894_v48  ;;  %v2989_v47 = vld [vmem:[%s3207_s9 + $0x260] ss:$16 sps:$4 sm:$0xff]   ;;  %v2990_v48 = vld [vmem:[%s3207_s9 + $0x268] ss:$16 sps:$4 sm:$0xff]  }
  0x66   : > { %1538 = vmatprep.mubr.bf16.mxu0 %v2895_v49  ;;  %1827 = vmatprep.mubr.bf16.mxu1 %v2897_v50  ;;  %v2991_v49 = vld [vmem:[%s3207_s9 + $0x284] ss:$16 sps:$4 sm:$0xff]   ;;  %v2993_v50 = vld [vmem:[%s3207_s9 + $0x28c] ss:$16 sps:$4 sm:$0xff]  }
  0x6d   : > { %1539 = vmatmul.mubr.bf16.gmra.mxu0 %v2899_v51  ;;  %1828 = vmatmul.mubr.bf16.gmra.mxu1 %v2900_v52  ;;  %v2995_v51 = vld [vmem:[%s3207_s9 + $0x280] ss:$16 sps:$4 sm:$0xff]   ;;  %v2996_v52 = vld [vmem:[%s3207_s9 + $0x288] ss:$16 sps:$4 sm:$0xff]  }
  0x6e   : > { %1546 = vmatprep.mubr.bf16.mxu0 %v2901_v53  ;;  %1835 = vmatprep.mubr.bf16.mxu1 %v2903_v54  ;;  %v2997_v53 = vld [vmem:[%s3207_s9 + $0x2a4] ss:$16 sps:$4 sm:$0xff]   ;;  %v2999_v54 = vld [vmem:[%s3207_s9 + $0x2ac] ss:$16 sps:$4 sm:$0xff]  }
  0x75   : > { %1547 = vmatmul.mubr.bf16.gmra.mxu0 %v2905_v55  ;;  %1836 = vmatmul.mubr.bf16.gmra.mxu1 %v2906_v56  ;;  %v3001_v55 = vld [vmem:[%s3207_s9 + $0x2a0] ss:$16 sps:$4 sm:$0xff]   ;;  %v3002_v56 = vld [vmem:[%s3207_s9 + $0x2a8] ss:$16 sps:$4 sm:$0xff]  }
  0x76   : > { %1554 = vmatprep.mubr.bf16.mxu0 %v2907_v57  ;;  %1843 = vmatprep.mubr.bf16.mxu1 %v2909_v58  ;;  %v3003_v57 = vld [vmem:[%s3207_s9 + $0x2c4] ss:$16 sps:$4 sm:$0xff]   ;;  %v3005_v58 = vld [vmem:[%s3207_s9 + $0x2cc] ss:$16 sps:$4 sm:$0xff]  }
  0x7d   : > { %1555 = vmatmul.mubr.bf16.gmra.mxu0 %v2911_v59  ;;  %1844 = vmatmul.mubr.bf16.gmra.mxu1 %v2912_v60  ;;  %v3007_v59 = vld [vmem:[%s3207_s9 + $0x2c0] ss:$16 sps:$4 sm:$0xff]   ;;  %v3008_v60 = vld [vmem:[%s3207_s9 + $0x2c8] ss:$16 sps:$4 sm:$0xff]  }
  0x7e   : > { %1562 = vmatprep.mubr.bf16.mxu0 %v2913_v61  ;;  %1851 = vmatprep.mubr.bf16.mxu1 %v2915_v62  ;;  %v3009_v61 = vld [vmem:[%s3207_s9 + $0x2e4] ss:$16 sps:$4 sm:$0xff]   ;;  %v3011_v62 = vld [vmem:[%s3207_s9 + $0x2ec] ss:$16 sps:$4 sm:$0xff]  }
  0x85   : > { %1563 = vmatmul.mubr.bf16.gmra.mxu0 %v2917_v63  ;;  %1852 = vmatmul.mubr.bf16.gmra.mxu1 %v2918_v0  ;;  %v3013_v63 = vld [vmem:[%s3207_s9 + $0x2e0] ss:$16 sps:$4 sm:$0xff]   ;;  %v3014_v0 = vld [vmem:[%s3207_s9 + $0x2e8] ss:$16 sps:$4 sm:$0xff]  }
  0x86   : > { %1570 = vmatprep.mubr.bf16.mxu0 %v2919_v1  ;;  %1859 = vmatprep.mubr.bf16.mxu1 %v2921_v2  ;;  %v3015_v1 = vld [vmem:[%s3207_s9 + $0x304] ss:$16 sps:$4 sm:$0xff]   ;;  %v3017_v2 = vld [vmem:[%s3207_s9 + $0x30c] ss:$16 sps:$4 sm:$0xff]  }
  0x8d   : > { %1571 = vmatmul.mubr.bf16.gmra.mxu0 %v2923_v3  ;;  %1860 = vmatmul.mubr.bf16.gmra.mxu1 %v2924_v4  ;;  %v3019_v3 = vld [vmem:[%s3207_s9 + $0x300] ss:$16 sps:$4 sm:$0xff]   ;;  %v3020_v4 = vld [vmem:[%s3207_s9 + $0x308] ss:$16 sps:$4 sm:$0xff]  }
  0x8e   : > { %1578 = vmatprep.mubr.bf16.mxu0 %v2925_v5  ;;  %1867 = vmatprep.mubr.bf16.mxu1 %v2927_v6  ;;  %v3021_v5 = vld [vmem:[%s3207_s9 + $0x324] ss:$16 sps:$4 sm:$0xff]   ;;  %v3023_v6 = vld [vmem:[%s3207_s9 + $0x32c] ss:$16 sps:$4 sm:$0xff]  }
  0x95   : > { %1579 = vmatmul.mubr.bf16.gmra.mxu0 %v2929_v7  ;;  %1868 = vmatmul.mubr.bf16.gmra.mxu1 %v2930_v8 }
  0x96   : > { %1586 = vmatprep.mubr.bf16.mxu0 %v2931_v9  ;;  %1875 = vmatprep.mubr.bf16.mxu1 %v2933_v10 }
  0x9d   : > { %1587 = vmatmul.mubr.bf16.gmra.mxu0 %v2935_v11  ;;  %1876 = vmatmul.mubr.bf16.gmra.mxu1 %v2936_v12 }
  0x9e   : > { %1594 = vmatprep.mubr.bf16.mxu0 %v2937_v13  ;;  %1883 = vmatprep.mubr.bf16.mxu1 %v2939_v14  ;;  %v3025_v13 = vld [vmem:[%s3207_s9 + $0x320] ss:$16 sps:$4 sm:$0xff]  }
  0xa5   : > { %1595 = vmatmul.mubr.bf16.gmra.mxu0 %v2941_v15  ;;  %1884 = vmatmul.mubr.bf16.gmra.mxu1 %v2942_v16  ;;  %v3026_v15 = vld [vmem:[%s3207_s9 + $0x328] ss:$16 sps:$4 sm:$0xff]   ;;  %v3027_v16 = vld [vmem:[%s3207_s9 + $0x344] ss:$16 sps:$4 sm:$0xff]  }
  0xa6   : > { %1602 = vmatprep.mubr.bf16.mxu0 %v2943_v17  ;;  %1891 = vmatprep.mubr.bf16.mxu1 %v2945_v18 }
  0xad   : > { %1603 = vmatmul.mubr.bf16.gmra.mxu0 %v2947_v19  ;;  %1892 = vmatmul.mubr.bf16.gmra.mxu1 %v2948_v20  ;;  %v3029_v19 = vld [vmem:[%s3207_s9 + $0x34c] ss:$16 sps:$4 sm:$0xff]  }
  0xae   : > { %1610 = vmatprep.mubr.bf16.mxu0 %v2949_v21  ;;  %1899 = vmatprep.mubr.bf16.mxu1 %v2951_v22 }
  0xb5   : > { %1611 = vmatmul.mubr.bf16.gmra.mxu0 %v2953_v23  ;;  %1900 = vmatmul.mubr.bf16.gmra.mxu1 %v2954_v24 }
  0xb6   : > { %1618 = vmatprep.mubr.bf16.mxu0 %v2955_v25  ;;  %1907 = vmatprep.mubr.bf16.mxu1 %v2957_v26 }
  0xbd   : > { %1619 = vmatmul.mubr.bf16.gmra.mxu0 %v2959_v27  ;;  %1908 = vmatmul.mubr.bf16.gmra.mxu1 %v2960_v28 }
  0xbe   : > { %1626 = vmatprep.mubr.bf16.mxu0 %v2961_v29  ;;  %1915 = vmatprep.mubr.bf16.mxu1 %v2963_v30 }
  0xc5   : > { %1627 = vmatmul.mubr.bf16.gmra.mxu0 %v2965_v31  ;;  %1916 = vmatmul.mubr.bf16.gmra.mxu1 %v2966_v32  ;;  %v3031_v31 = vld [vmem:[%s3207_s9 + $0x340] ss:$16 sps:$4 sm:$0xff]  }
  0xc6   : > { %1634 = vmatprep.mubr.bf16.mxu0 %v2967_v33  ;;  %1923 = vmatprep.mubr.bf16.mxu1 %v2969_v34  ;;  %v3032_v33 = vld [vmem:[%s3207_s9 + $0x348] ss:$16 sps:$4 sm:$0xff]   ;;  %v3033_v34 = vld [vmem:[%s3207_s9 + $0x364] ss:$16 sps:$4 sm:$0xff]  }
  0xcd   : > { %1635 = vmatmul.mubr.bf16.gmra.mxu0 %v2971_v35  ;;  %1924 = vmatmul.mubr.bf16.gmra.mxu1 %v2972_v36 }
  0xce   : > { %1642 = vmatprep.mubr.bf16.mxu0 %v2973_v37  ;;  %1931 = vmatprep.mubr.bf16.mxu1 %v2975_v38 }
  0xd5   : > { %1643 = vmatmul.mubr.bf16.gmra.mxu0 %v2977_v39  ;;  %1932 = vmatmul.mubr.bf16.gmra.mxu1 %v2978_v40  ;;  %v3035_v39 = vld [vmem:[%s3207_s9 + $0x36c] ss:$16 sps:$4 sm:$0xff]  }
  0xd6   : > { %1650 = vmatprep.mubr.bf16.mxu0 %v2979_v41  ;;  %1939 = vmatprep.mubr.bf16.mxu1 %v2981_v42 }
  0xdd   : > { %1651 = vmatmul.mubr.bf16.gmra.mxu0 %v2983_v43  ;;  %1940 = vmatmul.mubr.bf16.gmra.mxu1 %v2984_v44 }
  0xde   : > { %1658 = vmatprep.mubr.bf16.mxu0 %v2985_v45  ;;  %1947 = vmatprep.mubr.bf16.mxu1 %v2987_v46 }
  0xe5   : > { %1659 = vmatmul.mubr.bf16.gmra.mxu0 %v2989_v47  ;;  %1948 = vmatmul.mubr.bf16.gmra.mxu1 %v2990_v48 }
  0xe6   : > { %1666 = vmatprep.mubr.bf16.mxu0 %v2991_v49  ;;  %1955 = vmatprep.mubr.bf16.mxu1 %v2993_v50 }
  0xed   : > { %1667 = vmatmul.mubr.bf16.gmra.mxu0 %v2995_v51  ;;  %1956 = vmatmul.mubr.bf16.gmra.mxu1 %v2996_v52  ;;  %v3037_v51 = vld [vmem:[%s3207_s9 + $0x360] ss:$16 sps:$4 sm:$0xff]  }
  0xee   : > { %1674 = vmatprep.mubr.bf16.mxu0 %v2997_v53  ;;  %1963 = vmatprep.mubr.bf16.mxu1 %v2999_v54  ;;  %v3038_v53 = vld [vmem:[%s3207_s9 + $0x368] ss:$16 sps:$4 sm:$0xff]   ;;  %v3041_v54 = vld [vmem:[%s3207_s9 + $0x384] ss:$16 sps:$4 sm:$0xff]  }
  0xf5   : > { %1675 = vmatmul.mubr.bf16.gmra.mxu0 %v3001_v55  ;;  %1964 = vmatmul.mubr.bf16.gmra.mxu1 %v3002_v56 }
  0xf6   : > { %1682 = vmatprep.mubr.bf16.mxu0 %v3003_v57  ;;  %1971 = vmatprep.mubr.bf16.mxu1 %v3005_v58 }
  0xfd   : > { %1683 = vmatmul.mubr.bf16.gmra.mxu0 %v3007_v59  ;;  %1972 = vmatmul.mubr.bf16.gmra.mxu1 %v3008_v60  ;;  %v3044_v59 = vld [vmem:[%s3207_s9 + $0x38c] ss:$16 sps:$4 sm:$0xff]  }
  0xfe   : > { %1690 = vmatprep.mubr.bf16.mxu0 %v3009_v61  ;;  %1979 = vmatprep.mubr.bf16.mxu1 %v3011_v62 }
 0x105   : > { %1691 = vmatmul.mubr.bf16.gmra.mxu0 %v3013_v63  ;;  %1980 = vmatmul.mubr.bf16.gmra.mxu1 %v3014_v0 }
 0x106   : > { %1698 = vmatprep.mubr.bf16.mxu0 %v3015_v1  ;;  %1987 = vmatprep.mubr.bf16.mxu1 %v3017_v2 }
 0x10d   : > { %v1508_v7 = vpop.f32.mrf.mxu0  ;;  %1699 = vmatmul.mubr.bf16.gmra.mxu0 %v3019_v3  ;;  %v1797_v8 = vpop.f32.mrf.mxu1  ;;  %1988 = vmatmul.mubr.bf16.gmra.mxu1 %v3020_v4 }
 0x10e   : > { %1706 = vmatprep.mubr.bf16.mxu0 %v3021_v5  ;;  %v1798_v9 = vadd.f32 %v1797_v8, %v1508_v7  ;;  %1995 = vmatprep.mubr.bf16.mxu1 %v3023_v6  ;;  %v3039_v7 = vld [vmem:[%s3207_s9 + $0x380] ss:$16 sps:$4 sm:$0xff]  }
 0x10f   : > { %v1510_v10 = vpop.f32.mrf.mxu0  ;;  %v1799_v11 = vpop.f32.mrf.mxu1 }
 0x110   : > { %2116 = vst [vmem:[%s3376_s28] sm:$0xff] %v1798_v9  ;;  %v2316_v23 = vmul.f32 %v1798_v9, %v1798_v9  ;;  %v3047_v10 = vld [vmem:[%s3207_s9 + $0x3a4] ss:$16 sps:$4 sm:$0xff]  }
 0x111   : > { %v1511_v12 = vpop.f32.mrf.mxu0  ;;  %v1800_v14 = vpop.f32.mrf.mxu1 }
 0x112   : > { %v1801_v17 = vadd.f32 %v1800_v14, %v1511_v12 }
 0x113   : > { %v1513_v18 = vpop.f32.mrf.mxu0  ;;  %v1802_v20 = vpop.f32.mrf.mxu1 }
 0x114   : > { %2117 = vst [vmem:[%s3376_s28 + $0x8] sm:$0xff] %v1801_v17  ;;  %v2247_v24 = vadd.f32 %v1801_v17, %v1798_v9  ;;  %v2317_v25 = vmul.f32 %v1801_v17, %v1801_v17  ;;  %v3042_v9 = vld [vmem:[%s3207_s9 + $0x388] ss:$16 sps:$4 sm:$0xff]  }
 0x115   : > { %v1516_v21 = vpop.f32.mrf.mxu0  ;;  %1707 = vmatmul.mubr.bf16.gmra.mxu0 %v3025_v13  ;;  %v1805_v22 = vpop.f32.mrf.mxu1  ;;  %1996 = vmatmul.mubr.bf16.gmra.mxu1 %v3026_v15  ;;  %v3050_v15 = vld [vmem:[%s3207_s9 + $0x3ac] ss:$16 sps:$4 sm:$0xff]  }
 0x116   : > { %1714 = vmatprep.mubr.bf16.mxu0 %v3027_v16  ;;  %v1806_v26 = vadd.f32 %v1805_v22, %v1516_v21  ;;  %2003 = vmatprep.mubr.bf16.mxu1 %v3029_v19  ;;  %v2380_v29 = vadd.f32 %v2317_v25, %v2316_v23 }
 0x117   : > { %v1518_v27 = vpop.f32.mrf.mxu0  ;;  %v1807_v28 = vpop.f32.mrf.mxu1 }
 0x118   : > { %2118 = vst [vmem:[%s3376_s28 + $0x10] sm:$0xff] %v1806_v26  ;;  %v2248_v35 = vadd.f32 %v2247_v24, %v1806_v26  ;;  %v2318_v36 = vmul.f32 %v1806_v26, %v1806_v26  ;;  %v3045_v27 = vld [vmem:[%s3207_s9 + $0x3a0] ss:$16 sps:$4 sm:$0xff]  }
 0x119   : > { %v1519_v30 = vpop.f32.mrf.mxu0  ;;  %v1808_v32 = vpop.f32.mrf.mxu1 }
 0x11a   : > { %v1809_v37 = vadd.f32 %v1808_v32, %v1519_v30  ;;  %v2381_v41 = vadd.f32 %v2380_v29, %v2318_v36  ;;  %v3048_v29 = vld [vmem:[%s3207_s9 + $0x3a8] ss:$16 sps:$4 sm:$0xff]   ;;  %v3053_v30 = vld [vmem:[%s3207_s9 + $0x3c4] ss:$16 sps:$4 sm:$0xff]  }
 0x11b   : > { %v1521_v38 = vpop.f32.mrf.mxu0  ;;  %v1810_v40 = vpop.f32.mrf.mxu1 }
 0x11c   : > { %2119 = vst [vmem:[%s3376_s28 + $0x18] sm:$0xff] %v1809_v37  ;;  %v2249_v44 = vadd.f32 %v2248_v35, %v1809_v37  ;;  %v2319_v45 = vmul.f32 %v1809_v37, %v1809_v37  ;;  %v3056_v35 = vld [vmem:[%s3207_s9 + $0x3cc] ss:$16 sps:$4 sm:$0xff]  }
 0x11d   : > { %v1524_v42 = vpop.f32.mrf.mxu0  ;;  %1715 = vmatmul.mubr.bf16.gmra.mxu0 %v3031_v31  ;;  %v1813_v43 = vpop.f32.mrf.mxu1  ;;  %2004 = vmatmul.mubr.bf16.gmra.mxu1 %v3032_v33 }
 0x11e   : > { %1722 = vmatprep.mubr.bf16.mxu0 %v3033_v34  ;;  %v1814_v46 = vadd.f32 %v1813_v43, %v1524_v42  ;;  %2011 = vmatprep.mubr.bf16.mxu1 %v3035_v39  ;;  %v2382_v49 = vadd.f32 %v2381_v41, %v2319_v45 }
 0x11f   : > { %v1526_v47 = vpop.f32.mrf.mxu0  ;;  %v1815_v48 = vpop.f32.mrf.mxu1 }
 0x120   : > { %2120 = vst [vmem:[%s3376_s28 + $0x20] sm:$0xff] %v1814_v46  ;;  %v2250_v55 = vadd.f32 %v2249_v44, %v1814_v46  ;;  %v2320_v56 = vmul.f32 %v1814_v46, %v1814_v46  ;;  %v3051_v47 = vld [vmem:[%s3207_s9 + $0x3c0] ss:$16 sps:$4 sm:$0xff]  }
 0x121   : > { %v1527_v50 = vpop.f32.mrf.mxu0  ;;  %v1816_v52 = vpop.f32.mrf.mxu1 }
 0x122   : > { %v1817_v57 = vadd.f32 %v1816_v52, %v1527_v50  ;;  %v2383_v61 = vadd.f32 %v2382_v49, %v2320_v56  ;;  %v3054_v49 = vld [vmem:[%s3207_s9 + $0x3c8] ss:$16 sps:$4 sm:$0xff]   ;;  %v3059_v50 = vld [vmem:[%s3207_s9 + $0x3e4] ss:$16 sps:$4 sm:$0xff]  }
 0x123   : > { %v1529_v58 = vpop.f32.mrf.mxu0  ;;  %v1818_v60 = vpop.f32.mrf.mxu1 }
 0x124   : > { %2121 = vst [vmem:[%s3376_s28 + $0x28] sm:$0xff] %v1817_v57  ;;  %v2251_v0 = vadd.f32 %v2250_v55, %v1817_v57  ;;  %v2321_v1 = vmul.f32 %v1817_v57, %v1817_v57  ;;  %v3062_v55 = vld [vmem:[%s3207_s9 + $0x3ec] ss:$16 sps:$4 sm:$0xff]  }
 0x125   : > { %v1532_v62 = vpop.f32.mrf.mxu0  ;;  %1723 = vmatmul.mubr.bf16.gmra.mxu0 %v3037_v51  ;;  %v1821_v63 = vpop.f32.mrf.mxu1  ;;  %2012 = vmatmul.mubr.bf16.gmra.mxu1 %v3038_v53 }
 0x126   : > { %1730 = vmatprep.mubr.bf16.mxu0 %v3041_v54  ;;  %v1822_v2 = vadd.f32 %v1821_v63, %v1532_v62  ;;  %2019 = vmatprep.mubr.bf16.mxu1 %v3044_v59  ;;  %v2384_v5 = vadd.f32 %v2383_v61, %v2321_v1 }
 0x127   : > { %v1534_v3 = vpop.f32.mrf.mxu0  ;;  %v1823_v4 = vpop.f32.mrf.mxu1 }
 0x128   : > { %2122 = vst [vmem:[%s3376_s28 + $0x30] sm:$0xff] %v1822_v2  ;;  %v2252_v11 = vadd.f32 %v2251_v0, %v1822_v2  ;;  %v2322_v12 = vmul.f32 %v1822_v2, %v1822_v2  ;;  %v3057_v3 = vld [vmem:[%s3207_s9 + $0x3e0] ss:$16 sps:$4 sm:$0xff]  }
 0x129   : > { %v1535_v6 = vpop.f32.mrf.mxu0  ;;  %v1824_v8 = vpop.f32.mrf.mxu1 }
 0x12a   : > { %v1825_v13 = vadd.f32 %v1824_v8, %v1535_v6  ;;  %v2385_v17 = vadd.f32 %v2384_v5, %v2322_v12  ;;  %v3060_v5 = vld [vmem:[%s3207_s9 + $0x3e8] ss:$16 sps:$4 sm:$0xff]  }
 0x12b   : > { %v1537_v14 = vpop.f32.mrf.mxu0  ;;  %v1826_v16 = vpop.f32.mrf.mxu1 }
 0x12c   : > { %2123 = vst [vmem:[%s3376_s28 + $0x38] sm:$0xff] %v1825_v13  ;;  %v2253_v20 = vadd.f32 %v2252_v11, %v1825_v13  ;;  %v2323_v21 = vmul.f32 %v1825_v13, %v1825_v13 }
 0x12d   : > { %v1540_v18 = vpop.f32.mrf.mxu0  ;;  %1731 = vmatmul.mubr.bf16.gmra.mxu0 %v3039_v7  ;;  %v1829_v19 = vpop.f32.mrf.mxu1  ;;  %2020 = vmatmul.mubr.bf16.gmra.mxu1 %v3042_v9 }
 0x12e   : > { %1738 = vmatprep.mubr.bf16.mxu0 %v3047_v10  ;;  %v1830_v22 = vadd.f32 %v1829_v19, %v1540_v18  ;;  %2027 = vmatprep.mubr.bf16.mxu1 %v3050_v15  ;;  %v2386_v25 = vadd.f32 %v2385_v17, %v2323_v21 }
 0x12f   : > { %v1542_v23 = vpop.f32.mrf.mxu0  ;;  %v1831_v24 = vpop.f32.mrf.mxu1 }
 0x130   : > { %2124 = vst [vmem:[%s3376_s28 + $0x40] sm:$0xff] %v1830_v22  ;;  %v2254_v31 = vadd.f32 %v2253_v20, %v1830_v22  ;;  %v2324_v32 = vmul.f32 %v1830_v22, %v1830_v22 }
 0x131   : > { %v1543_v26 = vpop.f32.mrf.mxu0  ;;  %v1832_v28 = vpop.f32.mrf.mxu1 }
 0x132   : > { %v1833_v33 = vadd.f32 %v1832_v28, %v1543_v26  ;;  %v2387_v37 = vadd.f32 %v2386_v25, %v2324_v32 }
 0x133   : > { %v1545_v34 = vpop.f32.mrf.mxu0  ;;  %v1834_v36 = vpop.f32.mrf.mxu1 }
 0x134   : > { %2125 = vst [vmem:[%s3376_s28 + $0x48] sm:$0xff] %v1833_v33  ;;  %v2255_v40 = vadd.f32 %v2254_v31, %v1833_v33  ;;  %v2325_v41 = vmul.f32 %v1833_v33, %v1833_v33 }
 0x135   : > { %v1548_v38 = vpop.f32.mrf.mxu0  ;;  %1739 = vmatmul.mubr.bf16.gmra.mxu0 %v3045_v27  ;;  %v1837_v39 = vpop.f32.mrf.mxu1  ;;  %2028 = vmatmul.mubr.bf16.gmra.mxu1 %v3048_v29 }
 0x136   : > { %1746 = vmatprep.mubr.bf16.mxu0 %v3053_v30  ;;  %v1838_v42 = vadd.f32 %v1837_v39, %v1548_v38  ;;  %2035 = vmatprep.mubr.bf16.mxu1 %v3056_v35  ;;  %v2388_v45 = vadd.f32 %v2387_v37, %v2325_v41 }
 0x137   : > { %v1550_v43 = vpop.f32.mrf.mxu0  ;;  %v1839_v44 = vpop.f32.mrf.mxu1 }
 0x138   : > { %2126 = vst [vmem:[%s3376_s28 + $0x50] sm:$0xff] %v1838_v42  ;;  %v2256_v51 = vadd.f32 %v2255_v40, %v1838_v42  ;;  %v2326_v52 = vmul.f32 %v1838_v42, %v1838_v42 }
 0x139   : > { %v1551_v46 = vpop.f32.mrf.mxu0  ;;  %v1840_v48 = vpop.f32.mrf.mxu1 }
 0x13a   : > { %v1841_v53 = vadd.f32 %v1840_v48, %v1551_v46  ;;  %v2389_v57 = vadd.f32 %v2388_v45, %v2326_v52 }
 0x13b   : > { %v1553_v54 = vpop.f32.mrf.mxu0  ;;  %v1842_v56 = vpop.f32.mrf.mxu1 }
 0x13c   : > { %2127 = vst [vmem:[%s3376_s28 + $0x58] sm:$0xff] %v1841_v53  ;;  %v2257_v60 = vadd.f32 %v2256_v51, %v1841_v53  ;;  %v2327_v61 = vmul.f32 %v1841_v53, %v1841_v53 }
 0x13d   : > { %v1556_v58 = vpop.f32.mrf.mxu0  ;;  %1747 = vmatmul.mubr.bf16.gmra.mxu0 %v3051_v47  ;;  %v1845_v59 = vpop.f32.mrf.mxu1  ;;  %2036 = vmatmul.mubr.bf16.gmra.mxu1 %v3054_v49 }
 0x13e   : > { %1754 = vmatprep.mubr.bf16.mxu0 %v3059_v50  ;;  %v1846_v62 = vadd.f32 %v1845_v59, %v1556_v58  ;;  %2043 = vmatprep.mubr.bf16.mxu1 %v3062_v55  ;;  %v2390_v1 = vadd.f32 %v2389_v57, %v2327_v61 }
 0x13f   : > { %v1558_v63 = vpop.f32.mrf.mxu0  ;;  %v1847_v0 = vpop.f32.mrf.mxu1 }
 0x140   : > { %2128 = vst [vmem:[%s3376_s28 + $0x60] sm:$0xff] %v1846_v62  ;;  %v2258_v6 = vadd.f32 %v2257_v60, %v1846_v62  ;;  %v2328_v7 = vmul.f32 %v1846_v62, %v1846_v62 }
 0x141   : > { %v1559_v2 = vpop.f32.mrf.mxu0  ;;  %v1848_v4 = vpop.f32.mrf.mxu1 }
 0x142   : > { %v1849_v8 = vadd.f32 %v1848_v4, %v1559_v2  ;;  %v2391_v11 = vadd.f32 %v2390_v1, %v2328_v7 }
 0x143   : > { %v1561_v9 = vpop.f32.mrf.mxu0  ;;  %v1850_v10 = vpop.f32.mrf.mxu1 }
 0x144   : > { %2129 = vst [vmem:[%s3376_s28 + $0x68] sm:$0xff] %v1849_v8  ;;  %v2259_v14 = vadd.f32 %v2258_v6, %v1849_v8  ;;  %v2329_v15 = vmul.f32 %v1849_v8, %v1849_v8 }
 0x145   : > { %v1564_v12 = vpop.f32.mrf.mxu0  ;;  %1755 = vmatmul.mubr.bf16.gmra.mxu0 %v3057_v3  ;;  %v1853_v13 = vpop.f32.mrf.mxu1  ;;  %2044 = vmatmul.mubr.bf16.gmra.mxu1 %v3060_v5 }
 0x146   : > { %v1854_v16 = vadd.f32 %v1853_v13, %v1564_v12  ;;  %v2392_v19 = vadd.f32 %v2391_v11, %v2329_v15 }
 0x147   : > { %v1566_v17 = vpop.f32.mrf.mxu0  ;;  %v1855_v18 = vpop.f32.mrf.mxu1 }
 0x148   : > { %2130 = vst [vmem:[%s3376_s28 + $0x70] sm:$0xff] %v1854_v16  ;;  %v2260_v22 = vadd.f32 %v2259_v14, %v1854_v16  ;;  %v2330_v23 = vmul.f32 %v1854_v16, %v1854_v16 }
 0x149   : > { %v1567_v20 = vpop.f32.mrf.mxu0  ;;  %v1856_v21 = vpop.f32.mrf.mxu1 }
 0x14a   : > { %v1857_v24 = vadd.f32 %v1856_v21, %v1567_v20  ;;  %v2393_v27 = vadd.f32 %v2392_v19, %v2330_v23 }
 0x14b   : > { %v1569_v25 = vpop.f32.mrf.mxu0  ;;  %v1858_v26 = vpop.f32.mrf.mxu1 }
 0x14c   : > { %2131 = vst [vmem:[%s3376_s28 + $0x78] sm:$0xff] %v1857_v24  ;;  %v2261_v30 = vadd.f32 %v2260_v22, %v1857_v24  ;;  %v2331_v31 = vmul.f32 %v1857_v24, %v1857_v24 }
 0x14d   : > { %v1572_v28 = vpop.f32.mrf.mxu0  ;;  %v1861_v29 = vpop.f32.mrf.mxu1 }
 0x14e   : > { %v1862_v32 = vadd.f32 %v1861_v29, %v1572_v28  ;;  %v2394_v35 = vadd.f32 %v2393_v27, %v2331_v31 }
 0x14f   : > { %v1574_v33 = vpop.f32.mrf.mxu0  ;;  %v1863_v34 = vpop.f32.mrf.mxu1 }
 0x150   : > { %2132 = vst [vmem:[%s3376_s28 + $0x80] sm:$0xff] %v1862_v32  ;;  %v2262_v38 = vadd.f32 %v2261_v30, %v1862_v32  ;;  %v2332_v39 = vmul.f32 %v1862_v32, %v1862_v32 }
 0x151   : > { %v1575_v36 = vpop.f32.mrf.mxu0  ;;  %v1864_v37 = vpop.f32.mrf.mxu1 }
 0x152   : > { %v1865_v40 = vadd.f32 %v1864_v37, %v1575_v36  ;;  %v2395_v43 = vadd.f32 %v2394_v35, %v2332_v39 }
 0x153   : > { %v1577_v41 = vpop.f32.mrf.mxu0  ;;  %v1866_v42 = vpop.f32.mrf.mxu1 }
 0x154   : > { %2133 = vst [vmem:[%s3376_s28 + $0x88] sm:$0xff] %v1865_v40  ;;  %v2263_v46 = vadd.f32 %v2262_v38, %v1865_v40  ;;  %v2333_v47 = vmul.f32 %v1865_v40, %v1865_v40 }
 0x155   : > { %v1580_v44 = vpop.f32.mrf.mxu0  ;;  %v1869_v45 = vpop.f32.mrf.mxu1 }
 0x156   : > { %v1870_v48 = vadd.f32 %v1869_v45, %v1580_v44  ;;  %v2396_v51 = vadd.f32 %v2395_v43, %v2333_v47 }
 0x157   : > { %v1582_v49 = vpop.f32.mrf.mxu0  ;;  %v1871_v50 = vpop.f32.mrf.mxu1 }
 0x158   : > { %2134 = vst [vmem:[%s3376_s28 + $0x90] sm:$0xff] %v1870_v48  ;;  %v2264_v54 = vadd.f32 %v2263_v46, %v1870_v48  ;;  %v2334_v55 = vmul.f32 %v1870_v48, %v1870_v48 }
 0x159   : > { %v1583_v52 = vpop.f32.mrf.mxu0  ;;  %v1872_v53 = vpop.f32.mrf.mxu1 }
 0x15a   : > { %v1873_v56 = vadd.f32 %v1872_v53, %v1583_v52  ;;  %v2397_v59 = vadd.f32 %v2396_v51, %v2334_v55 }
 0x15b   : > { %v1585_v57 = vpop.f32.mrf.mxu0  ;;  %v1874_v58 = vpop.f32.mrf.mxu1 }
 0x15c   : > { %2135 = vst [vmem:[%s3376_s28 + $0x98] sm:$0xff] %v1873_v56  ;;  %v2265_v62 = vadd.f32 %v2264_v54, %v1873_v56  ;;  %v2335_v63 = vmul.f32 %v1873_v56, %v1873_v56 }
 0x15d   : > { %v1588_v60 = vpop.f32.mrf.mxu0  ;;  %v1877_v61 = vpop.f32.mrf.mxu1 }
 0x15e   : > { %v1878_v0 = vadd.f32 %v1877_v61, %v1588_v60  ;;  %v2398_v3 = vadd.f32 %v2397_v59, %v2335_v63 }
 0x15f   : > { %v1590_v1 = vpop.f32.mrf.mxu0  ;;  %v1879_v2 = vpop.f32.mrf.mxu1 }
 0x160   : > { %2136 = vst [vmem:[%s3376_s28 + $0xa0] sm:$0xff] %v1878_v0  ;;  %v2266_v6 = vadd.f32 %v2265_v62, %v1878_v0  ;;  %v2336_v7 = vmul.f32 %v1878_v0, %v1878_v0 }
 0x161   : > { %v1591_v4 = vpop.f32.mrf.mxu0  ;;  %v1880_v5 = vpop.f32.mrf.mxu1 }
 0x162   : > { %v1881_v8 = vadd.f32 %v1880_v5, %v1591_v4  ;;  %v2399_v11 = vadd.f32 %v2398_v3, %v2336_v7 }
 0x163   : > { %v1593_v9 = vpop.f32.mrf.mxu0  ;;  %v1882_v10 = vpop.f32.mrf.mxu1 }
 0x164   : > { %2137 = vst [vmem:[%s3376_s28 + $0xa8] sm:$0xff] %v1881_v8  ;;  %v2267_v14 = vadd.f32 %v2266_v6, %v1881_v8  ;;  %v2337_v15 = vmul.f32 %v1881_v8, %v1881_v8 }
 0x165   : > { %v1596_v12 = vpop.f32.mrf.mxu0  ;;  %v1885_v13 = vpop.f32.mrf.mxu1 }
 0x166   : > { %v1886_v16 = vadd.f32 %v1885_v13, %v1596_v12  ;;  %v2400_v19 = vadd.f32 %v2399_v11, %v2337_v15 }
 0x167   : > { %v1598_v17 = vpop.f32.mrf.mxu0  ;;  %v1887_v18 = vpop.f32.mrf.mxu1 }
 0x168   : > { %2138 = vst [vmem:[%s3376_s28 + $0xb0] sm:$0xff] %v1886_v16  ;;  %v2268_v22 = vadd.f32 %v2267_v14, %v1886_v16  ;;  %v2338_v23 = vmul.f32 %v1886_v16, %v1886_v16 }
 0x169   : > { %v1599_v20 = vpop.f32.mrf.mxu0  ;;  %v1888_v21 = vpop.f32.mrf.mxu1 }
 0x16a   : > { %v1889_v24 = vadd.f32 %v1888_v21, %v1599_v20  ;;  %v2401_v27 = vadd.f32 %v2400_v19, %v2338_v23 }
 0x16b   : > { %v1601_v25 = vpop.f32.mrf.mxu0  ;;  %v1890_v26 = vpop.f32.mrf.mxu1 }
 0x16c   : > { %2139 = vst [vmem:[%s3376_s28 + $0xb8] sm:$0xff] %v1889_v24  ;;  %v2269_v30 = vadd.f32 %v2268_v22, %v1889_v24  ;;  %v2339_v31 = vmul.f32 %v1889_v24, %v1889_v24 }
 0x16d   : > { %v1604_v28 = vpop.f32.mrf.mxu0  ;;  %v1893_v29 = vpop.f32.mrf.mxu1 }
 0x16e   : > { %v1894_v32 = vadd.f32 %v1893_v29, %v1604_v28  ;;  %v2402_v35 = vadd.f32 %v2401_v27, %v2339_v31 }
 0x16f   : > { %v1606_v33 = vpop.f32.mrf.mxu0  ;;  %v1895_v34 = vpop.f32.mrf.mxu1 }
 0x170   : > { %2140 = vst [vmem:[%s3376_s28 + $0xc0] sm:$0xff] %v1894_v32  ;;  %v2270_v38 = vadd.f32 %v2269_v30, %v1894_v32  ;;  %v2340_v39 = vmul.f32 %v1894_v32, %v1894_v32 }
 0x171   : > { %v1607_v36 = vpop.f32.mrf.mxu0  ;;  %v1896_v37 = vpop.f32.mrf.mxu1 }
 0x172   : > { %v1897_v40 = vadd.f32 %v1896_v37, %v1607_v36  ;;  %v2403_v43 = vadd.f32 %v2402_v35, %v2340_v39 }
 0x173   : > { %v1609_v41 = vpop.f32.mrf.mxu0  ;;  %v1898_v42 = vpop.f32.mrf.mxu1 }
 0x174   : > { %2141 = vst [vmem:[%s3376_s28 + $0xc8] sm:$0xff] %v1897_v40  ;;  %v2271_v46 = vadd.f32 %v2270_v38, %v1897_v40  ;;  %v2341_v47 = vmul.f32 %v1897_v40, %v1897_v40 }
 0x175   : > { %v1612_v44 = vpop.f32.mrf.mxu0  ;;  %v1901_v45 = vpop.f32.mrf.mxu1 }
 0x176   : > { %v1902_v48 = vadd.f32 %v1901_v45, %v1612_v44  ;;  %v2404_v51 = vadd.f32 %v2403_v43, %v2341_v47 }
 0x177   : > { %v1614_v49 = vpop.f32.mrf.mxu0  ;;  %v1903_v50 = vpop.f32.mrf.mxu1 }
 0x178   : > { %2142 = vst [vmem:[%s3376_s28 + $0xd0] sm:$0xff] %v1902_v48  ;;  %v2272_v54 = vadd.f32 %v2271_v46, %v1902_v48  ;;  %v2342_v55 = vmul.f32 %v1902_v48, %v1902_v48 }
 0x179   : > { %v1615_v52 = vpop.f32.mrf.mxu0  ;;  %v1904_v53 = vpop.f32.mrf.mxu1 }
 0x17a   : > { %v1905_v56 = vadd.f32 %v1904_v53, %v1615_v52  ;;  %v2405_v59 = vadd.f32 %v2404_v51, %v2342_v55 }
 0x17b   : > { %v1617_v57 = vpop.f32.mrf.mxu0  ;;  %v1906_v58 = vpop.f32.mrf.mxu1 }
 0x17c   : > { %2143 = vst [vmem:[%s3376_s28 + $0xd8] sm:$0xff] %v1905_v56  ;;  %v2273_v62 = vadd.f32 %v2272_v54, %v1905_v56  ;;  %v2343_v63 = vmul.f32 %v1905_v56, %v1905_v56 }
 0x17d   : > { %v1620_v60 = vpop.f32.mrf.mxu0  ;;  %v1909_v61 = vpop.f32.mrf.mxu1 }
 0x17e   : > { %v1910_v0 = vadd.f32 %v1909_v61, %v1620_v60  ;;  %v2406_v3 = vadd.f32 %v2405_v59, %v2343_v63 }
 0x17f   : > { %v1622_v1 = vpop.f32.mrf.mxu0  ;;  %v1911_v2 = vpop.f32.mrf.mxu1 }
 0x180   : > { %2144 = vst [vmem:[%s3376_s28 + $0xe0] sm:$0xff] %v1910_v0  ;;  %v2274_v6 = vadd.f32 %v2273_v62, %v1910_v0  ;;  %v2344_v7 = vmul.f32 %v1910_v0, %v1910_v0 }
 0x181   : > { %v1623_v4 = vpop.f32.mrf.mxu0  ;;  %v1912_v5 = vpop.f32.mrf.mxu1 }
 0x182   : > { %v1913_v8 = vadd.f32 %v1912_v5, %v1623_v4  ;;  %v2407_v11 = vadd.f32 %v2406_v3, %v2344_v7 }
 0x183   : > { %v1625_v9 = vpop.f32.mrf.mxu0  ;;  %v1914_v10 = vpop.f32.mrf.mxu1 }
 0x184   : > { %2145 = vst [vmem:[%s3376_s28 + $0xe8] sm:$0xff] %v1913_v8  ;;  %v2275_v14 = vadd.f32 %v2274_v6, %v1913_v8  ;;  %v2345_v15 = vmul.f32 %v1913_v8, %v1913_v8 }
 0x185   : > { %v1628_v12 = vpop.f32.mrf.mxu0  ;;  %v1917_v13 = vpop.f32.mrf.mxu1 }
 0x186   : > { %v1918_v16 = vadd.f32 %v1917_v13, %v1628_v12  ;;  %v2408_v19 = vadd.f32 %v2407_v11, %v2345_v15 }
 0x187   : > { %v1630_v17 = vpop.f32.mrf.mxu0  ;;  %v1919_v18 = vpop.f32.mrf.mxu1 }
 0x188   : > { %2146 = vst [vmem:[%s3376_s28 + $0xf0] sm:$0xff] %v1918_v16  ;;  %v2276_v22 = vadd.f32 %v2275_v14, %v1918_v16  ;;  %v2346_v23 = vmul.f32 %v1918_v16, %v1918_v16 }
 0x189   : > { %v1631_v20 = vpop.f32.mrf.mxu0  ;;  %v1920_v21 = vpop.f32.mrf.mxu1 }
 0x18a   : > { %v1921_v24 = vadd.f32 %v1920_v21, %v1631_v20  ;;  %v2409_v27 = vadd.f32 %v2408_v19, %v2346_v23 }
 0x18b   : > { %v1633_v25 = vpop.f32.mrf.mxu0  ;;  %v1922_v26 = vpop.f32.mrf.mxu1 }
 0x18c   : > { %2147 = vst [vmem:[%s3376_s28 + $0xf8] sm:$0xff] %v1921_v24  ;;  %v3436_v30 = vadd.f32 %v2276_v22, %v1921_v24  ;;  %v2347_v31 = vmul.f32 %v1921_v24, %v1921_v24 }
 0x18d   : > { %v1636_v28 = vpop.f32.mrf.mxu0  ;;  %v1925_v29 = vpop.f32.mrf.mxu1 }
 0x18e   : > { %v3438_v32 = vadd.f32 %v1925_v29, %v1636_v28  ;;  %v3440_v35 = vadd.f32 %v2409_v27, %v2347_v31 }
 0x18f   : > { %v1638_v33 = vpop.f32.mrf.mxu0  ;;  %v1927_v34 = vpop.f32.mrf.mxu1 }
 0x190   : > { %2148 = vst [vmem:[%s3376_s28 + $0x100] sm:$0xff] %v3438_v32 }
 0x191   : > { %v1639_v36 = vpop.f32.mrf.mxu0  ;;  %v1928_v37 = vpop.f32.mrf.mxu1 }
 0x192   : > { %v3444_v38 = vadd.f32 %v1928_v37, %v1639_v36 }
 0x193   : > { %v1641_v39 = vpop.f32.mrf.mxu0  ;;  %v1930_v40 = vpop.f32.mrf.mxu1 }
 0x194   : > { %2149 = vst [vmem:[%s3376_s28 + $0x108] sm:$0xff] %v3444_v38 }
 0x195   : > { %v1644_v41 = vpop.f32.mrf.mxu0  ;;  %v1933_v42 = vpop.f32.mrf.mxu1 }
 0x196   : > { %v3448_v43 = vadd.f32 %v1933_v42, %v1644_v41 }
 0x197   : > { %v1646_v44 = vpop.f32.mrf.mxu0  ;;  %v1935_v45 = vpop.f32.mrf.mxu1 }
 0x198   : > { %2150 = vst [vmem:[%s3376_s28 + $0x110] sm:$0xff] %v3448_v43 }
 0x199   : > { %v1647_v46 = vpop.f32.mrf.mxu0  ;;  %v1936_v47 = vpop.f32.mrf.mxu1 }
 0x19a   : > { %v3452_v48 = vadd.f32 %v1936_v47, %v1647_v46 }
 0x19b   : > { %v1649_v49 = vpop.f32.mrf.mxu0  ;;  %v1938_v50 = vpop.f32.mrf.mxu1 }
 0x19c   : > { %2151 = vst [vmem:[%s3376_s28 + $0x118] sm:$0xff] %v3452_v48 }
 0x19d   : > { %v1652_v51 = vpop.f32.mrf.mxu0  ;;  %v1941_v52 = vpop.f32.mrf.mxu1 }
 0x19e   : > { %v3456_v53 = vadd.f32 %v1941_v52, %v1652_v51 }
 0x19f   : > { %v1654_v54 = vpop.f32.mrf.mxu0  ;;  %v1943_v55 = vpop.f32.mrf.mxu1 }
 0x1a0   : > { %2152 = vst [vmem:[%s3376_s28 + $0x120] sm:$0xff] %v3456_v53 }
 0x1a1   : > { %v1655_v56 = vpop.f32.mrf.mxu0  ;;  %v1944_v57 = vpop.f32.mrf.mxu1 }
 0x1a2   : > { %v3460_v58 = vadd.f32 %v1944_v57, %v1655_v56  ;;  %v2348_v56 = vmul.f32 %v3438_v32, %v3438_v32 }
 0x1a3   : > { %v1657_v59 = vpop.f32.mrf.mxu0  ;;  %v1946_v60 = vpop.f32.mrf.mxu1 }
 0x1a4   : > { %2153 = vst [vmem:[%s3376_s28 + $0x128] sm:$0xff] %v3460_v58 }
 0x1a5   : > { %v1660_v61 = vpop.f32.mrf.mxu0  ;;  %v1949_v62 = vpop.f32.mrf.mxu1 }
 0x1a6   : > { %v3464_v63 = vadd.f32 %v1949_v62, %v1660_v61  ;;  %v2278_v61 = vadd.f32 %v3436_v30, %v3438_v32  ;;  %v2349_v62 = vmul.f32 %v3444_v38, %v3444_v38 }
 0x1a7   : > { %v1662_v0 = vpop.f32.mrf.mxu0  ;;  %v1951_v1 = vpop.f32.mrf.mxu1 }
 0x1a8   : > { %2154 = vst [vmem:[%s3376_s28 + $0x130] sm:$0xff] %v3464_v63 }
 0x1a9   : > { %v1663_v2 = vpop.f32.mrf.mxu0  ;;  %v1952_v3 = vpop.f32.mrf.mxu1 }
 0x1aa   : > { %v3468_v4 = vadd.f32 %v1952_v3, %v1663_v2  ;;  %v2411_v2 = vadd.f32 %v3440_v35, %v2348_v56  ;;  %v2279_v3 = vadd.f32 %v2278_v61, %v3444_v38 }
 0x1ab   : > { %v1665_v5 = vpop.f32.mrf.mxu0  ;;  %v1954_v6 = vpop.f32.mrf.mxu1 }
 0x1ac   : > { %2155 = vst [vmem:[%s3376_s28 + $0x138] sm:$0xff] %v3468_v4  ;;  %v2350_v5 = vmul.f32 %v3448_v43, %v3448_v43  ;;  %v2412_v30 = vadd.f32 %v2411_v2, %v2349_v62  ;;  %v2280_v32 = vadd.f32 %v2279_v3, %v3448_v43 }
 0x1ad   : > { %v1668_v7 = vpop.f32.mrf.mxu0  ;;  %v1957_v8 = vpop.f32.mrf.mxu1 }
 0x1ae   : > { %v3472_v9 = vadd.f32 %v1957_v8, %v1668_v7  ;;  %v2413_v35 = vadd.f32 %v2412_v30, %v2350_v5  ;;  %v2281_v38 = vadd.f32 %v2280_v32, %v3452_v48 }
 0x1af   : > { %v1670_v10 = vpop.f32.mrf.mxu0  ;;  %v1959_v11 = vpop.f32.mrf.mxu1 }
 0x1b0   : > { %2156 = vst [vmem:[%s3376_s28 + $0x140] sm:$0xff] %v3472_v9  ;;  %v2351_v10 = vmul.f32 %v3452_v48, %v3452_v48  ;;  %v2282_v43 = vadd.f32 %v2281_v38, %v3456_v53 }
 0x1b1   : > { %v1671_v12 = vpop.f32.mrf.mxu0  ;;  %v1960_v13 = vpop.f32.mrf.mxu1 }
 0x1b2   : > { %v3476_v14 = vadd.f32 %v1960_v13, %v1671_v12  ;;  %v2352_v13 = vmul.f32 %v3456_v53, %v3456_v53  ;;  %v2283_v48 = vadd.f32 %v2282_v43, %v3460_v58 }
 0x1b3   : > { %v1673_v15 = vpop.f32.mrf.mxu0  ;;  %v1962_v16 = vpop.f32.mrf.mxu1 }
 0x1b4   : > { %2157 = vst [vmem:[%s3376_s28 + $0x148] sm:$0xff] %v3476_v14  ;;  %v2284_v53 = vadd.f32 %v2283_v48, %v3464_v63 }
 0x1b5   : > { %v1676_v17 = vpop.f32.mrf.mxu0  ;;  %v1965_v18 = vpop.f32.mrf.mxu1 }
 0x1b6   : > { %v3480_v19 = vadd.f32 %v1965_v18, %v1676_v17  ;;  %v2414_v18 = vadd.f32 %v2413_v35, %v2351_v10 }
 0x1b7   : > { %v1678_v20 = vpop.f32.mrf.mxu0  ;;  %v1967_v21 = vpop.f32.mrf.mxu1 }
 0x1b8   : > { %2158 = vst [vmem:[%s3376_s28 + $0x150] sm:$0xff] %v3480_v19  ;;  %v2353_v20 = vmul.f32 %v3460_v58, %v3460_v58  ;;  %v2285_v58 = vadd.f32 %v2284_v53, %v3468_v4 }
 0x1b9   : > { %v1679_v22 = vpop.f32.mrf.mxu0  ;;  %v1968_v23 = vpop.f32.mrf.mxu1 }
 0x1ba   : > { %v3484_v24 = vadd.f32 %v1968_v23, %v1679_v22  ;;  %v2415_v23 = vadd.f32 %v2414_v18, %v2352_v13 }
 0x1bb   : > { %v1681_v25 = vpop.f32.mrf.mxu0  ;;  %v1970_v26 = vpop.f32.mrf.mxu1 }
 0x1bc   : > { %2159 = vst [vmem:[%s3376_s28 + $0x158] sm:$0xff] %v3484_v24  ;;  %v2354_v25 = vmul.f32 %v3464_v63, %v3464_v63  ;;  %v2286_v63 = vadd.f32 %v2285_v58, %v3472_v9  ;;  %v2359_v61 = vmul.f32 %v3484_v24, %v3484_v24 }
 0x1bd   : > { %v1684_v27 = vpop.f32.mrf.mxu0  ;;  %v1973_v28 = vpop.f32.mrf.mxu1 }
 0x1be   : > { %v3488_v29 = vadd.f32 %v1973_v28, %v1684_v27 }
 0x1bf   : > { %v1686_v31 = vpop.f32.mrf.mxu0  ;;  %v1975_v33 = vpop.f32.mrf.mxu1 }
 0x1c0   : > { %2160 = vst [vmem:[%s3376_s28 + $0x160] sm:$0xff] %v3488_v29  ;;  %v2416_v31 = vadd.f32 %v2415_v23, %v2353_v20  ;;  %v2355_v33 = vmul.f32 %v3468_v4, %v3468_v4  ;;  %v2287_v4 = vadd.f32 %v2286_v63, %v3476_v14  ;;  %v2360_v2 = vmul.f32 %v3488_v29, %v3488_v29 }
 0x1c1   : > { %v1687_v34 = vpop.f32.mrf.mxu0  ;;  %v1976_v36 = vpop.f32.mrf.mxu1 }
 0x1c2   : > { %v3492_v37 = vadd.f32 %v1976_v36, %v1687_v34 }
 0x1c3   : > { %v1689_v39 = vpop.f32.mrf.mxu0  ;;  %v1978_v40 = vpop.f32.mrf.mxu1 }
 0x1c4   : > { %2161 = vst [vmem:[%s3376_s28 + $0x168] sm:$0xff] %v3492_v37  ;;  %v2417_v39 = vadd.f32 %v2416_v31, %v2354_v25  ;;  %v2356_v40 = vmul.f32 %v3472_v9, %v3472_v9  ;;  %v2288_v9 = vadd.f32 %v2287_v4, %v3480_v19  ;;  %v2361_v30 = vmul.f32 %v3492_v37, %v3492_v37 }
 0x1c5   : > { %v1692_v41 = vpop.f32.mrf.mxu0  ;;  %v1981_v42 = vpop.f32.mrf.mxu1 }
 0x1c6   : > { %v3496_v44 = vadd.f32 %v1981_v42, %v1692_v41 }
 0x1c7   : > { %v1694_v45 = vpop.f32.mrf.mxu0  ;;  %v1983_v46 = vpop.f32.mrf.mxu1 }
 0x1c8   : > { %2162 = vst [vmem:[%s3376_s28 + $0x170] sm:$0xff] %v3496_v44  ;;  %v2418_v46 = vadd.f32 %v2417_v39, %v2355_v33 }
 0x1c9   : > { %v1695_v47 = vpop.f32.mrf.mxu0  ;;  %v1984_v49 = vpop.f32.mrf.mxu1 }
 0x1ca   : > { %v3500_v50 = vadd.f32 %v1984_v49, %v1695_v47  ;;  %v2357_v47 = vmul.f32 %v3476_v14, %v3476_v14  ;;  %v2289_v14 = vadd.f32 %v2288_v9, %v3484_v24 }
 0x1cb   : > { %v1697_v51 = vpop.f32.mrf.mxu0  ;;  %v1986_v52 = vpop.f32.mrf.mxu1 }
 0x1cc   : > { %2163 = vst [vmem:[%s3376_s28 + $0x178] sm:$0xff] %v3500_v50  ;;  %v2419_v52 = vadd.f32 %v2418_v46, %v2356_v40 }
 0x1cd   : > { %v1700_v54 = vpop.f32.mrf.mxu0  ;;  %v1989_v55 = vpop.f32.mrf.mxu1 }
 0x1ce   : > { %v3506_v57 = vadd.f32 %v1989_v55, %v1700_v54  ;;  %v2358_v54 = vmul.f32 %v3480_v19, %v3480_v19  ;;  %v2290_v19 = vadd.f32 %v2289_v14, %v3488_v29 }
 0x1cf   : > { %v1702_v59 = vpop.f32.mrf.mxu0  ;;  %v1991_v60 = vpop.f32.mrf.mxu1 }
 0x1d0   : > { %2164 = vst [vmem:[%s3376_s28 + $0x180] sm:$0xff] %v3506_v57  ;;  %v2420_v60 = vadd.f32 %v2419_v52, %v2357_v47  ;;  %v2291_v24 = vadd.f32 %v2290_v19, %v3492_v37 }
 0x1d1   : > { %v1703_v0 = vpop.f32.mrf.mxu0  ;;  %v1992_v1 = vpop.f32.mrf.mxu1 }
 0x1d2   : > { %v3518_v6 = vadd.f32 %v1992_v1, %v1703_v0  ;;  %v2421_v1 = vadd.f32 %v2420_v60, %v2358_v54  ;;  %v2292_v29 = vadd.f32 %v2291_v24, %v3496_v44 }
 0x1d3   : > { %v1705_v7 = vpop.f32.mrf.mxu0  ;;  %v1994_v8 = vpop.f32.mrf.mxu1 }
 0x1d4   : > { %2165 = vst [vmem:[%s3376_s28 + $0x188] sm:$0xff] %v3518_v6  ;;  %v2422_v8 = vadd.f32 %v2421_v1, %v2359_v61  ;;  %v2293_v37 = vadd.f32 %v2292_v29, %v3500_v50 }
 0x1d5   : > { %v1708_v11 = vpop.f32.mrf.mxu0  ;;  %v1997_v12 = vpop.f32.mrf.mxu1 }
 0x1d6   : > { %v3528_v15 = vadd.f32 %v1997_v12, %v1708_v11  ;;  %v2423_v11 = vadd.f32 %v2422_v8, %v2360_v2  ;;  %v2362_v12 = vmul.f32 %v3496_v44, %v3496_v44  ;;  %v2365_v44 = vmul.f32 %v3518_v6, %v3518_v6 }
 0x1d7   : > { %v1710_v16 = vpop.f32.mrf.mxu0  ;;  %v1999_v17 = vpop.f32.mrf.mxu1 }
 0x1d8   : > { %2166 = vst [vmem:[%s3376_s28 + $0x190] sm:$0xff] %v3528_v15  ;;  %v2424_v16 = vadd.f32 %v2423_v11, %v2361_v30  ;;  %v2363_v17 = vmul.f32 %v3500_v50, %v3500_v50  ;;  %v2366_v50 = vmul.f32 %v3528_v15, %v3528_v15 }
 0x1d9   : > { %v1711_v21 = vpop.f32.mrf.mxu0  ;;  %v2000_v22 = vpop.f32.mrf.mxu1 }
 0x1da   : > { %v3538_v26 = vadd.f32 %v2000_v22, %v1711_v21  ;;  %v2425_v20 = vadd.f32 %v2424_v16, %v2362_v12  ;;  %v2364_v21 = vmul.f32 %v3506_v57, %v3506_v57 }
 0x1db   : > { %v1713_v27 = vpop.f32.mrf.mxu0  ;;  %v2002_v28 = vpop.f32.mrf.mxu1 }
 0x1dc   : > { %2167 = vst [vmem:[%s3376_s28 + $0x198] sm:$0xff] %v3538_v26  ;;  %v2426_v25 = vadd.f32 %v2425_v20, %v2363_v17  ;;  %v2294_v27 = vadd.f32 %v2293_v37, %v3506_v57  ;;  %v2367_v57 = vmul.f32 %v3538_v26, %v3538_v26 }
 0x1dd   : > { %v1716_v34 = vpop.f32.mrf.mxu0  ;;  %v2005_v36 = vpop.f32.mrf.mxu1 }
 0x1de   : > { %v3548_v41 = vadd.f32 %v2005_v36, %v1716_v34  ;;  %v2427_v53 = vadd.f32 %v2426_v25, %v2364_v21  ;;  %v2295_v33 = vadd.f32 %v2294_v27, %v3518_v6 }
 0x1df   : > { %v1718_v42 = vpop.f32.mrf.mxu0  ;;  %v2007_v45 = vpop.f32.mrf.mxu1 }
 0x1e0   : > { %2168 = vst [vmem:[%s3376_s28 + $0x1a0] sm:$0xff] %v3548_v41  ;;  %v2428_v58 = vadd.f32 %v2427_v53, %v2365_v44  ;;  %v2296_v40 = vadd.f32 %v2295_v33, %v3528_v15  ;;  %v2368_v6 = vmul.f32 %v3548_v41, %v3548_v41 }
 0x1e1   : > { %v1719_v49 = vpop.f32.mrf.mxu0  ;;  %v2008_v51 = vpop.f32.mrf.mxu1 }
 0x1e2   : > { %v3558_v55 = vadd.f32 %v2008_v51, %v1719_v49  ;;  %v2429_v46 = vadd.f32 %v2428_v58, %v2366_v50  ;;  %v2297_v63 = vadd.f32 %v2296_v40, %v3538_v26 }
 0x1e3   : > { %v1721_v56 = vpop.f32.mrf.mxu0  ;;  %v2010_v59 = vpop.f32.mrf.mxu1 }
 0x1e4   : > { %2169 = vst [vmem:[%s3376_s28 + $0x1a8] sm:$0xff] %v3558_v55  ;;  %v2430_v52 = vadd.f32 %v2429_v46, %v2367_v57  ;;  %v2298_v4 = vadd.f32 %v2297_v63, %v3548_v41  ;;  %v2369_v15 = vmul.f32 %v3558_v55, %v3558_v55 }
 0x1e5   : > { %v1724_v62 = vpop.f32.mrf.mxu0  ;;  %v2013_v0 = vpop.f32.mrf.mxu1 }
 0x1e6   : > { %v3568_v3 = vadd.f32 %v2013_v0, %v1724_v62  ;;  %v2431_v59 = vadd.f32 %v2430_v52, %v2368_v6  ;;  %v2299_v60 = vadd.f32 %v2298_v4, %v3558_v55 }
 0x1e7   : > { %v1726_v5 = vpop.f32.mrf.mxu0  ;;  %v2015_v7 = vpop.f32.mrf.mxu1 }
 0x1e8   : > { %2170 = vst [vmem:[%s3376_s28 + $0x1b0] sm:$0xff] %v3568_v3  ;;  %v2370_v26 = vmul.f32 %v3568_v3, %v3568_v3  ;;  %v2432_v0 = vadd.f32 %v2431_v59, %v2369_v15  ;;  %v2300_v1 = vadd.f32 %v2299_v60, %v3568_v3 }
 0x1e9   : > { %v1727_v32 = vpop.f32.mrf.mxu0  ;;  %v2016_v10 = vpop.f32.mrf.mxu1 }
 0x1ea   : > { %v2017_v35 = vadd.f32 %v2016_v10, %v1727_v32  ;;  %v2433_v5 = vadd.f32 %v2432_v0, %v2370_v26 }
 0x1eb   : > { %v1729_v38 = vpop.f32.mrf.mxu0  ;;  %v2018_v13 = vpop.f32.mrf.mxu1 }
 0x1ec   : > { %2171 = vst [vmem:[%s3376_s28 + $0x1b8] sm:$0xff] %v2017_v35  ;;  %v2371_v41 = vmul.f32 %v2017_v35, %v2017_v35  ;;  %v2301_v7 = vadd.f32 %v2300_v1, %v2017_v35 }
 0x1ed   : > { %v1732_v18 = vpop.f32.mrf.mxu0  ;;  %v2021_v43 = vpop.f32.mrf.mxu1 }
 0x1ee   : > { %v2022_v22 = vadd.f32 %v2021_v43, %v1732_v18  ;;  %v2434_v32 = vadd.f32 %v2433_v5, %v2371_v41 }
 0x1ef   : > { %v1734_v23 = vpop.f32.mrf.mxu0  ;;  %v2023_v48 = vpop.f32.mrf.mxu1 }
 0x1f0   : > { %2172 = vst [vmem:[%s3376_s28 + $0x1c0] sm:$0xff] %v2022_v22  ;;  %v2372_v8 = vmul.f32 %v2022_v22, %v2022_v22  ;;  %v2302_v10 = vadd.f32 %v2301_v7, %v2022_v22 }
 0x1f1   : > { %v1735_v28 = vpop.f32.mrf.mxu0  ;;  %v2024_v31 = vpop.f32.mrf.mxu1 }
 0x1f2   : > { %v2025_v34 = vadd.f32 %v2024_v31, %v1735_v28  ;;  %v2435_v38 = vadd.f32 %v2434_v32, %v2372_v8 }
 0x1f3   : > { %v1737_v36 = vpop.f32.mrf.mxu0  ;;  %v2026_v39 = vpop.f32.mrf.mxu1 }
 0x1f4   : > { %2173 = vst [vmem:[%s3376_s28 + $0x1c8] sm:$0xff] %v2025_v34  ;;  %v2373_v11 = vmul.f32 %v2025_v34, %v2025_v34  ;;  %v2303_v13 = vadd.f32 %v2302_v10, %v2025_v34 }
 0x1f5   : > { %v1740_v42 = vpop.f32.mrf.mxu0  ;;  %v2029_v45 = vpop.f32.mrf.mxu1 }
 0x1f6   : > { %v2030_v47 = vadd.f32 %v2029_v45, %v1740_v42  ;;  %v2436_v18 = vadd.f32 %v2435_v38, %v2373_v11 }
 0x1f7   : > { %v1742_v49 = vpop.f32.mrf.mxu0  ;;  %v2031_v51 = vpop.f32.mrf.mxu1 }
 0x1f8   : > { %2174 = vst [vmem:[%s3376_s28 + $0x1d0] sm:$0xff] %v2030_v47  ;;  %v2374_v3 = vmul.f32 %v2030_v47, %v2030_v47  ;;  %v2304_v35 = vadd.f32 %v2303_v13, %v2030_v47 }
 0x1f9   : > { %v1743_v54 = vpop.f32.mrf.mxu0  ;;  %v2032_v56 = vpop.f32.mrf.mxu1 }
 0x1fa   : > { %v2033_v9 = vadd.f32 %v2032_v56, %v1743_v54  ;;  %v2437_v21 = vadd.f32 %v2436_v18, %v2374_v3 }
 0x1fb   : > { %v1745_v61 = vpop.f32.mrf.mxu0  ;;  %v2034_v62 = vpop.f32.mrf.mxu1 }
 0x1fc   : > { %2175 = vst [vmem:[%s3376_s28 + $0x1d8] sm:$0xff] %v2033_v9  ;;  %v2375_v43 = vmul.f32 %v2033_v9, %v2033_v9  ;;  %v2305_v23 = vadd.f32 %v2304_v35, %v2033_v9 }
 0x1fd   : > { %v1748_v14 = vpop.f32.mrf.mxu0  ;;  %v2037_v2 = vpop.f32.mrf.mxu1 }
 0x1fe   : > { %v2038_v19 = vadd.f32 %v2037_v2, %v1748_v14  ;;  %v2438_v44 = vadd.f32 %v2437_v21, %v2375_v43 }
 0x1ff   : > { %v1750_v55 = vpop.f32.mrf.mxu0  ;;  %v2039_v30 = vpop.f32.mrf.mxu1 }
 0x200   : > { %2176 = vst [vmem:[%s3376_s28 + $0x1e0] sm:$0xff] %v2038_v19  ;;  %v2376_v22 = vmul.f32 %v2038_v19, %v2038_v19  ;;  %v2306_v28 = vadd.f32 %v2305_v23, %v2038_v19 }
 0x201   : > { %v1751_v24 = vpop.f32.mrf.mxu0  ;;  %v2040_v12 = vpop.f32.mrf.mxu1 }
 0x202   : > { %v2041_v16 = vadd.f32 %v2040_v12, %v1751_v24  ;;  %v2439_v50 = vadd.f32 %v2438_v44, %v2376_v22 }
 0x203   : > { %v1753_v29 = vpop.f32.mrf.mxu0  ;;  %v2042_v17 = vpop.f32.mrf.mxu1 }
 0x204   : > { %2177 = vst [vmem:[%s3376_s28 + $0x1e8] sm:$0xff] %v2041_v16  ;;  %v2377_v31 = vmul.f32 %v2041_v16, %v2041_v16  ;;  %v2307_v34 = vadd.f32 %v2306_v28, %v2041_v16 }
 0x205   : > { %v1756_v20 = vpop.f32.mrf.mxu0  ;;  %v2045_v37 = vpop.f32.mrf.mxu1 }
 0x206   : > { %v2046_v48 = vadd.f32 %v2045_v37, %v1756_v20  ;;  %v2440_v57 = vadd.f32 %v2439_v50, %v2377_v31 }
 0x207   : > { %v1758_v25 = vpop.f32.mrf.mxu0  ;;  %v2047_v27 = vpop.f32.mrf.mxu1 }
 0x208   : > { %2178 = vst [vmem:[%s3376_s28 + $0x1f0] sm:$0xff] %v2046_v48  ;;  %v2378_v36 = vmul.f32 %v2046_v48, %v2046_v48  ;;  %v2308_v42 = vadd.f32 %v2307_v34, %v2046_v48 }
 0x209   : > { %v1759_v53 = vpop.f32.mrf.mxu0  ;;  %v2048_v33 = vpop.f32.mrf.mxu1 }
 0x20a   : > { %v2049_v39 = vadd.f32 %v2048_v33, %v1759_v53  ;;  %v2441_v45 = vadd.f32 %v2440_v57, %v2378_v36 }
 0x20b   : > { %v1761_v58 = vpop.f32.mrf.mxu0  ;;  %v2050_v40 = vpop.f32.mrf.mxu1 }
 0x20c   : > { %2179 = vst [vmem:[%s3376_s28 + $0x1f8] sm:$0xff] %v2049_v39  ;;  %v2309_v46 = vadd.f32 %v2308_v42, %v2049_v39  ;;  %v2379_v63 = vmul.f32 %v2049_v39, %v2049_v39 }
 0x20e   : > { %v2310_v6 = vrot.slane %v2309_v46, 4  ;;  %v2442_v47 = vadd.f32 %v2441_v45, %v2379_v63 }
 0x210   : > { %v2311_v49 = vadd.f32 %v2310_v6, %v2309_v46  ;;  %v2443_v51 = vrot.slane %v2442_v47, 4 }
 0x212   : > { %v2312_v52 = vrot.slane %v2311_v49, 2  ;;  %v2444_v4 = vadd.f32 %v2443_v51, %v2442_v47 }
 0x214   : > { %v2313_v15 = vadd.f32 %v2312_v52, %v2311_v49  ;;  %v2445_v54 = vrot.slane %v2444_v4, 2 }
 0x216   : > { %v2314_v56 = vrot.slane %v2313_v15, 1  ;;  %v2446_v59 = vadd.f32 %v2445_v54, %v2444_v4 }
 0x218   : > { %v2315_v60 = vadd.f32 %v2314_v56, %v2313_v15  ;;  %v2447_v26 = vrot.slane %v2446_v59, 1 }
 0x21a   : > { %v2448_v9 = vadd.f32 %v2447_v26, %v2446_v59  ;;  %2450 = vst [vmem:[%s309_s30] sm:$0xff] %v2315_v60 }
 0x21c   : > { %2452 = vst [vmem:[%s316_s7] sm:$0xff] %v2448_v9 }
 0x21d PF: > { %s15_s17 = sadd.s32 1, %s3085_s17   ;;  %s3634_s15 = smov %s3081_s16 }
 0x21e   : > { %p12_p6 = scmp.ge.s32.totalorder %s15_s17, 4   ;;  %s3635_s16 = smov %s3637_s18 }
 0x220   :  { %14 = sbr.rel (!%p12_p6) target bundleno = 2 (0x2), region = 93 }

</bundles_post_ra>
